<compile_context>
chip_gen: v5e
topology: v5e:2x2
jax: 0.10.0
libtpu: 0.0.40
codegen_flags: <defaults>
</compile_context>

<pallas_src>
import functools
import numpy as np
import jax
import jax.numpy as jnp
from jax import lax
from jax.experimental import pallas as pl
from jax.experimental.pallas import tpu as pltpu

# ---------------- scaled-down model dimensions ----------------
CIN, COUT, KSZ = 3, 16, 3            # Conv2d(3, 16, 3)
H = W = 16                           # small spatial size (module implies 64)
OH, OW = H - KSZ + 1, W - KSZ + 1    # valid conv, stride 1 -> 14 x 14
P = OH * OW                          # 196 valid output pixels per channel
CKK = CIN * KSZ * KSZ                # 27  im2col contraction dim
CKKP = 32                            # padded contraction dim (zero columns)
HW = H * W                           # 256 = lane-dense padded pixel axis
HWP = HW + 64                        # input pixel axis padded for shifted slices
FLAT = COUT * P                      # 3136 (stands in for 61504)
HID = 256                            # stands in for 2048
NCLS = 4                             # fc_2 output classes

CPB = 4                              # conv channels per fc_0 K-tile
KT = COUT // CPB                     # 4 grid steps over the contraction axis


# ---------------- fused kernel ----------------
def _fused_kernel(n_samp,
                  xp_ref, wcs_ref, bc_ref, w0_ref, b0_ref, w1_ref, b1_ref,
                  w2_ref, b2_ref,
                  feat_ref, final_ref,
                  xf_ref, acc_ref):
    k = pl.program_id(0)

    # ---- step 0: conv (in-kernel im2col) + bias + ReLU, kept in VMEM ----
    @pl.when(k == 0)
    def _():
        acc_ref[...] = jnp.zeros_like(acc_ref)
        wc = wcs_ref[...]                                     # (COUT, CKKP)
        bc = bc_ref[...]                                      # (COUT, 1)
        acts = []
        for i in range(n_samp):
            rows = []
            for dy in range(KSZ):
                for dx in range(KSZ):
                    s = dy * W + dx
                    # shifted view of sample i, full (padded) H*W pixel axis
                    rows.append(xp_ref[i * CIN:(i + 1) * CIN, s:s + HW])   # (CIN, HW)
            rows.append(jnp.zeros((CKKP - CKK, HW), jnp.float32))
            patches = jnp.concatenate(rows, axis=0)           # (CKKP, HW)
            conv = jnp.dot(wc, patches,
                           preferred_element_type=jnp.float32)  # (COUT, HW)
            # TODO(synk): F.dropout (training mode) treated as identity (eval).
            acts.append(jnp.maximum(conv + bc, 0.0))          # flatten+ReLU order-safe
        # repack channel-major so each fc_0 K-tile reads an (n, HW) slab per channel
        for co in range(COUT):
            xf_ref[co] = jnp.concatenate(
                [acts[i][co:co + 1, :] for i in range(n_samp)], axis=0)  # (n, HW)

    # ---- fc_0: K-tiled over channel groups, f32 accumulation in VMEM ----
    for c in range(CPB):
        ch = k * CPB + c
        xc = xf_ref[ch]                                       # (n, HW) f32
        acc_ref[...] += jnp.dot(xc.astype(jnp.bfloat16), w0_ref[c],
                                preferred_element_type=jnp.float32)

    # ---- finalize: bias/ReLU, max over samples, fc_1, fc_2, softmax ----
    @pl.when(k == KT - 1)
    def _():
        h0 = jnp.maximum(acc_ref[...] + b0_ref[...], 0.0)     # (n, HID)
        xm = jnp.max(h0, axis=0, keepdims=True)               # (1, HID); extra ReLU dropped (h0>=0)
        f1 = jnp.dot(xm.astype(jnp.bfloat16), w1_ref[...],
                     preferred_element_type=jnp.float32) + b1_ref[...]
        feat = jnp.maximum(f1, 0.0)                           # (1, HID)
        feat_ref[...] = feat
        logits = jnp.dot(feat, w2_ref[...],
                         preferred_element_type=jnp.float32) + b2_ref[...]  # (1, NCLS)
        m = jnp.max(logits, axis=-1, keepdims=True)
        e = jnp.exp(logits - m)
        final_ref[...] = e / jnp.sum(e, axis=-1, keepdims=True)


# ---------------- one-time weight preprocessing (outside the jitted forward) ----------------
def prepare_params(params):
    # conv weight -> (COUT, CKK) with columns ordered (dy, dx, ci), zero-padded to CKKP
    wcs = jnp.transpose(params["wc"], (0, 2, 3, 1)).reshape(COUT, CKK)
    wcs = jnp.pad(wcs, ((0, 0), (0, CKKP - CKK)))
    bc = params["bc"].reshape(COUT, 1)
    # fc_0 weight scattered onto the padded (H*W) pixel grid: rows for invalid
    # pixels are zero, so the wrapped/padded conv positions contribute nothing.
    w0_4d = params["w0"].reshape(COUT, OH, OW, HID)
    w0p = jnp.zeros((COUT, H, W, HID), params["w0"].dtype).at[:, :OH, :OW, :].set(w0_4d)
    w0p = w0p.reshape(COUT, HW, HID).astype(jnp.bfloat16)
    return dict(
        wcs=wcs, bc=bc, w0p=w0p,
        b0=params["b0"].reshape(1, HID),
        w1=params["w1"].astype(jnp.bfloat16),
        b1=params["b1"].reshape(1, HID),
        w2=params["w2"],
        b2=params["b2"].reshape(1, NCLS),
    )


# ---------------- forward ----------------
@functools.partial(jax.jit, static_argnums=1)
def enc_classifier_forward(data, n, prep):
    # data: (1, B, C, H, W); n is static (PyTorch slices data.squeeze(0)[:n]).
    x = data[0, :n]                                           # (n, CIN, H, W)
    xp = jnp.pad(x.reshape(n * CIN, HW), ((0, 0), (0, HWP - HW)))   # (n*CIN, HWP)

    kernel = functools.partial(_fused_kernel, n)
    grid_spec = pltpu.PrefetchScalarGridSpec(
        num_scalar_prefetch=0,
        grid=(KT,),
        in_specs=[
            pl.BlockSpec((n * CIN, HWP), lambda k: (0, 0)),       # raw input (fetched once)
            pl.BlockSpec((COUT, CKKP), lambda k: (0, 0)),         # conv weight
            pl.BlockSpec((COUT, 1), lambda k: (0, 0)),            # conv bias
            pl.BlockSpec((CPB, HW, HID), lambda k: (k, 0, 0)),    # fc_0 weight (pipelined K-tiles)
            pl.BlockSpec((1, HID), lambda k: (0, 0)),             # b0
            pl.BlockSpec((HID, HID), lambda k: (0, 0)),           # w1 (bf16)
            pl.BlockSpec((1, HID), lambda k: (0, 0)),             # b1
            pl.BlockSpec((HID, NCLS), lambda k: (0, 0)),          # w2
            pl.BlockSpec((1, NCLS), lambda k: (0, 0)),            # b2
        ],
        out_specs=[
            pl.BlockSpec((1, HID), lambda k: (0, 0)),             # feat
            pl.BlockSpec((1, NCLS), lambda k: (0, 0)),            # final
        ],
        scratch_shapes=[
            pltpu.VMEM((COUT, n, HW), jnp.float32),               # conv activations
            pltpu.VMEM((n, HID), jnp.float32),                    # fc_0 accumulator
        ],
    )
    feat, final = pl.pallas_call(
        kernel,
        out_shape=(jax.ShapeDtypeStruct((1, HID), jnp.float32),
                   jax.ShapeDtypeStruct((1, NCLS), jnp.float32)),
        grid_spec=grid_spec,
        compiler_params=pltpu.CompilerParams(dimension_semantics=("arbitrary",)),
    )(xp, prep["wcs"], prep["bc"], prep["w0p"], prep["b0"],
      prep["w1"], prep["b1"], prep["w2"], prep["b2"])
    return feat, final                                        # (1, HID), (1, NCLS)


# ---------------- pure-JAX reference (same bf16-quantized weights) ----------------
def reference_forward(data, n, params):
    x = data[0, :n]
    conv = lax.conv_general_dilated(
        x, params["wc"], (1, 1), "VALID",
        dimension_numbers=("NCHW", "OIHW", "NCHW")) + params["bc"].reshape(1, COUT, 1, 1)
    xr = jnp.maximum(conv.reshape(n, -1), 0.0)
    w0q = params["w0"].astype(jnp.bfloat16).astype(jnp.float32)
    w1q = params["w1"].astype(jnp.bfloat16).astype(jnp.float32)
    h0 = jnp.maximum(xr @ w0q + params["b0"], 0.0)
    xm = jnp.maximum(jnp.max(h0, axis=0), 0.0)
    feat = jnp.maximum(xm @ w1q + params["b1"], 0.0)
    final = jax.nn.softmax(feat @ params["w2"] + params["b2"])
    return feat.reshape(1, -1), final.reshape(1, -1)


if __name__ == "__main__":
    key = jax.random.PRNGKey(0)
    ks = jax.random.split(key, 9)
    params = {
        "wc": jax.random.normal(ks[0], (COUT, CIN, KSZ, KSZ), jnp.float32) * 0.1,
        "bc": jax.random.normal(ks[1], (COUT,), jnp.float32) * 0.1,
        "w0": jax.random.normal(ks[2], (FLAT, HID), jnp.float32) * 0.02,   # fc_0 (in x out)
        "b0": jax.random.normal(ks[3], (HID,), jnp.float32) * 0.02,
        "w1": jax.random.normal(ks[4], (HID, HID), jnp.float32) * 0.05,    # fc_1
        "b1": jax.random.normal(ks[5], (HID,), jnp.float32) * 0.05,
        "w2": jax.random.normal(ks[6], (HID, NCLS), jnp.float32) * 0.05,   # fc_2
        "b2": jax.random.normal(ks[7], (NCLS,), jnp.float32) * 0.05,
    }
    data = jax.random.normal(ks[8], (1, 6, CIN, H, W), jnp.float32)
    n = 4

    prep = prepare_params(params)
    feat, final = enc_classifier_forward(data, n, prep)
    jax.block_until_ready((feat, final))

    assert feat.shape == (1, HID) and final.shape == (1, NCLS)
    feat_ref, final_ref = reference_forward(data, n, params)
    np.testing.assert_allclose(np.asarray(feat), np.asarray(feat_ref), rtol=2e-2, atol=2e-2)
    np.testing.assert_allclose(np.asarray(final), np.asarray(final_ref), rtol=2e-2, atol=2e-2)
    print("KERNEL_OK")
</pallas_src>

<mosaic_0001>
module attributes {stable_mosaic.version = 11 : i64} {
  func.func @_fused_kernel(%arg0: i32, %arg1: memref<12x320xf32, #tpu.memory_space<vmem>>, %arg2: memref<16x32xf32, #tpu.memory_space<vmem>>, %arg3: memref<16x1xf32, #tpu.memory_space<vmem>>, %arg4: memref<4x256x256xbf16, #tpu.memory_space<vmem>>, %arg5: memref<1x256xf32, #tpu.memory_space<vmem>>, %arg6: memref<256x256xbf16, #tpu.memory_space<vmem>>, %arg7: memref<1x256xf32, #tpu.memory_space<vmem>>, %arg8: memref<256x4xf32, #tpu.memory_space<vmem>>, %arg9: memref<1x4xf32, #tpu.memory_space<vmem>>, %arg10: memref<1x256xf32, #tpu.memory_space<vmem>>, %arg11: memref<1x4xf32, #tpu.memory_space<vmem>>, %arg12: memref<16x4x256xf32, #tpu.memory_space<vmem>>, %arg13: memref<4x256xf32, #tpu.memory_space<vmem>>) attributes {dimension_semantics = [#tpu.dimension_semantics<arbitrary>], iteration_bounds = array<i64: 4>, scalar_prefetch = 0 : i64, scratch_operands = 2 : i64, tpu.core_type = #tpu.core_type<tc>, window_params = [{pipeline_mode = #tpu.pipeline_mode<synchronous>, transform_indices = @transform_0, window_bounds = array<i64: 12, 320>}, {pipeline_mode = #tpu.pipeline_mode<synchronous>, transform_indices = @transform_1, window_bounds = array<i64: 16, 32>}, {pipeline_mode = #tpu.pipeline_mode<synchronous>, transform_indices = @transform_2, window_bounds = array<i64: 16, 1>}, {transform_indices = @transform_3, window_bounds = array<i64: 4, 256, 256>}, {pipeline_mode = #tpu.pipeline_mode<synchronous>, transform_indices = @transform_4, window_bounds = array<i64: 1, 256>}, {pipeline_mode = #tpu.pipeline_mode<synchronous>, transform_indices = @transform_5, window_bounds = array<i64: 256, 256>}, {pipeline_mode = #tpu.pipeline_mode<synchronous>, transform_indices = @transform_6, window_bounds = array<i64: 1, 256>}, {pipeline_mode = #tpu.pipeline_mode<synchronous>, transform_indices = @transform_7, window_bounds = array<i64: 256, 4>}, {pipeline_mode = #tpu.pipeline_mode<synchronous>, transform_indices = @transform_8, window_bounds = array<i64: 1, 4>}, {pipeline_mode = #tpu.pipeline_mode<synchronous>, transform_indices = @transform_9, window_bounds = array<i64: 1, 256>}, {pipeline_mode = #tpu.pipeline_mode<synchronous>, transform_indices = @transform_10, window_bounds = array<i64: 1, 4>}]} {
    %c0_i32 = arith.constant 0 : i32
    %0 = arith.cmpi eq, %arg0, %c0_i32 : i32
    %1 = arith.extui %0 : i1 to i32
    %c0_i32_0 = arith.constant 0 : i32
    %2 = arith.cmpi ne, %1, %c0_i32_0 : i32
    scf.if %2 {
      %cst_42 = arith.constant 0.000000e+00 : f32
      %54 = vector.broadcast %cst_42 : f32 to vector<4x256xf32>
      %c0_43 = arith.constant 0 : index
      %c0_44 = arith.constant 0 : index
      %55 = vector.load %arg13[%c0_43, %c0_44] : memref<4x256xf32, #tpu.memory_space<vmem>>, vector<4x256xf32>
      tpu.vector_store %arg13[%c0_43, %c0_44], %54 {strides = array<i32>} : memref<4x256xf32, #tpu.memory_space<vmem>>, vector<4x256xf32>,
      %c0_45 = arith.constant 0 : index
      %c0_46 = arith.constant 0 : index
      %56 = vector.load %arg2[%c0_45, %c0_46] : memref<16x32xf32, #tpu.memory_space<vmem>>, vector<16x32xf32>
      %c0_47 = arith.constant 0 : index
      %c0_48 = arith.constant 0 : index
      %57 = vector.load %arg3[%c0_47, %c0_48] : memref<16x1xf32, #tpu.memory_space<vmem>>, vector<16x1xf32>
      %c0_49 = arith.constant 0 : index
      %c0_50 = arith.constant 0 : index
      %58 = vector.load %arg1[%c0_49, %c0_50] : memref<12x320xf32, #tpu.memory_space<vmem>>, vector<3x256xf32>
      %c0_51 = arith.constant 0 : index
      %c1_52 = arith.constant 1 : index
      %59 = vector.load %arg1[%c0_51, %c1_52] : memref<12x320xf32, #tpu.memory_space<vmem>>, vector<3x256xf32>
      %c0_53 = arith.constant 0 : index
      %c2_54 = arith.constant 2 : index
      %60 = vector.load %arg1[%c0_53, %c2_54] : memref<12x320xf32, #tpu.memory_space<vmem>>, vector<3x256xf32>
      %c0_55 = arith.constant 0 : index
      %c16 = arith.constant 16 : index
      %61 = vector.load %arg1[%c0_55, %c16] : memref<12x320xf32, #tpu.memory_space<vmem>>, vector<3x256xf32>
      %c0_56 = arith.constant 0 : index
      %c17 = arith.constant 17 : index
      %62 = vector.load %arg1[%c0_56, %c17] : memref<12x320xf32, #tpu.memory_space<vmem>>, vector<3x256xf32>
      %c0_57 = arith.constant 0 : index
      %c18 = arith.constant 18 : index
      %63 = vector.load %arg1[%c0_57, %c18] : memref<12x320xf32, #tpu.memory_space<vmem>>, vector<3x256xf32>
      %c0_58 = arith.constant 0 : index
      %c32 = arith.constant 32 : index
      %64 = vector.load %arg1[%c0_58, %c32] : memref<12x320xf32, #tpu.memory_space<vmem>>, vector<3x256xf32>
      %c0_59 = arith.constant 0 : index
      %c33 = arith.constant 33 : index
      %65 = vector.load %arg1[%c0_59, %c33] : memref<12x320xf32, #tpu.memory_space<vmem>>, vector<3x256xf32>
      %c0_60 = arith.constant 0 : index
      %c34 = arith.constant 34 : index
      %66 = vector.load %arg1[%c0_60, %c34] : memref<12x320xf32, #tpu.memory_space<vmem>>, vector<3x256xf32>
      %cst_61 = arith.constant 0.000000e+00 : f32
      %67 = vector.broadcast %cst_61 : f32 to vector<5x256xf32>
      %68 = tpu.concatenate %58, %59, %60, %61, %62, %63, %64, %65, %66, %67 in 0 : vector<3x256xf32>, vector<3x256xf32>, vector<3x256xf32>, vector<3x256xf32>, vector<3x256xf32>, vector<3x256xf32>, vector<3x256xf32>, vector<3x256xf32>, vector<3x256xf32>, vector<5x256xf32> -> vector<32x256xf32>
      %cst_62 = arith.constant dense<0.000000e+00> : vector<16x256xf32>
      %69 = tpu.matmul %56, %68, %cst_62 {dimension_numbers = #tpu.dot_dimension_numbers<[1], [0], [0], [1], [0, 0, 1, 1], [], []>} : vector<16x32xf32>, vector<32x256xf32>, vector<16x256xf32> -> vector<16x256xf32>
      %70 = vector.broadcast %57 : vector<16x1xf32> to vector<16x256xf32>
      %71 = arith.addf %69, %70 : vector<16x256xf32>
      %cst_63 = arith.constant 0.000000e+00 : f32
      %72 = vector.broadcast %cst_63 : f32 to vector<16x256xf32>
      %73 = arith.maximumf %71, %72 : vector<16x256xf32>
      %c3_64 = arith.constant 3 : index
      %c0_65 = arith.constant 0 : index
      %74 = vector.load %arg1[%c3_64, %c0_65] : memref<12x320xf32, #tpu.memory_space<vmem>>, vector<3x256xf32>
      %c3_66 = arith.constant 3 : index
      %c1_67 = arith.constant 1 : index
      %75 = vector.load %arg1[%c3_66, %c1_67] : memref<12x320xf32, #tpu.memory_space<vmem>>, vector<3x256xf32>
      %c3_68 = arith.constant 3 : index
      %c2_69 = arith.constant 2 : index
      %76 = vector.load %arg1[%c3_68, %c2_69] : memref<12x320xf32, #tpu.memory_space<vmem>>, vector<3x256xf32>
      %c3_70 = arith.constant 3 : index
      %c16_71 = arith.constant 16 : index
      %77 = vector.load %arg1[%c3_70, %c16_71] : memref<12x320xf32, #tpu.memory_space<vmem>>, vector<3x256xf32>
      %c3_72 = arith.constant 3 : index
      %c17_73 = arith.constant 17 : index
      %78 = vector.load %arg1[%c3_72, %c17_73] : memref<12x320xf32, #tpu.memory_space<vmem>>, vector<3x256xf32>
      %c3_74 = arith.constant 3 : index
      %c18_75 = arith.constant 18 : index
      %79 = vector.load %arg1[%c3_74, %c18_75] : memref<12x320xf32, #tpu.memory_space<vmem>>, vector<3x256xf32>
      %c3_76 = arith.constant 3 : index
      %c32_77 = arith.constant 32 : index
      %80 = vector.load %arg1[%c3_76, %c32_77] : memref<12x320xf32, #tpu.memory_space<vmem>>, vector<3x256xf32>
      %c3_78 = arith.constant 3 : index
      %c33_79 = arith.constant 33 : index
      %81 = vector.load %arg1[%c3_78, %c33_79] : memref<12x320xf32, #tpu.memory_space<vmem>>, vector<3x256xf32>
      %c3_80 = arith.constant 3 : index
      %c34_81 = arith.constant 34 : index
      %82 = vector.load %arg1[%c3_80, %c34_81] : memref<12x320xf32, #tpu.memory_space<vmem>>, vector<3x256xf32>
      %cst_82 = arith.constant 0.000000e+00 : f32
      %83 = vector.broadcast %cst_82 : f32 to vector<5x256xf32>
      %84 = tpu.concatenate %74, %75, %76, %77, %78, %79, %80, %81, %82, %83 in 0 : vector<3x256xf32>, vector<3x256xf32>, vector<3x256xf32>, vector<3x256xf32>, vector<3x256xf32>, vector<3x256xf32>, vector<3x256xf32>, vector<3x256xf32>, vector<3x256xf32>, vector<5x256xf32> -> vector<32x256xf32>
      %cst_83 = arith.constant dense<0.000000e+00> : vector<16x256xf32>
      %85 = tpu.matmul %56, %84, %cst_83 {dimension_numbers = #tpu.dot_dimension_numbers<[1], [0], [0], [1], [0, 0, 1, 1], [], []>} : vector<16x32xf32>, vector<32x256xf32>, vector<16x256xf32> -> vector<16x256xf32>
      %86 = vector.broadcast %57 : vector<16x1xf32> to vector<16x256xf32>
      %87 = arith.addf %85, %86 : vector<16x256xf32>
      %cst_84 = arith.constant 0.000000e+00 : f32
      %88 = vector.broadcast %cst_84 : f32 to vector<16x256xf32>
      %89 = arith.maximumf %87, %88 : vector<16x256xf32>
      %c6 = arith.constant 6 : index
      %c0_85 = arith.constant 0 : index
      %90 = vector.load %arg1[%c6, %c0_85] : memref<12x320xf32, #tpu.memory_space<vmem>>, vector<3x256xf32>
      %c6_86 = arith.constant 6 : index
      %c1_87 = arith.constant 1 : index
      %91 = vector.load %arg1[%c6_86, %c1_87] : memref<12x320xf32, #tpu.memory_space<vmem>>, vector<3x256xf32>
      %c6_88 = arith.constant 6 : index
      %c2_89 = arith.constant 2 : index
      %92 = vector.load %arg1[%c6_88, %c2_89] : memref<12x320xf32, #tpu.memory_space<vmem>>, vector<3x256xf32>
      %c6_90 = arith.constant 6 : index
      %c16_91 = arith.constant 16 : index
      %93 = vector.load %arg1[%c6_90, %c16_91] : memref<12x320xf32, #tpu.memory_space<vmem>>, vector<3x256xf32>
      %c6_92 = arith.constant 6 : index
      %c17_93 = arith.constant 17 : index
      %94 = vector.load %arg1[%c6_92, %c17_93] : memref<12x320xf32, #tpu.memory_space<vmem>>, vector<3x256xf32>
      %c6_94 = arith.constant 6 : index
      %c18_95 = arith.constant 18 : index
      %95 = vector.load %arg1[%c6_94, %c18_95] : memref<12x320xf32, #tpu.memory_space<vmem>>, vector<3x256xf32>
      %c6_96 = arith.constant 6 : index
      %c32_97 = arith.constant 32 : index
      %96 = vector.load %arg1[%c6_96, %c32_97] : memref<12x320xf32, #tpu.memory_space<vmem>>, vector<3x256xf32>
      %c6_98 = arith.constant 6 : index
      %c33_99 = arith.constant 33 : index
      %97 = vector.load %arg1[%c6_98, %c33_99] : memref<12x320xf32, #tpu.memory_space<vmem>>, vector<3x256xf32>
      %c6_100 = arith.constant 6 : index
      %c34_101 = arith.constant 34 : index
      %98 = vector.load %arg1[%c6_100, %c34_101] : memref<12x320xf32, #tpu.memory_space<vmem>>, vector<3x256xf32>
      %cst_102 = arith.constant 0.000000e+00 : f32
      %99 = vector.broadcast %cst_102 : f32 to vector<5x256xf32>
      %100 = tpu.concatenate %90, %91, %92, %93, %94, %95, %96, %97, %98, %99 in 0 : vector<3x256xf32>, vector<3x256xf32>, vector<3x256xf32>, vector<3x256xf32>, vector<3x256xf32>, vector<3x256xf32>, vector<3x256xf32>, vector<3x256xf32>, vector<3x256xf32>, vector<5x256xf32> -> vector<32x256xf32>
      %cst_103 = arith.constant dense<0.000000e+00> : vector<16x256xf32>
      %101 = tpu.matmul %56, %100, %cst_103 {dimension_numbers = #tpu.dot_dimension_numbers<[1], [0], [0], [1], [0, 0, 1, 1], [], []>} : vector<16x32xf32>, vector<32x256xf32>, vector<16x256xf32> -> vector<16x256xf32>
      %102 = vector.broadcast %57 : vector<16x1xf32> to vector<16x256xf32>
      %103 = arith.addf %101, %102 : vector<16x256xf32>
      %cst_104 = arith.constant 0.000000e+00 : f32
      %104 = vector.broadcast %cst_104 : f32 to vector<16x256xf32>
      %105 = arith.maximumf %103, %104 : vector<16x256xf32>
      %c9 = arith.constant 9 : index
      %c0_105 = arith.constant 0 : index
      %106 = vector.load %arg1[%c9, %c0_105] : memref<12x320xf32, #tpu.memory_space<vmem>>, vector<3x256xf32>
      %c9_106 = arith.constant 9 : index
      %c1_107 = arith.constant 1 : index
      %107 = vector.load %arg1[%c9_106, %c1_107] : memref<12x320xf32, #tpu.memory_space<vmem>>, vector<3x256xf32>
      %c9_108 = arith.constant 9 : index
      %c2_109 = arith.constant 2 : index
      %108 = vector.load %arg1[%c9_108, %c2_109] : memref<12x320xf32, #tpu.memory_space<vmem>>, vector<3x256xf32>
      %c9_110 = arith.constant 9 : index
      %c16_111 = arith.constant 16 : index
      %109 = vector.load %arg1[%c9_110, %c16_111] : memref<12x320xf32, #tpu.memory_space<vmem>>, vector<3x256xf32>
      %c9_112 = arith.constant 9 : index
      %c17_113 = arith.constant 17 : index
      %110 = vector.load %arg1[%c9_112, %c17_113] : memref<12x320xf32, #tpu.memory_space<vmem>>, vector<3x256xf32>
      %c9_114 = arith.constant 9 : index
      %c18_115 = arith.constant 18 : index
      %111 = vector.load %arg1[%c9_114, %c18_115] : memref<12x320xf32, #tpu.memory_space<vmem>>, vector<3x256xf32>
      %c9_116 = arith.constant 9 : index
      %c32_117 = arith.constant 32 : index
      %112 = vector.load %arg1[%c9_116, %c32_117] : memref<12x320xf32, #tpu.memory_space<vmem>>, vector<3x256xf32>
      %c9_118 = arith.constant 9 : index
      %c33_119 = arith.constant 33 : index
      %113 = vector.load %arg1[%c9_118, %c33_119] : memref<12x320xf32, #tpu.memory_space<vmem>>, vector<3x256xf32>
      %c9_120 = arith.constant 9 : index
      %c34_121 = arith.constant 34 : index
      %114 = vector.load %arg1[%c9_120, %c34_121] : memref<12x320xf32, #tpu.memory_space<vmem>>, vector<3x256xf32>
      %cst_122 = arith.constant 0.000000e+00 : f32
      %115 = vector.broadcast %cst_122 : f32 to vector<5x256xf32>
      %116 = tpu.concatenate %106, %107, %108, %109, %110, %111, %112, %113, %114, %115 in 0 : vector<3x256xf32>, vector<3x256xf32>, vector<3x256xf32>, vector<3x256xf32>, vector<3x256xf32>, vector<3x256xf32>, vector<3x256xf32>, vector<3x256xf32>, vector<3x256xf32>, vector<5x256xf32> -> vector<32x256xf32>
      %cst_123 = arith.constant dense<0.000000e+00> : vector<16x256xf32>
      %117 = tpu.matmul %56, %116, %cst_123 {dimension_numbers = #tpu.dot_dimension_numbers<[1], [0], [0], [1], [0, 0, 1, 1], [], []>} : vector<16x32xf32>, vector<32x256xf32>, vector<16x256xf32> -> vector<16x256xf32>
      %118 = vector.broadcast %57 : vector<16x1xf32> to vector<16x256xf32>
      %119 = arith.addf %117, %118 : vector<16x256xf32>
      %cst_124 = arith.constant 0.000000e+00 : f32
      %120 = vector.broadcast %cst_124 : f32 to vector<16x256xf32>
      %121 = arith.maximumf %119, %120 : vector<16x256xf32>
      %122 = vector.extract_strided_slice %73 {offsets = [0, 0], sizes = [1, 256], strides = [1, 1]} : vector<16x256xf32> to vector<1x256xf32>
      %123 = vector.extract_strided_slice %89 {offsets = [0, 0], sizes = [1, 256], strides = [1, 1]} : vector<16x256xf32> to vector<1x256xf32>
      %124 = vector.extract_strided_slice %105 {offsets = [0, 0], sizes = [1, 256], strides = [1, 1]} : vector<16x256xf32> to vector<1x256xf32>
      %125 = vector.extract_strided_slice %121 {offsets = [0, 0], sizes = [1, 256], strides = [1, 1]} : vector<16x256xf32> to vector<1x256xf32>
      %126 = tpu.concatenate %122, %123, %124, %125 in 0 : vector<1x256xf32>, vector<1x256xf32>, vector<1x256xf32>, vector<1x256xf32> -> vector<4x256xf32>
      %c0_125 = arith.constant 0 : index
      %c0_126 = arith.constant 0 : index
      %c0_127 = arith.constant 0 : index
      %127 = vector.load %arg12[%c0_125, %c0_126, %c0_127] : memref<16x4x256xf32, #tpu.memory_space<vmem>>, vector<1x4x256xf32>
      %128 = vector.shape_cast %127 : vector<1x4x256xf32> to vector<4x256xf32>
      %129 = vector.shape_cast %126 : vector<4x256xf32> to vector<1x4x256xf32>
      tpu.vector_store %arg12[%c0_125, %c0_126, %c0_127], %129 {strides = array<i32>} : memref<16x4x256xf32, #tpu.memory_space<vmem>>, vector<1x4x256xf32>,
      %130 = vector.extract_strided_slice %73 {offsets = [1, 0], sizes = [1, 256], strides = [1, 1]} : vector<16x256xf32> to vector<1x256xf32>
      %131 = vector.extract_strided_slice %89 {offsets = [1, 0], sizes = [1, 256], strides = [1, 1]} : vector<16x256xf32> to vector<1x256xf32>
      %132 = vector.extract_strided_slice %105 {offsets = [1, 0], sizes = [1, 256], strides = [1, 1]} : vector<16x256xf32> to vector<1x256xf32>
      %133 = vector.extract_strided_slice %121 {offsets = [1, 0], sizes = [1, 256], strides = [1, 1]} : vector<16x256xf32> to vector<1x256xf32>
      %134 = tpu.concatenate %130, %131, %132, %133 in 0 : vector<1x256xf32>, vector<1x256xf32>, vector<1x256xf32>, vector<1x256xf32> -> vector<4x256xf32>
      %c1_128 = arith.constant 1 : index
      %c0_129 = arith.constant 0 : index
      %c0_130 = arith.constant 0 : index
      %135 = vector.load %arg12[%c1_128, %c0_129, %c0_130] : memref<16x4x256xf32, #tpu.memory_space<vmem>>, vector<1x4x256xf32>
      %136 = vector.shape_cast %135 : vector<1x4x256xf32> to vector<4x256xf32>
      %137 = vector.shape_cast %134 : vector<4x256xf32> to vector<1x4x256xf32>
      tpu.vector_store %arg12[%c1_128, %c0_129, %c0_130], %137 {strides = array<i32>} : memref<16x4x256xf32, #tpu.memory_space<vmem>>, vector<1x4x256xf32>,
      %138 = vector.extract_strided_slice %73 {offsets = [2, 0], sizes = [1, 256], strides = [1, 1]} : vector<16x256xf32> to vector<1x256xf32>
      %139 = vector.extract_strided_slice %89 {offsets = [2, 0], sizes = [1, 256], strides = [1, 1]} : vector<16x256xf32> to vector<1x256xf32>
      %140 = vector.extract_strided_slice %105 {offsets = [2, 0], sizes = [1, 256], strides = [1, 1]} : vector<16x256xf32> to vector<1x256xf32>
      %141 = vector.extract_strided_slice %121 {offsets = [2, 0], sizes = [1, 256], strides = [1, 1]} : vector<16x256xf32> to vector<1x256xf32>
      %142 = tpu.concatenate %138, %139, %140, %141 in 0 : vector<1x256xf32>, vector<1x256xf32>, vector<1x256xf32>, vector<1x256xf32> -> vector<4x256xf32>
      %c2_131 = arith.constant 2 : index
      %c0_132 = arith.constant 0 : index
      %c0_133 = arith.constant 0 : index
      %143 = vector.load %arg12[%c2_131, %c0_132, %c0_133] : memref<16x4x256xf32, #tpu.memory_space<vmem>>, vector<1x4x256xf32>
      %144 = vector.shape_cast %143 : vector<1x4x256xf32> to vector<4x256xf32>
      %145 = vector.shape_cast %142 : vector<4x256xf32> to vector<1x4x256xf32>
      tpu.vector_store %arg12[%c2_131, %c0_132, %c0_133], %145 {strides = array<i32>} : memref<16x4x256xf32, #tpu.memory_space<vmem>>, vector<1x4x256xf32>,
      %146 = vector.extract_strided_slice %73 {offsets = [3, 0], sizes = [1, 256], strides = [1, 1]} : vector<16x256xf32> to vector<1x256xf32>
      %147 = vector.extract_strided_slice %89 {offsets = [3, 0], sizes = [1, 256], strides = [1, 1]} : vector<16x256xf32> to vector<1x256xf32>
      %148 = vector.extract_strided_slice %105 {offsets = [3, 0], sizes = [1, 256], strides = [1, 1]} : vector<16x256xf32> to vector<1x256xf32>
      %149 = vector.extract_strided_slice %121 {offsets = [3, 0], sizes = [1, 256], strides = [1, 1]} : vector<16x256xf32> to vector<1x256xf32>
      %150 = tpu.concatenate %146, %147, %148, %149 in 0 : vector<1x256xf32>, vector<1x256xf32>, vector<1x256xf32>, vector<1x256xf32> -> vector<4x256xf32>
      %c3_134 = arith.constant 3 : index
      %c0_135 = arith.constant 0 : index
      %c0_136 = arith.constant 0 : index
      %151 = vector.load %arg12[%c3_134, %c0_135, %c0_136] : memref<16x4x256xf32, #tpu.memory_space<vmem>>, vector<1x4x256xf32>
      %152 = vector.shape_cast %151 : vector<1x4x256xf32> to vector<4x256xf32>
      %153 = vector.shape_cast %150 : vector<4x256xf32> to vector<1x4x256xf32>
      tpu.vector_store %arg12[%c3_134, %c0_135, %c0_136], %153 {strides = array<i32>} : memref<16x4x256xf32, #tpu.memory_space<vmem>>, vector<1x4x256xf32>,
      %154 = vector.extract_strided_slice %73 {offsets = [4, 0], sizes = [1, 256], strides = [1, 1]} : vector<16x256xf32> to vector<1x256xf32>
      %155 = vector.extract_strided_slice %89 {offsets = [4, 0], sizes = [1, 256], strides = [1, 1]} : vector<16x256xf32> to vector<1x256xf32>
      %156 = vector.extract_strided_slice %105 {offsets = [4, 0], sizes = [1, 256], strides = [1, 1]} : vector<16x256xf32> to vector<1x256xf32>
      %157 = vector.extract_strided_slice %121 {offsets = [4, 0], sizes = [1, 256], strides = [1, 1]} : vector<16x256xf32> to vector<1x256xf32>
      %158 = tpu.concatenate %154, %155, %156, %157 in 0 : vector<1x256xf32>, vector<1x256xf32>, vector<1x256xf32>, vector<1x256xf32> -> vector<4x256xf32>
      %c4 = arith.constant 4 : index
      %c0_137 = arith.constant 0 : index
      %c0_138 = arith.constant 0 : index
      %159 = vector.load %arg12[%c4, %c0_137, %c0_138] : memref<16x4x256xf32, #tpu.memory_space<vmem>>, vector<1x4x256xf32>
      %160 = vector.shape_cast %159 : vector<1x4x256xf32> to vector<4x256xf32>
      %161 = vector.shape_cast %158 : vector<4x256xf32> to vector<1x4x256xf32>
      tpu.vector_store %arg12[%c4, %c0_137, %c0_138], %161 {strides = array<i32>} : memref<16x4x256xf32, #tpu.memory_space<vmem>>, vector<1x4x256xf32>,
      %162 = vector.extract_strided_slice %73 {offsets = [5, 0], sizes = [1, 256], strides = [1, 1]} : vector<16x256xf32> to vector<1x256xf32>
      %163 = vector.extract_strided_slice %89 {offsets = [5, 0], sizes = [1, 256], strides = [1, 1]} : vector<16x256xf32> to vector<1x256xf32>
      %164 = vector.extract_strided_slice %105 {offsets = [5, 0], sizes = [1, 256], strides = [1, 1]} : vector<16x256xf32> to vector<1x256xf32>
      %165 = vector.extract_strided_slice %121 {offsets = [5, 0], sizes = [1, 256], strides = [1, 1]} : vector<16x256xf32> to vector<1x256xf32>
      %166 = tpu.concatenate %162, %163, %164, %165 in 0 : vector<1x256xf32>, vector<1x256xf32>, vector<1x256xf32>, vector<1x256xf32> -> vector<4x256xf32>
      %c5 = arith.constant 5 : index
      %c0_139 = arith.constant 0 : index
      %c0_140 = arith.constant 0 : index
      %167 = vector.load %arg12[%c5, %c0_139, %c0_140] : memref<16x4x256xf32, #tpu.memory_space<vmem>>, vector<1x4x256xf32>
      %168 = vector.shape_cast %167 : vector<1x4x256xf32> to vector<4x256xf32>
      %169 = vector.shape_cast %166 : vector<4x256xf32> to vector<1x4x256xf32>
      tpu.vector_store %arg12[%c5, %c0_139, %c0_140], %169 {strides = array<i32>} : memref<16x4x256xf32, #tpu.memory_space<vmem>>, vector<1x4x256xf32>,
      %170 = vector.extract_strided_slice %73 {offsets = [6, 0], sizes = [1, 256], strides = [1, 1]} : vector<16x256xf32> to vector<1x256xf32>
      %171 = vector.extract_strided_slice %89 {offsets = [6, 0], sizes = [1, 256], strides = [1, 1]} : vector<16x256xf32> to vector<1x256xf32>
      %172 = vector.extract_strided_slice %105 {offsets = [6, 0], sizes = [1, 256], strides = [1, 1]} : vector<16x256xf32> to vector<1x256xf32>
      %173 = vector.extract_strided_slice %121 {offsets = [6, 0], sizes = [1, 256], strides = [1, 1]} : vector<16x256xf32> to vector<1x256xf32>
      %174 = tpu.concatenate %170, %171, %172, %173 in 0 : vector<1x256xf32>, vector<1x256xf32>, vector<1x256xf32>, vector<1x256xf32> -> vector<4x256xf32>
      %c6_141 = arith.constant 6 : index
      %c0_142 = arith.constant 0 : index
      %c0_143 = arith.constant 0 : index
      %175 = vector.load %arg12[%c6_141, %c0_142, %c0_143] : memref<16x4x256xf32, #tpu.memory_space<vmem>>, vector<1x4x256xf32>
      %176 = vector.shape_cast %175 : vector<1x4x256xf32> to vector<4x256xf32>
      %177 = vector.shape_cast %174 : vector<4x256xf32> to vector<1x4x256xf32>
      tpu.vector_store %arg12[%c6_141, %c0_142, %c0_143], %177 {strides = array<i32>} : memref<16x4x256xf32, #tpu.memory_space<vmem>>, vector<1x4x256xf32>,
      %178 = vector.extract_strided_slice %73 {offsets = [7, 0], sizes = [1, 256], strides = [1, 1]} : vector<16x256xf32> to vector<1x256xf32>
      %179 = vector.extract_strided_slice %89 {offsets = [7, 0], sizes = [1, 256], strides = [1, 1]} : vector<16x256xf32> to vector<1x256xf32>
      %180 = vector.extract_strided_slice %105 {offsets = [7, 0], sizes = [1, 256], strides = [1, 1]} : vector<16x256xf32> to vector<1x256xf32>
      %181 = vector.extract_strided_slice %121 {offsets = [7, 0], sizes = [1, 256], strides = [1, 1]} : vector<16x256xf32> to vector<1x256xf32>
      %182 = tpu.concatenate %178, %179, %180, %181 in 0 : vector<1x256xf32>, vector<1x256xf32>, vector<1x256xf32>, vector<1x256xf32> -> vector<4x256xf32>
      %c7 = arith.constant 7 : index
      %c0_144 = arith.constant 0 : index
      %c0_145 = arith.constant 0 : index
      %183 = vector.load %arg12[%c7, %c0_144, %c0_145] : memref<16x4x256xf32, #tpu.memory_space<vmem>>, vector<1x4x256xf32>
      %184 = vector.shape_cast %183 : vector<1x4x256xf32> to vector<4x256xf32>
      %185 = vector.shape_cast %182 : vector<4x256xf32> to vector<1x4x256xf32>
      tpu.vector_store %arg12[%c7, %c0_144, %c0_145], %185 {strides = array<i32>} : memref<16x4x256xf32, #tpu.memory_space<vmem>>, vector<1x4x256xf32>,
      %186 = vector.extract_strided_slice %73 {offsets = [8, 0], sizes = [1, 256], strides = [1, 1]} : vector<16x256xf32> to vector<1x256xf32>
      %187 = vector.extract_strided_slice %89 {offsets = [8, 0], sizes = [1, 256], strides = [1, 1]} : vector<16x256xf32> to vector<1x256xf32>
      %188 = vector.extract_strided_slice %105 {offsets = [8, 0], sizes = [1, 256], strides = [1, 1]} : vector<16x256xf32> to vector<1x256xf32>
      %189 = vector.extract_strided_slice %121 {offsets = [8, 0], sizes = [1, 256], strides = [1, 1]} : vector<16x256xf32> to vector<1x256xf32>
      %190 = tpu.concatenate %186, %187, %188, %189 in 0 : vector<1x256xf32>, vector<1x256xf32>, vector<1x256xf32>, vector<1x256xf32> -> vector<4x256xf32>
      %c8 = arith.constant 8 : index
      %c0_146 = arith.constant 0 : index
      %c0_147 = arith.constant 0 : index
      %191 = vector.load %arg12[%c8, %c0_146, %c0_147] : memref<16x4x256xf32, #tpu.memory_space<vmem>>, vector<1x4x256xf32>
      %192 = vector.shape_cast %191 : vector<1x4x256xf32> to vector<4x256xf32>
      %193 = vector.shape_cast %190 : vector<4x256xf32> to vector<1x4x256xf32>
      tpu.vector_store %arg12[%c8, %c0_146, %c0_147], %193 {strides = array<i32>} : memref<16x4x256xf32, #tpu.memory_space<vmem>>, vector<1x4x256xf32>,
      %194 = vector.extract_strided_slice %73 {offsets = [9, 0], sizes = [1, 256], strides = [1, 1]} : vector<16x256xf32> to vector<1x256xf32>
      %195 = vector.extract_strided_slice %89 {offsets = [9, 0], sizes = [1, 256], strides = [1, 1]} : vector<16x256xf32> to vector<1x256xf32>
      %196 = vector.extract_strided_slice %105 {offsets = [9, 0], sizes = [1, 256], strides = [1, 1]} : vector<16x256xf32> to vector<1x256xf32>
      %197 = vector.extract_strided_slice %121 {offsets = [9, 0], sizes = [1, 256], strides = [1, 1]} : vector<16x256xf32> to vector<1x256xf32>
      %198 = tpu.concatenate %194, %195, %196, %197 in 0 : vector<1x256xf32>, vector<1x256xf32>, vector<1x256xf32>, vector<1x256xf32> -> vector<4x256xf32>
      %c9_148 = arith.constant 9 : index
      %c0_149 = arith.constant 0 : index
      %c0_150 = arith.constant 0 : index
      %199 = vector.load %arg12[%c9_148, %c0_149, %c0_150] : memref<16x4x256xf32, #tpu.memory_space<vmem>>, vector<1x4x256xf32>
      %200 = vector.shape_cast %199 : vector<1x4x256xf32> to vector<4x256xf32>
      %201 = vector.shape_cast %198 : vector<4x256xf32> to vector<1x4x256xf32>
      tpu.vector_store %arg12[%c9_148, %c0_149, %c0_150], %201 {strides = array<i32>} : memref<16x4x256xf32, #tpu.memory_space<vmem>>, vector<1x4x256xf32>,
      %202 = vector.extract_strided_slice %73 {offsets = [10, 0], sizes = [1, 256], strides = [1, 1]} : vector<16x256xf32> to vector<1x256xf32>
      %203 = vector.extract_strided_slice %89 {offsets = [10, 0], sizes = [1, 256], strides = [1, 1]} : vector<16x256xf32> to vector<1x256xf32>
      %204 = vector.extract_strided_slice %105 {offsets = [10, 0], sizes = [1, 256], strides = [1, 1]} : vector<16x256xf32> to vector<1x256xf32>
      %205 = vector.extract_strided_slice %121 {offsets = [10, 0], sizes = [1, 256], strides = [1, 1]} : vector<16x256xf32> to vector<1x256xf32>
      %206 = tpu.concatenate %202, %203, %204, %205 in 0 : vector<1x256xf32>, vector<1x256xf32>, vector<1x256xf32>, vector<1x256xf32> -> vector<4x256xf32>
      %c10 = arith.constant 10 : index
      %c0_151 = arith.constant 0 : index
      %c0_152 = arith.constant 0 : index
      %207 = vector.load %arg12[%c10, %c0_151, %c0_152] : memref<16x4x256xf32, #tpu.memory_space<vmem>>, vector<1x4x256xf32>
      %208 = vector.shape_cast %207 : vector<1x4x256xf32> to vector<4x256xf32>
      %209 = vector.shape_cast %206 : vector<4x256xf32> to vector<1x4x256xf32>
      tpu.vector_store %arg12[%c10, %c0_151, %c0_152], %209 {strides = array<i32>} : memref<16x4x256xf32, #tpu.memory_space<vmem>>, vector<1x4x256xf32>,
      %210 = vector.extract_strided_slice %73 {offsets = [11, 0], sizes = [1, 256], strides = [1, 1]} : vector<16x256xf32> to vector<1x256xf32>
      %211 = vector.extract_strided_slice %89 {offsets = [11, 0], sizes = [1, 256], strides = [1, 1]} : vector<16x256xf32> to vector<1x256xf32>
      %212 = vector.extract_strided_slice %105 {offsets = [11, 0], sizes = [1, 256], strides = [1, 1]} : vector<16x256xf32> to vector<1x256xf32>
      %213 = vector.extract_strided_slice %121 {offsets = [11, 0], sizes = [1, 256], strides = [1, 1]} : vector<16x256xf32> to vector<1x256xf32>
      %214 = tpu.concatenate %210, %211, %212, %213 in 0 : vector<1x256xf32>, vector<1x256xf32>, vector<1x256xf32>, vector<1x256xf32> -> vector<4x256xf32>
      %c11 = arith.constant 11 : index
      %c0_153 = arith.constant 0 : index
      %c0_154 = arith.constant 0 : index
      %215 = vector.load %arg12[%c11, %c0_153, %c0_154] : memref<16x4x256xf32, #tpu.memory_space<vmem>>, vector<1x4x256xf32>
      %216 = vector.shape_cast %215 : vector<1x4x256xf32> to vector<4x256xf32>
      %217 = vector.shape_cast %214 : vector<4x256xf32> to vector<1x4x256xf32>
      tpu.vector_store %arg12[%c11, %c0_153, %c0_154], %217 {strides = array<i32>} : memref<16x4x256xf32, #tpu.memory_space<vmem>>, vector<1x4x256xf32>,
      %218 = vector.extract_strided_slice %73 {offsets = [12, 0], sizes = [1, 256], strides = [1, 1]} : vector<16x256xf32> to vector<1x256xf32>
      %219 = vector.extract_strided_slice %89 {offsets = [12, 0], sizes = [1, 256], strides = [1, 1]} : vector<16x256xf32> to vector<1x256xf32>
      %220 = vector.extract_strided_slice %105 {offsets = [12, 0], sizes = [1, 256], strides = [1, 1]} : vector<16x256xf32> to vector<1x256xf32>
      %221 = vector.extract_strided_slice %121 {offsets = [12, 0], sizes = [1, 256], strides = [1, 1]} : vector<16x256xf32> to vector<1x256xf32>
      %222 = tpu.concatenate %218, %219, %220, %221 in 0 : vector<1x256xf32>, vector<1x256xf32>, vector<1x256xf32>, vector<1x256xf32> -> vector<4x256xf32>
      %c12 = arith.constant 12 : index
      %c0_155 = arith.constant 0 : index
      %c0_156 = arith.constant 0 : index
      %223 = vector.load %arg12[%c12, %c0_155, %c0_156] : memref<16x4x256xf32, #tpu.memory_space<vmem>>, vector<1x4x256xf32>
      %224 = vector.shape_cast %223 : vector<1x4x256xf32> to vector<4x256xf32>
      %225 = vector.shape_cast %222 : vector<4x256xf32> to vector<1x4x256xf32>
      tpu.vector_store %arg12[%c12, %c0_155, %c0_156], %225 {strides = array<i32>} : memref<16x4x256xf32, #tpu.memory_space<vmem>>, vector<1x4x256xf32>,
      %226 = vector.extract_strided_slice %73 {offsets = [13, 0], sizes = [1, 256], strides = [1, 1]} : vector<16x256xf32> to vector<1x256xf32>
      %227 = vector.extract_strided_slice %89 {offsets = [13, 0], sizes = [1, 256], strides = [1, 1]} : vector<16x256xf32> to vector<1x256xf32>
      %228 = vector.extract_strided_slice %105 {offsets = [13, 0], sizes = [1, 256], strides = [1, 1]} : vector<16x256xf32> to vector<1x256xf32>
      %229 = vector.extract_strided_slice %121 {offsets = [13, 0], sizes = [1, 256], strides = [1, 1]} : vector<16x256xf32> to vector<1x256xf32>
      %230 = tpu.concatenate %226, %227, %228, %229 in 0 : vector<1x256xf32>, vector<1x256xf32>, vector<1x256xf32>, vector<1x256xf32> -> vector<4x256xf32>
      %c13 = arith.constant 13 : index
      %c0_157 = arith.constant 0 : index
      %c0_158 = arith.constant 0 : index
      %231 = vector.load %arg12[%c13, %c0_157, %c0_158] : memref<16x4x256xf32, #tpu.memory_space<vmem>>, vector<1x4x256xf32>
      %232 = vector.shape_cast %231 : vector<1x4x256xf32> to vector<4x256xf32>
      %233 = vector.shape_cast %230 : vector<4x256xf32> to vector<1x4x256xf32>
      tpu.vector_store %arg12[%c13, %c0_157, %c0_158], %233 {strides = array<i32>} : memref<16x4x256xf32, #tpu.memory_space<vmem>>, vector<1x4x256xf32>,
      %234 = vector.extract_strided_slice %73 {offsets = [14, 0], sizes = [1, 256], strides = [1, 1]} : vector<16x256xf32> to vector<1x256xf32>
      %235 = vector.extract_strided_slice %89 {offsets = [14, 0], sizes = [1, 256], strides = [1, 1]} : vector<16x256xf32> to vector<1x256xf32>
      %236 = vector.extract_strided_slice %105 {offsets = [14, 0], sizes = [1, 256], strides = [1, 1]} : vector<16x256xf32> to vector<1x256xf32>
      %237 = vector.extract_strided_slice %121 {offsets = [14, 0], sizes = [1, 256], strides = [1, 1]} : vector<16x256xf32> to vector<1x256xf32>
      %238 = tpu.concatenate %234, %235, %236, %237 in 0 : vector<1x256xf32>, vector<1x256xf32>, vector<1x256xf32>, vector<1x256xf32> -> vector<4x256xf32>
      %c14 = arith.constant 14 : index
      %c0_159 = arith.constant 0 : index
      %c0_160 = arith.constant 0 : index
      %239 = vector.load %arg12[%c14, %c0_159, %c0_160] : memref<16x4x256xf32, #tpu.memory_space<vmem>>, vector<1x4x256xf32>
      %240 = vector.shape_cast %239 : vector<1x4x256xf32> to vector<4x256xf32>
      %241 = vector.shape_cast %238 : vector<4x256xf32> to vector<1x4x256xf32>
      tpu.vector_store %arg12[%c14, %c0_159, %c0_160], %241 {strides = array<i32>} : memref<16x4x256xf32, #tpu.memory_space<vmem>>, vector<1x4x256xf32>,
      %242 = vector.extract_strided_slice %73 {offsets = [15, 0], sizes = [1, 256], strides = [1, 1]} : vector<16x256xf32> to vector<1x256xf32>
      %243 = vector.extract_strided_slice %89 {offsets = [15, 0], sizes = [1, 256], strides = [1, 1]} : vector<16x256xf32> to vector<1x256xf32>
      %244 = vector.extract_strided_slice %105 {offsets = [15, 0], sizes = [1, 256], strides = [1, 1]} : vector<16x256xf32> to vector<1x256xf32>
      %245 = vector.extract_strided_slice %121 {offsets = [15, 0], sizes = [1, 256], strides = [1, 1]} : vector<16x256xf32> to vector<1x256xf32>
      %246 = tpu.concatenate %242, %243, %244, %245 in 0 : vector<1x256xf32>, vector<1x256xf32>, vector<1x256xf32>, vector<1x256xf32> -> vector<4x256xf32>
      %c15 = arith.constant 15 : index
      %c0_161 = arith.constant 0 : index
      %c0_162 = arith.constant 0 : index
      %247 = vector.load %arg12[%c15, %c0_161, %c0_162] : memref<16x4x256xf32, #tpu.memory_space<vmem>>, vector<1x4x256xf32>
      %248 = vector.shape_cast %247 : vector<1x4x256xf32> to vector<4x256xf32>
      %249 = vector.shape_cast %246 : vector<4x256xf32> to vector<1x4x256xf32>
      tpu.vector_store %arg12[%c15, %c0_161, %c0_162], %249 {strides = array<i32>} : memref<16x4x256xf32, #tpu.memory_space<vmem>>, vector<1x4x256xf32>,
    } else {
    }
    %c4_i32 = arith.constant 4 : i32
    %3 = arith.muli %arg0, %c4_i32 : i32
    %c0_i32_1 = arith.constant 0 : i32
    %4 = arith.addi %3, %c0_i32_1 : i32
    %5 = arith.index_cast %4 : i32 to index
    %c0 = arith.constant 0 : index
    %c0_2 = arith.constant 0 : index
    %6 = vector.load %arg12[%5, %c0, %c0_2] : memref<16x4x256xf32, #tpu.memory_space<vmem>>, vector<1x4x256xf32>
    %7 = vector.shape_cast %6 : vector<1x4x256xf32> to vector<4x256xf32>
    %c0_3 = arith.constant 0 : index
    %c0_4 = arith.constant 0 : index
    %8 = vector.load %arg13[%c0_3, %c0_4] : memref<4x256xf32, #tpu.memory_space<vmem>>, vector<4x256xf32>
    %9 = arith.truncf %7 : vector<4x256xf32> to vector<4x256xbf16>
    %c0_5 = arith.constant 0 : index
    %c0_6 = arith.constant 0 : index
    %c0_7 = arith.constant 0 : index
    %10 = vector.load %arg4[%c0_5, %c0_6, %c0_7] : memref<4x256x256xbf16, #tpu.memory_space<vmem>>, vector<1x256x256xbf16>
    %11 = vector.shape_cast %10 : vector<1x256x256xbf16> to vector<256x256xbf16>
    %cst = arith.constant dense<0.000000e+00> : vector<4x256xf32>
    %12 = tpu.matmul %9, %11, %cst {dimension_numbers = #tpu.dot_dimension_numbers<[1], [0], [0], [1], [0, 0, 1, 1], [], []>} : vector<4x256xbf16>, vector<256x256xbf16>, vector<4x256xf32> -> vector<4x256xf32>
    %13 = arith.addf %8, %12 : vector<4x256xf32>
    %c0_8 = arith.constant 0 : index
    %c0_9 = arith.constant 0 : index
    %14 = vector.load %arg13[%c0_8, %c0_9] : memref<4x256xf32, #tpu.memory_space<vmem>>, vector<4x256xf32>
    tpu.vector_store %arg13[%c0_8, %c0_9], %13 {strides = array<i32>} : memref<4x256xf32, #tpu.memory_space<vmem>>, vector<4x256xf32>,
    %c4_i32_10 = arith.constant 4 : i32
    %15 = arith.muli %arg0, %c4_i32_10 : i32
    %c1_i32 = arith.constant 1 : i32
    %16 = arith.addi %15, %c1_i32 : i32
    %17 = arith.index_cast %16 : i32 to index
    %c0_11 = arith.constant 0 : index
    %c0_12 = arith.constant 0 : index
    %18 = vector.load %arg12[%17, %c0_11, %c0_12] : memref<16x4x256xf32, #tpu.memory_space<vmem>>, vector<1x4x256xf32>
    %19 = vector.shape_cast %18 : vector<1x4x256xf32> to vector<4x256xf32>
    %c0_13 = arith.constant 0 : index
    %c0_14 = arith.constant 0 : index
    %20 = vector.load %arg13[%c0_13, %c0_14] : memref<4x256xf32, #tpu.memory_space<vmem>>, vector<4x256xf32>
    %21 = arith.truncf %19 : vector<4x256xf32> to vector<4x256xbf16>
    %c1 = arith.constant 1 : index
    %c0_15 = arith.constant 0 : index
    %c0_16 = arith.constant 0 : index
    %22 = vector.load %arg4[%c1, %c0_15, %c0_16] : memref<4x256x256xbf16, #tpu.memory_space<vmem>>, vector<1x256x256xbf16>
    %23 = vector.shape_cast %22 : vector<1x256x256xbf16> to vector<256x256xbf16>
    %cst_17 = arith.constant dense<0.000000e+00> : vector<4x256xf32>
    %24 = tpu.matmul %21, %23, %cst_17 {dimension_numbers = #tpu.dot_dimension_numbers<[1], [0], [0], [1], [0, 0, 1, 1], [], []>} : vector<4x256xbf16>, vector<256x256xbf16>, vector<4x256xf32> -> vector<4x256xf32>
    %25 = arith.addf %20, %24 : vector<4x256xf32>
    %c0_18 = arith.constant 0 : index
    %c0_19 = arith.constant 0 : index
    %26 = vector.load %arg13[%c0_18, %c0_19] : memref<4x256xf32, #tpu.memory_space<vmem>>, vector<4x256xf32>
    tpu.vector_store %arg13[%c0_18, %c0_19], %25 {strides = array<i32>} : memref<4x256xf32, #tpu.memory_space<vmem>>, vector<4x256xf32>,
    %c4_i32_20 = arith.constant 4 : i32
    %27 = arith.muli %arg0, %c4_i32_20 : i32
    %c2_i32 = arith.constant 2 : i32
    %28 = arith.addi %27, %c2_i32 : i32
    %29 = arith.index_cast %28 : i32 to index
    %c0_21 = arith.constant 0 : index
    %c0_22 = arith.constant 0 : index
    %30 = vector.load %arg12[%29, %c0_21, %c0_22] : memref<16x4x256xf32, #tpu.memory_space<vmem>>, vector<1x4x256xf32>
    %31 = vector.shape_cast %30 : vector<1x4x256xf32> to vector<4x256xf32>
    %c0_23 = arith.constant 0 : index
    %c0_24 = arith.constant 0 : index
    %32 = vector.load %arg13[%c0_23, %c0_24] : memref<4x256xf32, #tpu.memory_space<vmem>>, vector<4x256xf32>
    %33 = arith.truncf %31 : vector<4x256xf32> to vector<4x256xbf16>
    %c2 = arith.constant 2 : index
    %c0_25 = arith.constant 0 : index
    %c0_26 = arith.constant 0 : index
    %34 = vector.load %arg4[%c2, %c0_25, %c0_26] : memref<4x256x256xbf16, #tpu.memory_space<vmem>>, vector<1x256x256xbf16>
    %35 = vector.shape_cast %34 : vector<1x256x256xbf16> to vector<256x256xbf16>
    %cst_27 = arith.constant dense<0.000000e+00> : vector<4x256xf32>
    %36 = tpu.matmul %33, %35, %cst_27 {dimension_numbers = #tpu.dot_dimension_numbers<[1], [0], [0], [1], [0, 0, 1, 1], [], []>} : vector<4x256xbf16>, vector<256x256xbf16>, vector<4x256xf32> -> vector<4x256xf32>
    %37 = arith.addf %32, %36 : vector<4x256xf32>
    %c0_28 = arith.constant 0 : index
    %c0_29 = arith.constant 0 : index
    %38 = vector.load %arg13[%c0_28, %c0_29] : memref<4x256xf32, #tpu.memory_space<vmem>>, vector<4x256xf32>
    tpu.vector_store %arg13[%c0_28, %c0_29], %37 {strides = array<i32>} : memref<4x256xf32, #tpu.memory_space<vmem>>, vector<4x256xf32>,
    %c4_i32_30 = arith.constant 4 : i32
    %39 = arith.muli %arg0, %c4_i32_30 : i32
    %c3_i32 = arith.constant 3 : i32
    %40 = arith.addi %39, %c3_i32 : i32
    %41 = arith.index_cast %40 : i32 to index
    %c0_31 = arith.constant 0 : index
    %c0_32 = arith.constant 0 : index
    %42 = vector.load %arg12[%41, %c0_31, %c0_32] : memref<16x4x256xf32, #tpu.memory_space<vmem>>, vector<1x4x256xf32>
    %43 = vector.shape_cast %42 : vector<1x4x256xf32> to vector<4x256xf32>
    %c0_33 = arith.constant 0 : index
    %c0_34 = arith.constant 0 : index
    %44 = vector.load %arg13[%c0_33, %c0_34] : memref<4x256xf32, #tpu.memory_space<vmem>>, vector<4x256xf32>
    %45 = arith.truncf %43 : vector<4x256xf32> to vector<4x256xbf16>
    %c3 = arith.constant 3 : index
    %c0_35 = arith.constant 0 : index
    %c0_36 = arith.constant 0 : index
    %46 = vector.load %arg4[%c3, %c0_35, %c0_36] : memref<4x256x256xbf16, #tpu.memory_space<vmem>>, vector<1x256x256xbf16>
    %47 = vector.shape_cast %46 : vector<1x256x256xbf16> to vector<256x256xbf16>
    %cst_37 = arith.constant dense<0.000000e+00> : vector<4x256xf32>
    %48 = tpu.matmul %45, %47, %cst_37 {dimension_numbers = #tpu.dot_dimension_numbers<[1], [0], [0], [1], [0, 0, 1, 1], [], []>} : vector<4x256xbf16>, vector<256x256xbf16>, vector<4x256xf32> -> vector<4x256xf32>
    %49 = arith.addf %44, %48 : vector<4x256xf32>
    %c0_38 = arith.constant 0 : index
    %c0_39 = arith.constant 0 : index
    %50 = vector.load %arg13[%c0_38, %c0_39] : memref<4x256xf32, #tpu.memory_space<vmem>>, vector<4x256xf32>
    tpu.vector_store %arg13[%c0_38, %c0_39], %49 {strides = array<i32>} : memref<4x256xf32, #tpu.memory_space<vmem>>, vector<4x256xf32>,
    %c3_i32_40 = arith.constant 3 : i32
    %51 = arith.cmpi eq, %arg0, %c3_i32_40 : i32
    %52 = arith.extui %51 : i1 to i32
    %c0_i32_41 = arith.constant 0 : i32
    %53 = arith.cmpi ne, %52, %c0_i32_41 : i32
    scf.if %53 {
      %c0_42 = arith.constant 0 : index
      %c0_43 = arith.constant 0 : index
      %54 = vector.load %arg13[%c0_42, %c0_43] : memref<4x256xf32, #tpu.memory_space<vmem>>, vector<4x256xf32>
      %c0_44 = arith.constant 0 : index
      %c0_45 = arith.constant 0 : index
      %55 = vector.load %arg5[%c0_44, %c0_45] : memref<1x256xf32, #tpu.memory_space<vmem>>, vector<1x256xf32>
      %56 = vector.broadcast %55 : vector<1x256xf32> to vector<4x256xf32>
      %57 = arith.addf %54, %56 : vector<4x256xf32>
      %cst_46 = arith.constant 0.000000e+00 : f32
      %58 = vector.broadcast %cst_46 : f32 to vector<4x256xf32>
      %59 = arith.maximumf %57, %58 : vector<4x256xf32>
      %cst_47 = arith.constant dense<0xFF800000> : vector<256xf32>
      %60 = vector.multi_reduction <maximumf>, %59, %cst_47 [0] : vector<4x256xf32> to vector<256xf32>
      %61 = vector.shape_cast %60 : vector<256xf32> to vector<1x256xf32>
      %62 = arith.truncf %61 : vector<1x256xf32> to vector<1x256xbf16>
      %c0_48 = arith.constant 0 : index
      %c0_49 = arith.constant 0 : index
      %63 = vector.load %arg6[%c0_48, %c0_49] : memref<256x256xbf16, #tpu.memory_space<vmem>>, vector<256x256xbf16>
      %cst_50 = arith.constant dense<0.000000e+00> : vector<1x256xf32>
      %64 = tpu.matmul %62, %63, %cst_50 {dimension_numbers = #tpu.dot_dimension_numbers<[1], [0], [0], [1], [0, 0, 1, 1], [], []>} : vector<1x256xbf16>, vector<256x256xbf16>, vector<1x256xf32> -> vector<1x256xf32>
      %c0_51 = arith.constant 0 : index
      %c0_52 = arith.constant 0 : index
      %65 = vector.load %arg7[%c0_51, %c0_52] : memref<1x256xf32, #tpu.memory_space<vmem>>, vector<1x256xf32>
      %66 = arith.addf %64, %65 : vector<1x256xf32>
      %cst_53 = arith.constant 0.000000e+00 : f32
      %67 = vector.broadcast %cst_53 : f32 to vector<1x256xf32>
      %68 = arith.maximumf %66, %67 : vector<1x256xf32>
      %c0_54 = arith.constant 0 : index
      %c0_55 = arith.constant 0 : index
      %69 = vector.load %arg10[%c0_54, %c0_55] : memref<1x256xf32, #tpu.memory_space<vmem>>, vector<1x256xf32>
      tpu.vector_store %arg10[%c0_54, %c0_55], %68 {strides = array<i32>} : memref<1x256xf32, #tpu.memory_space<vmem>>, vector<1x256xf32>,
      %c0_56 = arith.constant 0 : index
      %c0_57 = arith.constant 0 : index
      %70 = vector.load %arg8[%c0_56, %c0_57] : memref<256x4xf32, #tpu.memory_space<vmem>>, vector<256x4xf32>
      %cst_58 = arith.constant dense<0.000000e+00> : vector<1x4xf32>
      %71 = tpu.matmul %68, %70, %cst_58 {dimension_numbers = #tpu.dot_dimension_numbers<[1], [0], [0], [1], [0, 0, 1, 1], [], []>} : vector<1x256xf32>, vector<256x4xf32>, vector<1x4xf32> -> vector<1x4xf32>
      %c0_59 = arith.constant 0 : index
      %c0_60 = arith.constant 0 : index
      %72 = vector.load %arg9[%c0_59, %c0_60] : memref<1x4xf32, #tpu.memory_space<vmem>>, vector<1x4xf32>
      %73 = arith.addf %71, %72 : vector<1x4xf32>
      %cst_61 = arith.constant dense<0xFF800000> : vector<1xf32>
      %74 = vector.multi_reduction <maximumf>, %73, %cst_61 [1] : vector<1x4xf32> to vector<1xf32>
      %75 = vector.shape_cast %74 : vector<1xf32> to vector<1x1xf32>
      %76 = vector.broadcast %75 : vector<1x1xf32> to vector<1x4xf32>
      %77 = arith.subf %73, %76 : vector<1x4xf32>
      %78 = math.exp %77 : vector<1x4xf32>
      %cst_62 = arith.constant dense<0.000000e+00> : vector<1xf32>
      %79 = vector.multi_reduction <add>, %78, %cst_62 [1] : vector<1x4xf32> to vector<1xf32>
      %80 = vector.shape_cast %79 : vector<1xf32> to vector<1x1xf32>
      %81 = vector.broadcast %80 : vector<1x1xf32> to vector<1x4xf32>
      %82 = arith.divf %78, %81 : vector<1x4xf32>
      %c0_63 = arith.constant 0 : index
      %c0_64 = arith.constant 0 : index
      %83 = vector.load %arg11[%c0_63, %c0_64] : memref<1x4xf32, #tpu.memory_space<vmem>>, vector<1x4xf32>
      tpu.vector_store %arg11[%c0_63, %c0_64], %82 {strides = array<i32>} : memref<1x4xf32, #tpu.memory_space<vmem>>, vector<1x4xf32>,
    } else {
    }
    return
  }
  func.func @transform_0(%arg0: i32) -> (i32, i32) {
    %c0_i32 = arith.constant 0 : i32
    %c0_i32_0 = arith.constant 0 : i32
    %c0_i32_1 = arith.constant 0 : i32
    return %c0_i32, %c0_i32_0 : i32, i32
  }
  func.func @transform_1(%arg0: i32) -> (i32, i32) {
    %c0_i32 = arith.constant 0 : i32
    %c0_i32_0 = arith.constant 0 : i32
    %c0_i32_1 = arith.constant 0 : i32
    return %c0_i32, %c0_i32_0 : i32, i32
  }
  func.func @transform_2(%arg0: i32) -> (i32, i32) {
    %c0_i32 = arith.constant 0 : i32
    %c0_i32_0 = arith.constant 0 : i32
    %c0_i32_1 = arith.constant 0 : i32
    return %c0_i32, %c0_i32_0 : i32, i32
  }
  func.func @transform_3(%arg0: i32) -> (i32, i32, i32) {
    %c0_i32 = arith.constant 0 : i32
    %c0_i32_0 = arith.constant 0 : i32
    %c0_i32_1 = arith.constant 0 : i32
    return %arg0, %c0_i32, %c0_i32_0 : i32, i32, i32
  }
  func.func @transform_4(%arg0: i32) -> (i32, i32) {
    %c0_i32 = arith.constant 0 : i32
    %c0_i32_0 = arith.constant 0 : i32
    %c0_i32_1 = arith.constant 0 : i32
    return %c0_i32, %c0_i32_0 : i32, i32
  }
  func.func @transform_5(%arg0: i32) -> (i32, i32) {
    %c0_i32 = arith.constant 0 : i32
    %c0_i32_0 = arith.constant 0 : i32
    %c0_i32_1 = arith.constant 0 : i32
    return %c0_i32, %c0_i32_0 : i32, i32
  }
  func.func @transform_6(%arg0: i32) -> (i32, i32) {
    %c0_i32 = arith.constant 0 : i32
    %c0_i32_0 = arith.constant 0 : i32
    %c0_i32_1 = arith.constant 0 : i32
    return %c0_i32, %c0_i32_0 : i32, i32
  }
  func.func @transform_7(%arg0: i32) -> (i32, i32) {
    %c0_i32 = arith.constant 0 : i32
    %c0_i32_0 = arith.constant 0 : i32
    %c0_i32_1 = arith.constant 0 : i32
    return %c0_i32, %c0_i32_0 : i32, i32
  }
  func.func @transform_8(%arg0: i32) -> (i32, i32) {
    %c0_i32 = arith.constant 0 : i32
    %c0_i32_0 = arith.constant 0 : i32
    %c0_i32_1 = arith.constant 0 : i32
    return %c0_i32, %c0_i32_0 : i32, i32
  }
  func.func @transform_9(%arg0: i32) -> (i32, i32) {
    %c0_i32 = arith.constant 0 : i32
    %c0_i32_0 = arith.constant 0 : i32
    %c0_i32_1 = arith.constant 0 : i32
    return %c0_i32, %c0_i32_0 : i32, i32
  }
  func.func @transform_10(%arg0: i32) -> (i32, i32) {
    %c0_i32 = arith.constant 0 : i32
    %c0_i32_0 = arith.constant 0 : i32
    %c0_i32_1 = arith.constant 0 : i32
    return %c0_i32, %c0_i32_0 : i32, i32
  }
}

</mosaic_0001>

<bundles_post_ra>
// kernel: squeeze.1
= control target key start
LH: loop header
LB: loop body
LE: loop exit
PB: predicated region body
PF: predicated region fallthrough
CT: control target
= control target key end

     0   :  { %vm50_vm0 = vcmask 1043458   ;;  %s90_s6 = smov 3  ;;  %vm55_vm1 = vcmask 1045508   ;;  %vm60_vm2 = vcmask 1047558   ;;  %s93_s9 = smov 12  ;;  %vm4_vm3 = vcmask 1047556   ;;  %s1180_s0 = inlined_call_operand.vmem [shape: f32[1,4,3,16,16], index: 0, kind: input, shape index: {}]   ;;  %s1181_s1 = inlined_call_operand.vmem [shape: f32[12,256], index: 1, kind: output, shape index: {}]  }
   0x1   :  { %v558_v0 = vld [vmem:[%s1180_s0 + $0x87] ss:$16 sm:%s90_s6]   ;;  %s98_s10 = smov 48  ;;  %s103_s15 = smov 192  ;;  %vm6_vm4 = vcmask 130048   ;;  %vm64_vm5 = vcmask 1048448  }
   0x2   :  { %v559_v1 = vld [vmem:[%s1180_s0 + $0x87] ss:$16 sm:%s93_s9]   ;;  %v560_v2 = vld [vmem:[%s1180_s0 + $0x4f] ss:$16 sm:%s98_s10]   ;;  %s45_s16 = smov 3  ;;  %s48_s21 = smov 12 }
   0x3   :  { %v96_v3 = vsel %vm50_vm0, %v559_v1, %v558_v0  ;;  %v561_v4 = vld [vmem:[%s1180_s0 + $0x4f] ss:$16 sm:%s103_s15]   ;;  %v549_v5 = vld [vmem:[%s1180_s0 + $0x7] ss:$16 sm:%s45_s16]   ;;  %s53_s22 = smov 48  ;;  %s58_s27 = smov 192 }
   0x4   :  { %v101_v6 = vsel %vm55_vm1, %v560_v2, %v96_v3  ;;  %v550_v7 = vld [vmem:[%s1180_s0 + $0x7] ss:$16 sm:%s48_s21]   ;;  %s115_s28 = smov 3  ;;  %s118_s4 = smov 12  ;;  %vm134_vm6 = vcmask 917248   ;;  %vm204_vm7 = vcmask 786048  }
   0x5   :  { %v551_v8 = vld [vmem:[%s1180_s0 + $0x7] ss:$16 sm:%s53_s22]   ;;  %v106_v9 = vsel %vm60_vm2, %v561_v4, %v101_v6  ;;  %v51_v10 = vsel %vm50_vm0, %v550_v7, %v549_v5  ;;  %v564_v12 = vld [vmem:[%s1180_s0 + $0x6] ss:$16 sm:%s115_s28]   ;;  %s123_s5 = smov 48  ;;  %s661_s6 = smov 112  }
   0x6   :  { %v552_v11 = vld [vmem:[%s1180_s0 + $0x7] ss:$16 sm:%s58_s27]   ;;  %107 = vrot.lane.b32.xlu1 %v106_v9, %s661_s6  ;;  %v56_v13 = vsel %vm55_vm1, %v551_v8, %v51_v10  ;;  %s128_s9 = smov 192  ;;  %s67_s14 = smov 3  ;;  %vm274_vm8 = vcmask 654848   ;;  %vm344_vm9 = vcmask 523648  }
   0x7   :  { %v565_v14 = vld [vmem:[%s1180_s0 + $0x6] ss:$16 sm:%s118_s4]   ;;  %v61_v15 = vsel %vm60_vm2, %v552_v11, %v56_v13  ;;  %s70_s15 = smov 12  ;;  %v553_v20 = vld [vmem:[%s1180_s0 + $0xf] ss:$16 sm:%s67_s14]   ;;  %s75_s18 = smov 48 }
   0x8   :  { %v121_v16 = vsel %vm50_vm0, %v565_v14, %v564_v12  ;;  %v566_v17 = vld [vmem:[%s1180_s0 + $0x6] ss:$16 sm:%s123_s5]   ;;  %62 = vrot.lane.b32.xlu0 %v61_v15, %s661_s6  ;;  %s80_s19 = smov 192  ;;  %s207_s24 = smov 3  ;;  %vm414_vm10 = vcmask 392448   ;;  %vm484_vm11 = vcmask 261248  }
   0x9   :  { %v567_v18 = vld [vmem:[%s1180_s0 + $0x6] ss:$16 sm:%s128_s9]   ;;  %v126_v19 = vsel %vm55_vm1, %v566_v17, %v121_v16  ;;  %v554_v21 = vld [vmem:[%s1180_s0 + $0xf] ss:$16 sm:%s70_s15]   ;;  %s210_s29 = smov 12  ;;  %s215_s30 = smov 48 }
   0xa   :  { %v555_v22 = vld [vmem:[%s1180_s0 + $0xf] ss:$16 sm:%s75_s18]   ;;  %v73_v23 = vsel %vm50_vm0, %v554_v21, %v553_v20  ;;  %v583_v25 = vld [vmem:[%s1180_s0 + $0xd] ss:$16 sm:%s207_s24]   ;;  %v131_v26 = vsel %vm60_vm2, %v567_v18, %v126_v19  ;;  %s220_s4 = smov 192  ;;  %s185_s5 = smov 3 }
   0xb   :  { %v556_v24 = vld [vmem:[%s1180_s0 + $0xf] ss:$16 sm:%s80_s19]   ;;  %v78_v27 = vsel %vm55_vm1, %v555_v22, %v73_v23  ;;  %v584_v28 = vld [vmem:[%s1180_s0 + $0xd] ss:$16 sm:%s210_s29]   ;;  %s188_s9 = smov 12  ;;  %s193_s10 = smov 48 }
   0xc   :  { %v579_v29 = vld [vmem:[%s1180_s0 + $0x5] ss:$16 sm:%s185_s5]   ;;  %v83_v30 = vsel %vm60_vm2, %v556_v24, %v78_v27  ;;  %v213_v31 = vsel %vm50_vm0, %v584_v28, %v583_v25  ;;  %v585_v32 = vld [vmem:[%s1180_s0 + $0xd] ss:$16 sm:%s215_s30]   ;;  %s198_s15 = smov 192  ;;  %s137_s16 = smov 3 }
   0xd   :  { %v580_v33 = vld [vmem:[%s1180_s0 + $0x5] ss:$16 sm:%s188_s9]   ;;  %s662_s17 = smov 96   ;;  %v586_v34 = vld [vmem:[%s1180_s0 + $0xd] ss:$16 sm:%s220_s4]   ;;  %s140_s22 = smov 12  ;;  %v218_v39 = vsel %vm55_vm1, %v585_v32, %v213_v31 }
   0xe   :  { %132 = vrot.lane.b32.xlu1 %v131_v26, %s662_s17  ;;  %v581_v35 = vld [vmem:[%s1180_s0 + $0x5] ss:$16 sm:%s193_s10]   ;;  %s145_s23 = smov 48  ;;  %v191_v36 = vsel %vm50_vm0, %v580_v33, %v579_v29  ;;  %s150_s28 = smov 192  ;;  %v223_v49 = vsel %vm60_vm2, %v586_v34, %v218_v39 }
   0xf   :  { %v568_v37 = vld [vmem:[%s1180_s0 + $0xe] ss:$16 sm:%s137_s16]   ;;  %s277_s30 = smov 3  ;;  %s280_s2 = smov 12  ;;  %v582_v42 = vld [vmem:[%s1180_s0 + $0x5] ss:$16 sm:%s198_s15]   ;;  %v196_v45 = vsel %vm55_vm1, %v581_v35, %v191_v36 }
  0x10   :  { %v569_v38 = vld [vmem:[%s1180_s0 + $0xe] ss:$16 sm:%s140_s22]   ;;  %84 = vrot.lane.b32.xlu0 %v83_v30, %s661_s6  ;;  %s285_s8 = smov 48  ;;  %s255_s13 = smov 3  ;;  %v201_v52 = vsel %vm60_vm2, %v582_v42, %v196_v45 }
  0x11   :  { %v143_v40 = vsel %vm50_vm0, %v569_v38, %v568_v37  ;;  %v570_v41 = vld [vmem:[%s1180_s0 + $0xe] ss:$16 sm:%s145_s23]   ;;  %v598_v47 = vld [vmem:[%s1180_s0 + $0xc] ss:$16 sm:%s277_s30]   ;;  %s258_s14 = smov 12  ;;  %s290_s15 = smov 192 }
  0x12   :  { %v148_v43 = vsel %vm55_vm1, %v570_v41, %v143_v40  ;;  %v571_v44 = vld [vmem:[%s1180_s0 + $0xe] ss:$16 sm:%s150_s28]   ;;  %v599_v48 = vld [vmem:[%s1180_s0 + $0xc] ss:$16 sm:%s280_s2]   ;;  %s263_s16 = smov 48  ;;  %s160_s22 = smov 3 }
  0x13   :  { %v153_v46 = vsel %vm60_vm2, %v571_v44, %v148_v43  ;;  %v594_v50 = vld [vmem:[%s1180_s0 + $0x4] ss:$16 sm:%s255_s13]   ;;  %s163_s23 = smov 12  ;;  %v283_v53 = vsel %vm50_vm0, %v599_v48, %v598_v47  ;;  %v600_v54 = vld [vmem:[%s1180_s0 + $0xc] ss:$16 sm:%s285_s8]   ;;  %s168_s28 = smov 48 }
  0x14   :  { %154 = vrot.lane.b32.xlu2 %v153_v46, %s662_s17  ;;  %v595_v51 = vld [vmem:[%s1180_s0 + $0x4] ss:$16 sm:%s258_s14]   ;;  %s173_s6 = smov 192  ;;  %s663_s29 = smov 80   ;;  %v288_v61 = vsel %vm55_vm1, %v600_v54, %v283_v53 }
  0x15   :  { %v596_v55 = vld [vmem:[%s1180_s0 + $0x4] ss:$16 sm:%s263_s16]   ;;  %v601_v56 = vld [vmem:[%s1180_s0 + $0xc] ss:$16 sm:%s290_s15]   ;;  %s268_s3 = smov 192  ;;  %v261_v58 = vsel %vm50_vm0, %v595_v51, %v594_v50  ;;  %s347_s11 = smov 3 }
  0x16   :  { %224 = vrot.lane.b32.xlu1 %v223_v49, %s663_s29  ;;  %v573_v57 = vld [vmem:[%s1180_s0 + $0x86] ss:$16 sm:%s160_s22]   ;;  %s350_s12 = smov 12  ;;  %s355_s15 = smov 48  ;;  %v266_v2 = vsel %vm55_vm1, %v596_v55, %v261_v58  ;;  %v293_v6 = vsel %vm60_vm2, %v601_v56, %v288_v61 }
  0x17   :  { %v574_v59 = vld [vmem:[%s1180_s0 + $0x86] ss:$16 sm:%s163_s23]   ;;  %v575_v60 = vld [vmem:[%s1180_s0 + $0x4e] ss:$16 sm:%s168_s28]   ;;  %s325_s19 = smov 3  ;;  %s328_s20 = smov 12 }
  0x18   :  { %202 = vrot.lane.b32.xlu0 %v201_v52, %s663_s29  ;;  %v166_v62 = vsel %vm50_vm0, %v574_v59, %v573_v57  ;;  %v576_v63 = vld [vmem:[%s1180_s0 + $0x4e] ss:$16 sm:%s173_s6]   ;;  %s333_s25 = smov 48  ;;  %s230_s26 = smov 3 }
  0x19   :  { %v597_v0 = vld [vmem:[%s1180_s0 + $0x4] ss:$16 sm:%s268_s3]   ;;  %v171_v1 = vsel %vm55_vm1, %v575_v60, %v166_v62  ;;  %v613_v4 = vld [vmem:[%s1180_s0 + $0xb] ss:$16 sm:%s347_s11]   ;;  %s233_s28 = smov 12  ;;  %s238_s4 = smov 48 }
  0x1a   :  { %v176_v3 = vsel %vm60_vm2, %v576_v63, %v171_v1  ;;  %v614_v5 = vld [vmem:[%s1180_s0 + $0xb] ss:$16 sm:%s350_s12]   ;;  %v609_v8 = vld [vmem:[%s1180_s0 + $0x3] ss:$16 sm:%s325_s19]   ;;  %s243_s5 = smov 192  ;;  %v271_v10 = vsel %vm60_vm2, %v597_v0, %v266_v2  ;;  %s360_s7 = smov 192 }
  0x1b   :  { %v615_v7 = vld [vmem:[%s1180_s0 + $0xb] ss:$16 sm:%s355_s15]   ;;  %v610_v9 = vld [vmem:[%s1180_s0 + $0x3] ss:$16 sm:%s328_s20]   ;;  %v353_v11 = vsel %vm50_vm0, %v614_v5, %v613_v4  ;;  %s664_s12 = smov 64   ;;  %s338_s13 = smov 192 }
  0x1c   :  { %177 = vrot.lane.b32.xlu2 %v176_v3, %s662_s17  ;;  %v611_v12 = vld [vmem:[%s1180_s0 + $0x3] ss:$16 sm:%s333_s25]   ;;  %v331_v15 = vsel %vm50_vm0, %v610_v9, %v609_v8  ;;  %s417_s21 = smov 3  ;;  %s420_s22 = smov 12  ;;  %v358_v19 = vsel %vm55_vm1, %v615_v7, %v353_v11 }
  0x1d   :  { %v588_v13 = vld [vmem:[%s1180_s0 + $0x85] ss:$16 sm:%s230_s26]   ;;  %v590_v17 = vld [vmem:[%s1180_s0 + $0x4d] ss:$16 sm:%s238_s4]   ;;  %s425_s25 = smov 48  ;;  %s395_s27 = smov 3  ;;  %v336_v24 = vsel %vm55_vm1, %v611_v12, %v331_v15 }
  0x1e   :  { %294 = vrot.lane.b32.xlu1 %v293_v6, %s664_s12  ;;  %v589_v14 = vld [vmem:[%s1180_s0 + $0x85] ss:$16 sm:%s233_s28]   ;;  %s398_s28 = smov 12  ;;  %s300_s4 = smov 3 }
  0x1f   :  { %v236_v16 = vsel %vm50_vm0, %v589_v14, %v588_v13  ;;  %v591_v18 = vld [vmem:[%s1180_s0 + $0x4d] ss:$16 sm:%s243_s5]   ;;  %v616_v20 = vld [vmem:[%s1180_s0 + $0xb] ss:$16 sm:%s360_s7]   ;;  %s303_s5 = smov 12  ;;  %s308_s8 = smov 48 }
  0x20   :  { %272 = vrot.lane.b32.xlu0 %v271_v10, %s664_s12  ;;  %v241_v21 = vsel %vm55_vm1, %v590_v17, %v236_v16  ;;  %v612_v22 = vld [vmem:[%s1180_s0 + $0x3] ss:$16 sm:%s338_s13]   ;;  %v363_v27 = vsel %vm60_vm2, %v616_v20, %v358_v19  ;;  %s403_s14 = smov 48  ;;  %s313_s15 = smov 192 }
  0x21   :  { %v246_v23 = vsel %vm60_vm2, %v591_v18, %v241_v21  ;;  %v628_v25 = vld [vmem:[%s1180_s0 + $0xa] ss:$16 sm:%s417_s21]   ;;  %v624_v29 = vld [vmem:[%s1180_s0 + $0x2] ss:$16 sm:%s395_s27]   ;;  %v341_v31 = vsel %vm60_vm2, %v612_v22, %v336_v24  ;;  %s430_s16 = smov 192  ;;  %s408_s23 = smov 192 }
  0x22   :  { %v629_v26 = vld [vmem:[%s1180_s0 + $0xa] ss:$16 sm:%s420_s22]   ;;  %v625_v30 = vld [vmem:[%s1180_s0 + $0x2] ss:$16 sm:%s398_s28]   ;;  %s665_s22 = smov 48   ;;  %s487_s26 = smov 3 }
  0x23   :  { %v630_v28 = vld [vmem:[%s1180_s0 + $0xa] ss:$16 sm:%s425_s25]   ;;  %v423_v32 = vsel %vm50_vm0, %v629_v26, %v628_v25  ;;  %v603_v33 = vld [vmem:[%s1180_s0 + $0x84] ss:$16 sm:%s300_s4]   ;;  %v401_v37 = vsel %vm50_vm0, %v625_v30, %v624_v29  ;;  %s490_s30 = smov 12  ;;  %s495_s2 = smov 48 }
  0x24   :  { %247 = vrot.lane.b32.xlu2 %v246_v23, %s663_s29  ;;  %v604_v34 = vld [vmem:[%s1180_s0 + $0x84] ss:$16 sm:%s303_s5]   ;;  %v428_v41 = vsel %vm55_vm1, %v630_v28, %v423_v32  ;;  %s465_s5 = smov 3  ;;  %s468_s29 = smov 12 }
  0x25   :  { %v306_v35 = vsel %vm50_vm0, %v604_v34, %v603_v33  ;;  %v605_v36 = vld [vmem:[%s1180_s0 + $0x4c] ss:$16 sm:%s308_s8]   ;;  %v626_v38 = vld [vmem:[%s1180_s0 + $0x2] ss:$16 sm:%s403_s14]   ;;  %s473_s9 = smov 48  ;;  %s370_s10 = smov 3 }
  0x26   :  { %364 = vrot.lane.b32.xlu1 %v363_v27, %s665_s22  ;;  %v311_v39 = vsel %vm55_vm1, %v605_v36, %v306_v35  ;;  %v606_v40 = vld [vmem:[%s1180_s0 + $0x4c] ss:$16 sm:%s313_s15]   ;;  %v406_v45 = vsel %vm55_vm1, %v626_v38, %v401_v37  ;;  %s378_s18 = smov 48  ;;  %s440_s27 = smov 3 }
  0x27   :  { %v631_v42 = vld [vmem:[%s1180_s0 + $0xa] ss:$16 sm:%s430_s16]   ;;  %v316_v43 = vsel %vm60_vm2, %v606_v40, %v311_v39  ;;  %v627_v44 = vld [vmem:[%s1180_s0 + $0x2] ss:$16 sm:%s408_s23]   ;;  %s373_s16 = smov 12  ;;  %s383_s23 = smov 192 }
  0x28   :  { %342 = vrot.lane.b32.xlu0 %v341_v31, %s665_s22  ;;  %v643_v46 = vld [vmem:[%s1180_s0 + $0x9] ss:$16 sm:%s487_s26]   ;;  %v433_v48 = vsel %vm60_vm2, %v631_v42, %v428_v41  ;;  %s443_s28 = smov 12  ;;  %v411_v53 = vsel %vm60_vm2, %v627_v44, %v406_v45  ;;  %s500_s6 = smov 192 }
  0x29   :  { %v644_v47 = vld [vmem:[%s1180_s0 + $0x9] ss:$16 sm:%s490_s30]   ;;  %v639_v50 = vld [vmem:[%s1180_s0 + $0x1] ss:$16 sm:%s465_s5]   ;;  %s666_s7 = smov 32   ;;  %s453_s24 = smov 192 }
  0x2a   :  { %v645_v49 = vld [vmem:[%s1180_s0 + $0x9] ss:$16 sm:%s495_s2]   ;;  %v640_v51 = vld [vmem:[%s1180_s0 + $0x1] ss:$16 sm:%s468_s29]   ;;  %v493_v54 = vsel %vm50_vm0, %v644_v47, %v643_v46  ;;  %s513_s25 = smov 12  ;;  %s518_s3 = smov 48 }
  0x2b   :  { %v618_v52 = vld [vmem:[%s1180_s0 + $0x83] ss:$16 sm:%s370_s10]   ;;  %v641_v55 = vld [vmem:[%s1180_s0 + $0x1] ss:$16 sm:%s473_s9]   ;;  %v471_v60 = vsel %vm50_vm0, %v640_v51, %v639_v50  ;;  %s478_s10 = smov 192  ;;  %v498_v0 = vsel %vm55_vm1, %v645_v49, %v493_v54  ;;  %s523_s29 = smov 192 }
  0x2c   :  { %317 = vrot.lane.b32.xlu2 %v316_v43, %s664_s12  ;;  %v619_v56 = vld [vmem:[%s1180_s0 + $0x83] ss:$16 sm:%s373_s16]   ;;  %s448_s16 = smov 48  ;;  %v476_v3 = vsel %vm55_vm1, %v641_v55, %v471_v60  ;;  %v2_v19 = vld [vmem:[%s1180_s0] ss:$8 sm:$0xf]  }
  0x2d   :  { %v620_v57 = vld [vmem:[%s1180_s0 + $0x4b] ss:$16 sm:%s378_s18]   ;;  %v376_v58 = vsel %vm50_vm0, %v619_v56, %v618_v52  ;;  %v633_v62 = vld [vmem:[%s1180_s0 + $0x82] ss:$16 sm:%s440_s27]   ;;  %s667_s27 = smov 16  }
  0x2e   :  { %434 = vrot.lane.b32.xlu1 %v433_v48, %s666_s7  ;;  %v621_v59 = vld [vmem:[%s1180_s0 + $0x4b] ss:$16 sm:%s383_s23]   ;;  %v381_v61 = vsel %vm55_vm1, %v620_v57, %v376_v58  ;;  %v3_v20 = vld [vmem:[%s1180_s0] ss:$8 sm:$0xf0]  }
  0x2f   :  { %v634_v63 = vld [vmem:[%s1180_s0 + $0x82] ss:$16 sm:%s443_s28]   ;;  %v646_v1 = vld [vmem:[%s1180_s0 + $0x9] ss:$16 sm:%s500_s6]   ;;  %v386_v2 = vsel %vm60_vm2, %v621_v59, %v381_v61  ;;  %v5_v21 = vsel %vm4_vm3, %v3_v20, %v2_v19 }
  0x30   :  { %412 = vrot.lane.b32.xlu0 %v411_v53, %s666_s7  ;;  %v642_v4 = vld [vmem:[%s1180_s0 + $0x1] ss:$16 sm:%s478_s10]   ;;  %v446_v5 = vsel %vm50_vm0, %v634_v63, %v633_v62  ;;  %v503_v7 = vsel %vm60_vm2, %v646_v1, %v498_v0  ;;  %v537_v22 = vld [vmem:[%s1180_s0 + $0x40] ss:$8 sm:$0xf]  }
  0x31   :  { %v635_v6 = vld [vmem:[%s1180_s0 + $0x4a] ss:$16 sm:%s448_s16]   ;;  %v481_v8 = vsel %vm60_vm2, %v642_v4, %v476_v3  ;;  %v649_v12 = vld [vmem:[%s1180_s0 + $0x81] ss:$16 sm:%s513_s25]  }
  0x32   :  { %v451_v9 = vsel %vm55_vm1, %v635_v6, %v446_v5  ;;  %v636_v10 = vld [vmem:[%s1180_s0 + $0x4a] ss:$16 sm:%s453_s24]   ;;  %v650_v15 = vld [vmem:[%s1180_s0 + $0x49] ss:$16 sm:%s518_s3]  }
  0x33   :  { %v456_v13 = vsel %vm60_vm2, %v636_v10, %v451_v9  ;;  %v651_v17 = vld [vmem:[%s1180_s0 + $0x49] ss:$16 sm:%s523_s29]   ;;  %7 = vst.msk [vmem:[%s1181_s1] ss:$8 sm:$0x3] %vm6_vm4, %v5_v21  }
  0x34   :  { %387 = vrot.lane.b32.xlu2 %v386_v2, %s665_s22  ;;  %s510_s22 = smov 3  ;;  %v538_v23 = vld [vmem:[%s1180_s0 + $0x40] ss:$8 sm:$0xf0]  }
  0x35   :  { %v648_v11 = vld [vmem:[%s1180_s0 + $0x81] ss:$16 sm:%s510_s22]   ;;  %534 = vst.msk [vmem:[%s1181_s1 - $0xf] ss:$8 sm:$0xc] %vm6_vm4, %v5_v21   ;;  %v19_v24 = vsel %vm4_vm3, %v538_v23, %v537_v22 }
  0x36   :  { %504 = vrot.lane.b32.xlu1 %v503_v7, %s667_s27  ;;  %v516_v14 = vsel %vm50_vm0, %v649_v12, %v648_v11  ;;  %v543_v25 = vld [vmem:[%s1180_s0 + $0x80] ss:$8 sm:$0xf]   ;;  %535 = vst.msk [vmem:[%s1181_s1 - $0x1e] ss:$8 sm:$0x30] %vm6_vm4, %v5_v21  }
  0x37   :  { %v521_v16 = vsel %vm55_vm1, %v650_v15, %v516_v14  ;;  %v544_v26 = vld [vmem:[%s1180_s0 + $0x80] ss:$8 sm:$0xf0]   ;;  %536 = vst.msk [vmem:[%s1181_s1 - $0x2d] ss:$8 sm:$0xc0] %vm6_vm4, %v5_v21  }
  0x38   :  { %482 = vrot.lane.b32.xlu0 %v481_v8, %s667_s27  ;;  %v526_v18 = vsel %vm60_vm2, %v651_v17, %v521_v16  ;;  %539 = vst.msk [vmem:[%s1181_s1 + $0x4] ss:$8 sm:$0x3] %vm6_vm4, %v19_v24   ;;  %v34_v27 = vsel %vm4_vm3, %v544_v26, %v543_v25 }
  0x39   :  { %540 = vst.msk [vmem:[%s1181_s1 - $0xb] ss:$8 sm:$0xc] %vm6_vm4, %v19_v24  }
  0x3a   :  { %541 = vst.msk [vmem:[%s1181_s1 - $0x1a] ss:$8 sm:$0x30] %vm6_vm4, %v19_v24  }
  0x3b   :  { %542 = vst.msk [vmem:[%s1181_s1 - $0x29] ss:$8 sm:$0xc0] %vm6_vm4, %v19_v24  }
  0x3c   :  { %457 = vrot.lane.b32.xlu2 %v456_v13, %s666_s7  ;;  %545 = vst.msk [vmem:[%s1181_s1 + $0x10] ss:$8 sm:$0x3] %vm6_vm4, %v34_v27  }
  0x3d   :  { %546 = vst.msk [vmem:[%s1181_s1 + $0x1] ss:$8 sm:$0xc] %vm6_vm4, %v34_v27  }
  0x3e   :  { %547 = vst.msk [vmem:[%s1181_s1 - $0xe] ss:$8 sm:$0x30] %vm6_vm4, %v34_v27  }
  0x3f   :  { %548 = vst.msk [vmem:[%s1181_s1 - $0x1d] ss:$8 sm:$0xc0] %vm6_vm4, %v34_v27  }
  0x44   :  { %527 = vrot.lane.b32.xlu2 %v526_v18, %s667_s27 }
  0x6e   :  { %v155_v28 = vpop.permute.xlu2 %154  }
  0x76   :  { %v178_v29 = vpop.permute.xlu2 %177  }
  0x78   :  { %v108_v30 = vpop.permute.xlu1 %107  }
  0x79   :  { %562 = vst.msk [vmem:[%s1181_s1 + $0x10] sm:$0xf] %vm64_vm5, %v108_v30  }
  0x7a   :  { %v63_v31 = vpop.permute.xlu0 %62   ;;  %563 = vst.msk [vmem:[%s1181_s1 + $0x14] sm:$0xf0] %vm64_vm5, %v108_v30  }
  0x7b   :  { %577 = vst.msk [vmem:[%s1181_s1 + $0x10] sm:$0xf] %vm134_vm6, %v178_v29  }
  0x7c   :  { %578 = vst.msk [vmem:[%s1181_s1 + $0x14] sm:$0xf0] %vm134_vm6, %v178_v29  }
  0x7d   :  { %65 = vst.msk [vmem:[%s1181_s1] sm:$0xff] %vm64_vm5, %v63_v31  }
  0x7e   :  { %v248_v32 = vpop.permute.xlu2 %247  }
  0x7f   :  { %592 = vst.msk [vmem:[%s1181_s1 + $0x10] sm:$0xf] %vm204_vm7, %v248_v32  }
  0x80   :  { %593 = vst.msk [vmem:[%s1181_s1 + $0x14] sm:$0xf0] %vm204_vm7, %v248_v32   ;;  %v133_v33 = vpop.permute.xlu1 %132  }
  0x81   :  { %135 = vst.msk [vmem:[%s1181_s1] sm:$0xff] %vm134_vm6, %v133_v33  }
  0x82   :  { %v85_v34 = vpop.permute.xlu0 %84  }
  0x83   :  { %557 = vst.msk [vmem:[%s1181_s1 + $0x8] sm:$0xff] %vm64_vm5, %v85_v34  }
  0x84   :  { %572 = vst.msk [vmem:[%s1181_s1 + $0x8] sm:$0xff] %vm134_vm6, %v155_v28  }
  0x86   :  { %v318_v35 = vpop.permute.xlu2 %317  }
  0x87   :  { %607 = vst.msk [vmem:[%s1181_s1 + $0x10] sm:$0xf] %vm274_vm8, %v318_v35  }
  0x88   :  { %608 = vst.msk [vmem:[%s1181_s1 + $0x14] sm:$0xf0] %vm274_vm8, %v318_v35   ;;  %v225_v36 = vpop.permute.xlu1 %224  }
  0x89   :  { %587 = vst.msk [vmem:[%s1181_s1 + $0x8] sm:$0xff] %vm204_vm7, %v225_v36  }
  0x8a   :  { %v203_v37 = vpop.permute.xlu0 %202  }
  0x8b   :  { %205 = vst.msk [vmem:[%s1181_s1] sm:$0xff] %vm204_vm7, %v203_v37  }
  0x8e   :  { %v388_v38 = vpop.permute.xlu2 %387  }
  0x8f   :  { %622 = vst.msk [vmem:[%s1181_s1 + $0x10] sm:$0xf] %vm344_vm9, %v388_v38  }
  0x90   :  { %623 = vst.msk [vmem:[%s1181_s1 + $0x14] sm:$0xf0] %vm344_vm9, %v388_v38   ;;  %v295_v39 = vpop.permute.xlu1 %294  }
  0x91   :  { %602 = vst.msk [vmem:[%s1181_s1 + $0x8] sm:$0xff] %vm274_vm8, %v295_v39  }
  0x92   :  { %v273_v40 = vpop.permute.xlu0 %272  }
  0x93   :  { %275 = vst.msk [vmem:[%s1181_s1] sm:$0xff] %vm274_vm8, %v273_v40  }
  0x96   :  { %v458_v41 = vpop.permute.xlu2 %457  }
  0x97   :  { %637 = vst.msk [vmem:[%s1181_s1 + $0x10] sm:$0xf] %vm414_vm10, %v458_v41  }
  0x98   :  { %638 = vst.msk [vmem:[%s1181_s1 + $0x14] sm:$0xf0] %vm414_vm10, %v458_v41   ;;  %v365_v42 = vpop.permute.xlu1 %364  }
  0x99   :  { %617 = vst.msk [vmem:[%s1181_s1 + $0x8] sm:$0xff] %vm344_vm9, %v365_v42  }
  0x9a   :  { %v343_v43 = vpop.permute.xlu0 %342  }
  0x9b   :  { %345 = vst.msk [vmem:[%s1181_s1] sm:$0xff] %vm344_vm9, %v343_v43  }
  0x9e   :  { %v528_v44 = vpop.permute.xlu2 %527  }
  0x9f   :  { %652 = vst.msk [vmem:[%s1181_s1 + $0x10] sm:$0xf] %vm484_vm11, %v528_v44  }
  0xa0   :  { %653 = vst.msk [vmem:[%s1181_s1 + $0x14] sm:$0xf0] %vm484_vm11, %v528_v44   ;;  %v435_v45 = vpop.permute.xlu1 %434  }
  0xa1   :  { %632 = vst.msk [vmem:[%s1181_s1 + $0x8] sm:$0xff] %vm414_vm10, %v435_v45  }
  0xa2   :  { %v413_v46 = vpop.permute.xlu0 %412  }
  0xa3   :  { %415 = vst.msk [vmem:[%s1181_s1] sm:$0xff] %vm414_vm10, %v413_v46  }
  0xa8   :  { %v505_v47 = vpop.permute.xlu1 %504  }
  0xa9   :  { %647 = vst.msk [vmem:[%s1181_s1 + $0x8] sm:$0xff] %vm484_vm11, %v505_v47  }
  0xaa   :  { %v483_v48 = vpop.permute.xlu0 %482  }
  0xab   :  { %485 = vst.msk [vmem:[%s1181_s1] sm:$0xff] %vm484_vm11, %v483_v48  }

// kernel: enc_classifier_forward.1
= control target key start
LH: loop header
LB: loop body
LE: loop exit
PB: predicated region body
PF: predicated region fallthrough
CT: control target
= control target key end

     0   :  { %s6515_s0 = inlined_call_operand.vmem [shape: f32[12,320], index: 0, kind: input, shape index: {}]   ;;  %s6516_s1 = inlined_call_operand.hbm [shape: f32[16,32], index: 1, kind: input, shape index: {}]   ;;  %s6517_s2 = inlined_call_operand.vmem [shape: f32[16,1], index: 2, kind: input, shape index: {}]   ;;  %s6518_s3 = inlined_call_operand.hbm [shape: bf16[16,256,256], index: 3, kind: input, shape index: {}]   ;;  %s6519_s4 = inlined_call_operand.hbm [shape: f32[1,256], index: 4, kind: input, shape index: {}]   ;;  %s6520_s5 = inlined_call_operand.hbm [shape: bf16[256,256], index: 5, kind: input, shape index: {}]   ;;  %s6521_s6 = inlined_call_operand.hbm [shape: f32[1,256], index: 6, kind: input, shape index: {}]   ;;  %s6522_s7 = inlined_call_operand.vmem [shape: f32[256,4], index: 7, kind: input, shape index: {}]   ;;  %s6523_s8 = inlined_call_operand.hbm [shape: f32[1,4], index: 8, kind: input, shape index: {}]   ;;  %s6524_s9 = inlined_call_operand.hbm [shape: f32[1,256], index: 9, kind: output, shape index: {0}]   ;;  %s6525_s10 = inlined_call_operand.hbm [shape: f32[1,4], index: 10, kind: output, shape index: {1}]  }
   0x1   :  { %6528 = sst [smem:[#allocation25_spill]] %s6516_s1 }
   0x2   :  { %6529 = sst [smem:[#allocation26_spill]] %s6519_s4 }
   0x3   :  { %16 = vsyncpa [#allocation5], 0 }
   0x4   :  { %17 = vsyncpa [#allocation8], 0 }
   0x5   :  { %19 = vsyncpa [#allocation8 + $0x1], 0 }
   0x6   :  { %20 = vsyncpa [#allocation11], 0 }
   0x7   :  { %21 = vsyncpa [#allocation14], 0 }
   0x8   :  { %22 = vsyncpa [#allocation6], 0 }
   0x9   :  { %23 = vsyncpa [#allocation17], 0  ;;  %s4987_s13 = smov 0   ;;  %s4989_s14 = smov 0  }
   0xa   :  { %s4991_s15 = smov 0   ;;  %s4993_s16 = smov 0  }
   0xb LB: > { %s5006_s17 = sadd.s32 4294967295, %s4911_s16   ;;  %p112_p0 = scmp.ne.s32.totalorder %s4903_s14, %s4899_s13  ;;  %s4911_s16 = sphi %s4993_s16, %s6549_s16   ;;  %s4907_s15 = sphi %s4991_s15, %s6548_s15   ;;  %s4903_s14 = sphi %s4989_s14, %s6547_s14   ;;  %s4899_s13 = sphi %s4987_s13, %s6546_s13  }
   0xc   : > { %p113_p1 = scmp.eq.s32.totalorder %s5006_s17, 0  ;;  %p3310_p2 = scmp.ge.s32.totalorder %s4911_s16, 1 }
   0xd   : > { %p270_p3 = scmp.lt.s32.totalorder %s4911_s16, 5  ;;  %p3311_p4 = scmp.ne.s32.totalorder %s5006_s17, 0 }
   0xe   : > { %p5015_p5 = por %p113_p1, %p112_p0  ;;  %s6531_s4 = sld [smem:[#allocation26_spill]] }
   0xf   : > { %p5022_p6 = pnand %p3310_p2, %p270_p3  ;;  %s4913_s23 = smov [#allocation9]  }
  0x10   : > { %s304_s24 = sshll.u32 %s4913_s23, 4  ;;  %s313_s28 = sshll.u32 %s6520_s5, 4  ;;  %s305_s24 = int_to_ptr.vmem [resolvable:$true] %s304_s24  ;;  %s314_s28 = int_to_ptr.hbm [resolvable:$true] %s313_s28 }
  0x11   : > { %p4305_p7 = pneg %p5022_p6  ;;  %s4914_s29 = smov [#allocation10]  }
  0x12   : > { %s315_s30 = sshll.u32 %s4914_s29, 4  ;;  %s6534_s1 = sld [smem:[#allocation25_spill]]  ;;  %s316_s30 = int_to_ptr.vmem [resolvable:$true] %s315_s30 }
  0x13   : > { %p5030_p8 = pnand %p4305_p7, %p113_p1  ;;  %s6526_s19 = smov 128  }
  0x14   : > { %s302_s21 = sshll.u32 %s6531_s4, 4  ;;  %s6527_s20 = smov 8   ;;  %s303_s21 = int_to_ptr.hbm [resolvable:$true] %s302_s21 }
  0x15   : > { %4311 = dma.hbm_to_vmem [thread:$0]  (!%p5030_p8), %s303_s21, 32, %s305_s24, [#allocation8]  }
  0x16   : > { %4314 = dma.hbm_to_vmem [thread:$0]  (!%p5030_p8), %s314_s28, 4096, %s316_s30, [#allocation11], %s6526_s19, %s6526_s19, %s6527_s20  }
  0x17   : > { %s328_s21 = sshll.u32 %s6521_s6, 4  ;;  %s4917_s24 = smov [#allocation4]   ;;  %s329_s21 = int_to_ptr.hbm [resolvable:$true] %s328_s21 }
  0x18   : > { %s284_s13 = sshll.u32 %s6534_s1, 4  ;;  %s286_s27 = sshll.u32 %s4917_s24, 4  ;;  %s285_s13 = int_to_ptr.hbm [resolvable:$true] %s284_s13  ;;  %s287_s27 = int_to_ptr.vmem [resolvable:$true] %s286_s27 }
  0x19   : > { %4308 = dma.hbm_to_vmem [thread:$0]  (!%p5030_p8), %s285_s13, 256, %s287_s27, [#allocation5], %s6526_s19, %s6526_s19, %s6527_s20  }
  0x1a   : > { %s4918_s28 = smov [#allocation12]   ;;  %s343_s12 = sshll.u32 %s6523_s8, 4  ;;  %s344_s12 = int_to_ptr.hbm [resolvable:$true] %s343_s12 }
  0x1b   : > { %s330_s29 = sshll.u32 %s4918_s28, 4  ;;  %s4919_s23 = smov [#allocation13]   ;;  %s331_s29 = int_to_ptr.vmem [resolvable:$true] %s330_s29 }
  0x1c   : > { %4317 = dma.hbm_to_vmem [thread:$0]  (!%p5030_p8), %s329_s21, 32, %s331_s29, [#allocation11]  }
  0x1d   : > { %s345_s26 = sshll.u32 %s4919_s23, 4  ;;  %s5061_s13 = sadd.s32 1, %s4911_s16   ;;  %s346_s26 = int_to_ptr.vmem [resolvable:$true] %s345_s26 }
  0x1e   : > { %4320 = dma.hbm_to_vmem [thread:$0]  (!%p5030_p8), %s344_s12, 16, %s346_s26, [#allocation14]  }
  0x1f   : > { %s96_s24 = ssub.s32 %s4911_s16, %s5061_s13  ;;  %s99_s27 = sadd.s32 1, %s4907_s15 }
  0x20   : > { %p97_p9 = scmp.eq.s32.totalorder %s96_s24, 0  ;;  %p106_p10 = scmp.ne.s32.totalorder %s4907_s15, %s4903_s14 }
  0x21   : > { %p107_p11 = scmp.eq.s32.totalorder %s4911_s16, 0  ;;  %p4330_p13 = scmp.lt.s32.totalorder %s4911_s16, 4 }
  0x22   : > { %s5072_s28 = scalar_select %p97_p9, %s4907_s15, %s99_s27  }
  0x23   : > { %p108_p12 = por %p107_p11, %p106_p10  ;;  %s356_s30 = sand.u32 1, %s4911_s16  }
  0x24   : > { %s358_s21 = sand.u32 1, %s4907_s15   ;;  %s4109_s11 = sshll.u32 %s4911_s16, 10 }
  0x25   : > { %s3317_s29 = sshll.u32 %s358_s21, 10  ;;  %s366_s20 = scalar_lea.hbm %s6518_s3, %s4109_s11 }
  0x26   : > { %s367_s25 = sshll.u32 %s366_s20, 4  ;;  %s360_s1 = scalar_lea.vmem [#allocation7], %s3317_s29  ;;  %s368_s25 = int_to_ptr.hbm [resolvable:$true] %s367_s25 }
  0x27   : > { %s369_s12 = sshll.u32 %s360_s1, 4  ;;  %p5081_p0 = pnand %p4330_p13, %p108_p12  ;;  %s370_s12 = int_to_ptr.vmem [resolvable:$true] %s369_s12 }
  0x28   : > { %s357_s24 = scalar_lea.sflag [#allocation8], %s356_s30  ;;  %s4767_s27 = sshra.s32 %s368_s25, 4  ;;  %s4768_s27 = int_to_ptr.hbm [resolvable:$true] %s4767_s27 }
  0x29   : > { %s4769_s4 = scalar_lea.hbm %s4768_s27, 1024  ;;  %p4771_p3 = pneg %p5081_p0 }
  0x2a   : > { %p4770_p2 = scmp.ne.s32.totalorder %s4768_s27, %s4769_s4  ;;  %s4774_s1 = scalar_lea.hbm %s6518_s3, 4096 }
  0x2b   : > { %p4775_p9 = scmp.lt.s32.totalorder %s4768_s27, %s6518_s3  ;;  %p4776_p10 = scmp.lt.s32.totalorder %s4774_s1, %s4769_s4 }
  0x2c   : > { %p4772_p7 = pnand %p4771_p3, %p4770_p2 }
  0x2d   : > { %p4777_p11 = por %p4776_p10, %p4775_p9 }
  0x2e   : > { %p4773_p8 = pneg %p4772_p7 }
  0x30   : > { %p4778_p12 = pnand %p4777_p11, %p4773_p8 }
  0x32   : > { %4781 = shalt.err (!%p4778_p12)
}
  0x33   : > { %s6536_s30 = smov 8   ;;  %s6537_s29 = smov 128  }
  0x34   : > { %4324 = dma.hbm_to_vmem [thread:$0]  (!%p5081_p0), %s368_s25, 16384, %s370_s12, %s357_s24, %s6537_s29, %s6537_s29, %s6536_s30  }
  0x35   : > { %381 = sbr.rel (%p5022_p6) target bundleno = 1387 (0x56b), region = 56 }
  0x3a   : > { %4870 = dma.done.wait (%p113_p1), [#allocation5], 256  }
  0x3b   : > { %4872 = vsyncadd (%p113_p1), [#allocation5], 4294967040  ;;  %s388_s4 = sand.u32 1, %s5006_s17   ;;  %s390_s11 = sand.u32 1, %s4903_s14  }
  0x3c   : > { %s3323_s23 = sshll.u32 %s390_s11, 10  ;;  %s389_s26 = scalar_lea.sflag [#allocation8], %s388_s4 }
  0x3d   : > { %s5106_s27 = scalar_lea.vmem [#allocation7], %s3323_s23 }
  0x3e   : > { %4874 = dma.done.wait (%p5015_p5), %s389_s26, 16384  }
  0x3f   : > { %4876 = vsyncadd (%p5015_p5), %s389_s26, 4294950912 }
  0x40   : > { %4878 = dma.done.wait (%p113_p1), [#allocation8], 32  }
  0x41   : > { %4880 = vsyncadd (%p113_p1), [#allocation8], 4294967264 }
  0x42   : > { %4882 = dma.done.wait (%p113_p1), [#allocation11], 4128  }
  0x43   : > { %4884 = vsyncadd (%p113_p1), [#allocation11], 4294963168 }
  0x44   : > { %4886 = dma.done.wait (%p113_p1), [#allocation14], 16  }
  0x45   : > { %4888 = vsyncadd (%p113_p1), [#allocation14], 4294967280  ;;  %449 = sbr.rel (%p3311_p4) target bundleno = 521 (0x209), region = 84  ;;  %s4920_s20 = smov (!%p3311_p4), 112  }
  0x46   : > { %s4921_s21 = smov (!%p3311_p4), 126   ;;  %s4922_s30 = smov (!%p3311_p4), 127  }
  0x47   : > { %s4924_s11 = smov (!%p3311_p4), 110   ;;  %s4925_s23 = smov (!%p3311_p4), 111  }
  0x48   : > { %s4926_s26 = smov (!%p3311_p4), 96   ;;  %s4927_s18 = smov (!%p3311_p4), 94  }
  0x49   : > { %s4928_s22 = smov (!%p3311_p4), 95  }
  0x4a   : > { %v5129_v0 = vld [vmem:[%s6515_s0] sm:$0x7]  ;;  %v5134_v1 = vld [vmem:[%s6515_s0 + $0x8] sm:$0x7]  ;;  %v5145_v8 = vld [vmem:[%s6515_s0 + $0x10] sm:$0x7] }
  0x4b   : > { %v489_v2 = vrot.slane %v5129_v0, 7  ;;  %v490_v3 = vrot.slane %v5134_v1, 7  ;;  %v475_v4 = vrot.slane %v5129_v0, 2  ;;  %v476_v5 = vrot.slane %v5134_v1, 2  ;;  %v5150_v9 = vld [vmem:[%s6515_s0] sm:$0x38] }
  0x4c   : > { %v461_v6 = vrot.slane %v5129_v0, 5  ;;  %v462_v7 = vrot.slane %v5134_v1, 5  ;;  %v491_v13 = vrot.slane %v5145_v8, 7  ;;  %v693_v14 = vrot.slane %v5150_v9, 2  ;;  %v5164_v21 = vld [vmem:[%s6515_s0 + $0x8] sm:$0x38] }
  0x4d   : > { %v4411_v10 = vpack.i.bf16 %v490_v3, %v489_v2  ;;  %v4401_v11 = vpack.i.bf16 %v476_v5, %v475_v4  ;;  %v477_v15 = vrot.slane %v5145_v8, 2  ;;  %v680_v16 = vrot.slane %v5150_v9, 5  ;;  %v453_v47 = vld [vmem:[%s6517_s2] sm:$0xff]  ;;  %v662_v48 = vld [vmem:[%s6515_s0 + $0x10] sm:$0x38]  ;;  %v454_v53 = vld [vmem:[%s6517_s2 + $0x8] sm:$0xff] }
  0x4e   : > { %v4391_v12 = vpack.i.bf16 %v462_v7, %v461_v6  ;;  %v463_v17 = vrot.slane %v5145_v8, 5  ;;  %v4416_v18 = vpack.i.bf16 %v693_v14, %v491_v13  ;;  %v4923_v22 = vmov 0   ;;  %v5225_v6 = vld [vmem:[%s6515_s0 + $0x20] sm:$0xe]  ;;  %v5230_v7 = vld [vmem:[%s6515_s0 + $0x28] sm:$0xe] }
  0x4f   : > { %4412 = vrot.lane.b32.xlu2 %v4411_v10, %s4920_s20  ;;  %4402 = vrot.lane.b32.xlu1 %v4401_v11, %s4921_s21  ;;  %v4406_v19 = vpack.i.bf16 %v680_v16, %v477_v15  ;;  %v517_v23 = vrot.slane %v5129_v0, 1  ;;  %v518_v24 = vrot.slane %v5134_v1, 1  ;;  %v505_v25 = vrot.slane %v5145_v8, 4 }
  0x50   : > { %4392 = vrot.lane.b32.xlu0 %v4391_v12, %s4922_s30  ;;  %v4396_v20 = vpack.i.bf16 %v5150_v9, %v463_v17  ;;  %4461 = vset.pattern.permute.xlu2 %v4923_v22  ;;  %v707_v26 = vrot.slane %v5164_v21, 7  ;;  %v503_v27 = vrot.slane %v5129_v0, 4  ;;  %v504_v28 = vrot.slane %v5134_v1, 4 }
  0x51   : > { %4462 = vset.pattern.permute.xlu0 %v4923_v22  ;;  %v4431_v29 = vpack.i.bf16 %v518_v24, %v517_v23  ;;  %v533_v32 = vrot.slane %v5145_v8, 6  ;;  %v733_v33 = vrot.slane %v5164_v21, 1  ;;  %v531_v34 = vrot.slane %v5129_v0, 6 }
  0x52   : > { %v4426_v30 = vpack.i.bf16 %v707_v26, %v505_v25  ;;  %v4421_v31 = vpack.i.bf16 %v504_v28, %v503_v27  ;;  %v532_v35 = vrot.slane %v5134_v1, 6  ;;  %v519_v36 = vrot.slane %v5145_v8, 1  ;;  %v5260_v26 = vld [vmem:[%s6515_s0 + $0x8] sm:$0xc0]  ;;  %v5265_v27 = vld [vmem:[%s6515_s0 + $0x20] sm:$0x1] }
  0x53   : > { %v720_v37 = vrot.slane %v5164_v21, 4  ;;  %v4446_v38 = vpack.i.bf16 %v733_v33, %v533_v32  ;;  %v547_v41 = vrot.slane %v5145_v8, 3  ;;  %v746_v42 = vrot.slane %v5164_v21, 6 }
  0x54   : > { %v4441_v39 = vpack.i.bf16 %v532_v35, %v531_v34  ;;  %v545_v43 = vrot.slane %v5129_v0, 3  ;;  %v546_v44 = vrot.slane %v5134_v1, 3  ;;  %v681_v49 = vrot.slane %v5164_v21, 5 }
  0x55   : > { %v4436_v40 = vpack.i.bf16 %v720_v37, %v519_v36  ;;  %v4456_v45 = vpack.i.bf16 %v746_v42, %v547_v41  ;;  %v682_v50 = vrot.slane %v662_v48, 5  ;;  %v4463_v51 = vpack.i.bf16 %v662_v48, %v5164_v21 }
  0x56   : > { %v4451_v46 = vpack.i.bf16 %v546_v44, %v545_v43  ;;  %v719_v54 = vrot.slane %v5150_v9, 4  ;;  %v721_v55 = vrot.slane %v662_v48, 4  ;;  %v732_v56 = vrot.slane %v5150_v9, 1 }
  0x57   : > { %4417 = vrot.lane.b32.xlu2 %v4416_v18, %s4920_s20  ;;  %4407 = vrot.lane.b32.xlu1 %v4406_v19, %s4921_s21  ;;  %v4468_v52 = vpack.i.bf16 %v682_v50, %v681_v49  ;;  %v734_v57 = vrot.slane %v662_v48, 1  ;;  %v666_v60 = vrot.slane %v5164_v21, 3  ;;  %v694_v61 = vrot.slane %v5164_v21, 2 }
  0x58   : > { %4397 = vrot.lane.b32.xlu0 %v4396_v20, %s4922_s30  ;;  %v4473_v58 = vpack.i.bf16 %v719_v54, %v721_v55  ;;  %v695_v62 = vrot.slane %v662_v48, 2  ;;  %v745_v63 = vrot.slane %v5150_v9, 6  ;;  %v747_v2 = vrot.slane %v662_v48, 6 }
  0x59   : > { %v4478_v59 = vpack.i.bf16 %v732_v56, %v734_v57  ;;  %v758_v3 = vrot.slane %v662_v48, 3  ;;  %v708_v10 = vrot.slane %v662_v48, 7  ;;  %v1138_v11 = vrot.slane %v5225_v6, 2 }
  0x5a   : > { %v4483_v4 = vpack.i.bf16 %v695_v62, %v694_v61  ;;  %v4488_v5 = vpack.i.bf16 %v745_v63, %v747_v2  ;;  %v1139_v12 = vrot.slane %v5230_v7, 2  ;;  %v665_v14 = vrot.slane %v5150_v9, 3  ;;  %v5314_v63 = vld [vmem:[%s6515_s0] sm:$0xc0]  ;;  %v5319_v2 = vld [vmem:[%s6515_s0 + $0x18] sm:$0x1] }
  0x5b   : > { %v1151_v16 = vrot.slane %v5225_v6, 7  ;;  %v1152_v17 = vrot.slane %v5230_v7, 7  ;;  %v1084_v19 = vrot.slane %v5225_v6, 1  ;;  %v1176_v20 = vrot.slane %v5230_v7, 1 }
  0x5c   : > { %v4498_v15 = vpack.i.bf16 %v1139_v12, %v1138_v11  ;;  %v1102_v22 = vrot.slane %v5225_v6, 3  ;;  %v1103_v23 = vrot.slane %v5230_v7, 3  ;;  %v1164_v24 = vrot.slane %v5225_v6, 4 }
  0x5d   : > { %v4503_v18 = vpack.i.bf16 %v1152_v17, %v1151_v16  ;;  %v1165_v25 = vrot.slane %v5230_v7, 4  ;;  %v933_v32 = vrot.slane %v5260_v26, 7  ;;  %v937_v33 = vrot.slane %v5265_v27, 7 }
  0x5e   : > { %v4508_v28 = vpack.i.bf16 %v1103_v23, %v1102_v22  ;;  %v964_v34 = vrot.slane %v5260_v26, 4  ;;  %v965_v35 = vrot.slane %v5265_v27, 4  ;;  %vm576_vm0 = vcmask 1040384  }
  0x5f   : > { %4432 = vrot.lane.b32.xlu2 %v4431_v29, %s4924_s11  ;;  %4427 = vrot.lane.b32.xlu1 %v4426_v30, %s4925_s23  ;;  %v4513_v29 = vpack.i.bf16 %v5230_v7, %v5225_v6  ;;  %v4518_v30 = vpack.i.bf16 %v1165_v25, %v1164_v24  ;;  %vm579_vm1 = vcmask 1043456   ;;  %v1125_v36 = vrot.slane %v5225_v6, 5 }
  0x60   : > { %4422 = vrot.lane.b32.xlu0 %v4421_v31, %s4925_s23  ;;  %v5272_v31 = vld [vmem:[%s6515_s0 + $0x18] sm:$0xe]  ;;  %v1126_v37 = vrot.slane %v5230_v7, 5  ;;  %v966_v42 = vsel %vm579_vm1, %v964_v34, %v965_v35  ;;  %vm570_vm2 = vcmask 1042432   ;;  %vm582_vm3 = vcmask 1046528  }
  0x61   : > { %v1101_v48 = vrot.slane %v5272_v31, 3  ;;  %v1163_v56 = vrot.slane %v5272_v31, 4  ;;  %v916_v57 = vrot.slane %v5260_v26, 2  ;;  %v1090_v61 = vrot.slane %v5230_v7, 6 }
  0x62   : > { %v4523_v43 = vpack.i.bf16 %v1126_v37, %v1125_v36  ;;  %vm573_vm4 = vcmask 1045504   ;;  %v932_v12 = vrot.slane %v5314_v63, 7  ;;  %v961_v17 = vrot.slane %v5314_v63, 4 }
  0x63   : > { %v4538_v54 = vpack.i.bf16 %v5265_v27, %v1101_v48  ;;  %v848_v34 = vrot.slane %v5260_v26, 6  ;;  %v849_v35 = vrot.slane %v5265_v27, 6  ;;  %vm585_vm5 = vcmask 1041408  }
  0x64   : > { %vm588_vm6 = vcmask 1044480   ;;  %vm498_vm7 = vcmask 916480   ;;  %vm484_vm8 = vcmask 1031168   ;;  %vm526_vm9 = vcmask 900096  }
  0x65   : > { %vm512_vm10 = vcmask 908288   ;;  %vm540_vm11 = vcmask 785408   ;;  %vm554_vm12 = vcmask 777216   ;;  %vm470_vm13 = vcmask 1039360  }
  0x66   : > { %vm565_vm14 = vcmask 769024   ;;  %vm603_vm15 = vcmask 261120  }
  0x67   : > { %4447 = vrot.lane.b32.xlu2 %v4446_v38, %s4926_s26  ;;  %4442 = vrot.lane.b32.xlu1 %v4441_v39, %s4926_s26  ;;  %v1137_v38 = vrot.slane %v5272_v31, 2  ;;  %v1150_v39 = vrot.slane %v5272_v31, 7 }
  0x68   : > { %4437 = vrot.lane.b32.xlu0 %v4436_v40, %s4924_s11  ;;  %v938_v40 = vsel %vm576_vm0, %v933_v32, %v937_v33 }
  0x69   : > { %v4528_v44 = vpack.i.bf16 %v938_v40, %v1137_v38  ;;  %v895_v40 = vrot.slane %v5319_v2, 5 }
  0x6f   : > { %559 = vrot.lane.b32.xlu2 %v5129_v0, %s4927_s18  ;;  %4457 = vrot.lane.b32.xlu1 %v4456_v45, %s4928_s22  ;;  %v4533_v45 = vpack.i.bf16 %v966_v42, %v1150_v39  ;;  %v894_v39 = vrot.slane %v5314_v63, 5 }
  0x70   : > { %4452 = vrot.lane.b32.xlu0 %v4451_v46, %s4928_s22  ;;  %v897_v46 = vrot.slane %v5260_v26, 5 }
  0x77   : > { %563 = vrot.lane.b32.xlu1 %v5145_v8, %s4927_s18  ;;  %595 = vperm.xlu2 %4461, %v453_v47   ;;  %v706_v8 = vrot.slane %v5150_v9, 7  ;;  %v898_v47 = vrot.slane %v5265_v27, 5 }
  0x78   : > { %561 = vrot.lane.b32.xlu0 %v5134_v1, %s4927_s18 }
  0x79   : > { %v4493_v13 = vpack.i.bf16 %v706_v8, %v708_v10  ;;  %v899_v50 = vsel %vm570_vm2, %v897_v46, %v898_v47  ;;  %v896_v47 = vsel %vm570_vm2, %v894_v39, %v895_v40 }
  0x7a   : > { %v4543_v55 = vpack.i.bf16 %v899_v50, %v5272_v31 }
  0x7f   : > { %4464 = vrot.lane.b32.xlu1 %v4463_v51, %s4922_s30  ;;  %4469 = vrot.lane.b32.xlu2 %v4468_v52, %s4921_s21  ;;  %v983_v51 = vrot.slane %v5260_v26, 1  ;;  %v984_v52 = vrot.slane %v5265_v27, 1 }
  0x80   : > { %600 = vperm.xlu0 %4462, %v454_v53   ;;  %v1083_v53 = vrot.slane %v5272_v31, 1 }
  0x81   : > { %v985_v62 = vsel %vm582_vm3, %v983_v51, %v984_v52 }
  0x82   : > { %v4548_v8 = vpack.i.bf16 %v985_v62, %v1163_v56  ;;  %v913_v62 = vrot.slane %v5314_v63, 2 }
  0x87   : > { %4474 = vrot.lane.b32.xlu1 %v4473_v58, %s4924_s11  ;;  %4479 = vrot.lane.b32.xlu2 %v4478_v59, %s4926_s26  ;;  %v917_v58 = vrot.slane %v5265_v27, 2  ;;  %v1089_v59 = vrot.slane %v5225_v6, 6 }
  0x88   : > { %761 = vrot.lane.b32.xlu0 %v666_v60, %s4927_s18 }
  0x89   : > { %v918_v10 = vsel %vm573_vm4, %v916_v57, %v917_v58  ;;  %v4553_v11 = vpack.i.bf16 %v1090_v61, %v1089_v59  ;;  %v980_v57 = vrot.slane %v5314_v63, 1  ;;  %v981_v58 = vrot.slane %v5319_v2, 1 }
  0x8f   : > { %763 = vrot.lane.b32.xlu1 %v758_v3, %s4927_s18  ;;  %4484 = vrot.lane.b32.xlu2 %v4483_v4, %s4920_s20  ;;  %v5328_v3 = vld [vmem:[%s6515_s0 + $0x10] sm:$0xc0]  ;;  %v5333_v4 = vld [vmem:[%s6515_s0 + $0x28] sm:$0x1] }
  0x90   : > { %4489 = vrot.lane.b32.xlu0 %v4488_v5, %s4928_s22  ;;  %v1124_v5 = vrot.slane %v5272_v31, 5  ;;  %v939_v16 = vrot.slane %v5333_v4, 7  ;;  %v968_v22 = vrot.slane %v5333_v4, 4  ;;  %v900_v42 = vrot.slane %v5328_v3, 5 }
  0x91   : > { %v1000_v46 = vrot.slane %v5333_v4, 6  ;;  %v4573_v56 = vpack.i.bf16 %v5319_v2, %v5333_v4  ;;  %v986_v59 = vrot.slane %v5328_v3, 1  ;;  %v987_v61 = vrot.slane %v5333_v4, 1 }
  0x92   : > { %v4558_v23 = vpack.i.bf16 %v918_v10, %v1124_v5  ;;  %v858_v5 = vrot.slane %v5260_v26, 3  ;;  %v914_v10 = vrot.slane %v5319_v2, 2  ;;  %v861_v39 = vrot.slane %v5328_v3, 3 }
  0x93   : > { %v862_v40 = vrot.slane %v5333_v4, 3 }
  0x97   : > { %4494 = vrot.lane.b32.xlu1 %v4493_v13, %s4925_s23  ;;  %759 = vrot.lane.b32.xlu2 %v665_v14, %s4927_s18  ;;  %v934_v13 = vrot.slane %v5328_v3, 7 }
  0x98   : > { %4499 = vrot.lane.b32.xlu0 %v4498_v15, %s4924_s11  ;;  %v935_v15 = vrot.slane %v5319_v2, 7 }
  0x99   : > { %v940_v25 = vsel %vm576_vm0, %v934_v13, %v939_v16  ;;  %v4929_v16 = vmov 0.0  }
  0x9a   : > { %v936_v24 = vsel %vm576_vm0, %v932_v12, %v935_v15  ;;  %v920_v15 = vrot.slane %v5333_v4, 2  ;;  %450 = vst [vmem:[#allocation3] sm:$0xff] %v4929_v16 }
  0x9b   : > { %v4563_v37 = vpack.i.bf16 %v936_v24, %v940_v25  ;;  %v915_v24 = vsel %vm573_vm4, %v913_v62, %v914_v10  ;;  %v4608_v10 = vpack.i.bf16 %v5328_v3, %v5260_v26 }
  0x9f   : > { %4504 = vrot.lane.b32.xlu1 %v4503_v18, %s4926_s26  ;;  %1179 = vrot.lane.b32.xlu2 %v1084_v19, %s4927_s18  ;;  %v962_v18 = vrot.slane %v5319_v2, 4 }
  0xa0   : > { %1181 = vrot.lane.b32.xlu0 %v1176_v20, %s4927_s18  ;;  %v967_v20 = vrot.slane %v5328_v3, 4 }
  0xa7   : > { %4509 = vrot.lane.b32.xlu1 %v4508_v28, %s4921_s21  ;;  %4514 = vrot.lane.b32.xlu2 %v4513_v29, %s4920_s20  ;;  %v963_v28 = vsel %vm579_vm1, %v961_v17, %v962_v18  ;;  %v969_v29 = vsel %vm579_vm1, %v967_v20, %v968_v22  ;;  %v1088_v17 = vrot.slane %v5272_v31, 6  ;;  %v982_v18 = vsel %vm582_vm3, %v980_v57, %v981_v58 }
  0xa8   : > { %4519 = vrot.lane.b32.xlu0 %v4518_v30, %s4928_s22  ;;  %v4568_v38 = vpack.i.bf16 %v963_v28, %v969_v29 }
  0xa9   : > { %v5288_v41 = vpop.permute.xlu2 %4412 }
  0xaa   : > { %v4414_v57 = vunpack.i.l.bf16 %v5288_v41 }
  0xaf   : > { %4524 = vrot.lane.b32.xlu1 %v4523_v43, %s4925_s23  ;;  %4529 = vrot.lane.b32.xlu2 %v4528_v44, %s4924_s11  ;;  %v901_v43 = vrot.slane %v5333_v4, 5  ;;  %v5372_v44 = vsel %vm585_vm5, %v848_v34, %v849_v35  ;;  %v4598_v4 = vpack.i.bf16 %v934_v13, %v933_v32 }
  0xb0   : > { %4534 = vrot.lane.b32.xlu0 %v4533_v45, %s4926_s26  ;;  %v999_v45 = vrot.slane %v5328_v3, 6 }
  0xb1   : > { %v5297_v49 = vpop.permute.xlu2 %4417  ;;  %v902_v48 = vsel %vm570_vm2, %v900_v42, %v901_v43  ;;  %v845_v42 = vrot.slane %v5314_v63, 6  ;;  %v846_v43 = vrot.slane %v5319_v2, 6 }
  0xb7   : > { %1177 = vrot.lane.b32.xlu1 %v1083_v53, %s4927_s18  ;;  %4539 = vrot.lane.b32.xlu2 %v4538_v54, %s4921_s21  ;;  %v1001_v54 = vsel %vm585_vm5, %v999_v45, %v1000_v46 }
  0xb8   : > { %4544 = vrot.lane.b32.xlu0 %v4543_v55, %s4920_s20  ;;  %v4578_v55 = vpack.i.bf16 %v896_v47, %v902_v48  ;;  %v863_v48 = vsel %vm588_vm6, %v861_v39, %v862_v40 }
  0xb9   : > { %v5337_v7 = vpop.permute.xlu2 %4432 }
  0xba   : > { %v4435_v62 = vunpack.i.h.bf16 %v5337_v7 }
  0xbf   : > { %4549 = vrot.lane.b32.xlu1 %v4548_v8, %s4928_s22  ;;  %4554 = vrot.lane.b32.xlu2 %v4553_v11, %s4922_s30  ;;  %v859_v8 = vrot.slane %v5265_v27, 3  ;;  %v919_v11 = vrot.slane %v5328_v3, 2  ;;  %v988_v27 = vsel %vm582_vm3, %v986_v59, %v987_v61 }
  0xc0   : > { %4559 = vrot.lane.b32.xlu0 %v4558_v23, %s4925_s23  ;;  %v4583_v29 = vpack.i.bf16 %v982_v18, %v988_v27 }
  0xc1   : > { %v5359_v30 = vpop.permute.xlu2 %4447  ;;  %v5361_v33 = vpop.permute.xlu1 %4402  ;;  %v860_v20 = vsel %vm588_vm6, %v858_v5, %v859_v8  ;;  %v921_v25 = vsel %vm573_vm4, %v919_v11, %v920_v15  ;;  %v4434_v8 = vunpack.i.l.bf16 %v5337_v7 }
  0xc2   : > { %v5365_v36 = vpop.permute.xlu0 %4392  ;;  %v4588_v34 = vpack.i.bf16 %v860_v20, %v1088_v17  ;;  %v4593_v35 = vpack.i.bf16 %v915_v24, %v921_v25  ;;  %v4405_v58 = vunpack.i.h.bf16 %v5361_v33  ;;  %v4404_v59 = vunpack.i.l.bf16 %v5361_v33 }
  0xc3   : > { %v4449_v33 = vunpack.i.l.bf16 %v5359_v30  ;;  %v4395_v15 = vunpack.i.h.bf16 %v5365_v36  ;;  %v4394_v16 = vunpack.i.l.bf16 %v5365_v36 }
  0xc4   : > { %v485_v11 = vsel %vm484_vm8, %v4404_v59, %v4405_v58 }
  0xc7   : > { %4564 = vrot.lane.b32.xlu1 %v4563_v37, %s4924_s11  ;;  %4569 = vrot.lane.b32.xlu2 %v4568_v38, %s4926_s26  ;;  %v855_v37 = vrot.slane %v5314_v63, 3  ;;  %v856_v38 = vrot.slane %v5319_v2, 3  ;;  %v4415_v2 = vunpack.i.h.bf16 %v5288_v41  ;;  %v4419_v41 = vunpack.i.l.bf16 %v5297_v49 }
  0xc8   : > { %1004 = vrot.lane.b32.xlu0 %v5372_v44, %s4927_s18 }
  0xc9   : > { %v5382_v50 = vpop.permute.xlu2 %559  ;;  %v5384_v51 = vpop.permute.xlu1 %4407  ;;  %v857_v47 = vsel %vm588_vm6, %v855_v37, %v856_v38  ;;  %v499_v32 = vsel %vm498_vm7, %v4414_v57, %v4415_v2  ;;  %v500_v36 = vsel %vm498_vm7, %v4415_v2, %v4419_v41 }
  0xca   : > { %v5386_v52 = vpop.permute.xlu0 %4397  ;;  %v4409_v24 = vunpack.i.l.bf16 %v5384_v51 }
  0xcf   : > { %1006 = vrot.lane.b32.xlu1 %v1001_v54, %s4927_s18  ;;  %4574 = vrot.lane.b32.xlu2 %v4573_v56, %s4921_s21  ;;  %v4603_v56 = vpack.i.bf16 %v857_v47, %v863_v48  ;;  %v471_v48 = vsel %vm470_vm13, %v4394_v16, %v4395_v15  ;;  %v5506_v16 = vld [vmem:[#allocation4] sm:$0xff] }
  0xd0   : > { %4579 = vrot.lane.b32.xlu0 %v4578_v55, %s4920_s20  ;;  %v5436_v55 = vsel %vm585_vm5, %v845_v42, %v846_v43  ;;  %v486_v43 = vsel %vm484_vm8, %v4405_v58, %v4409_v24 }
  0xd1   : > { %v5408_v22 = vpop.permute.xlu1 %4427  ;;  %v5410_v23 = vpop.permute.xlu2 %595 }
  0xd2   : > { %v5414_v28 = vpop.permute.xlu0 %4422 }
  0xd3   : > { %v4425_v17 = vunpack.i.h.bf16 %v5414_v28  ;;  %v4424_v18 = vunpack.i.l.bf16 %v5414_v28  ;;  %v527_v28 = vsel %vm526_vm9, %v4434_v8, %v4435_v62  ;;  %v571_v8 = vsel %vm570_vm2, %v5129_v0, %v471_v48 }
  0xd7   : > { %4584 = vrot.lane.b32.xlu1 %v4583_v29, %s4928_s22  ;;  %4589 = vrot.lane.b32.xlu2 %v4588_v34, %s4922_s30  ;;  %v4399_v29 = vunpack.i.l.bf16 %v5386_v52  ;;  %v4429_v34 = vunpack.i.l.bf16 %v5408_v22 }
  0xd8   : > { %4594 = vrot.lane.b32.xlu0 %v4593_v35, %s4925_s23  ;;  %v577_v35 = vsel %vm576_vm0, %v485_v11, %v499_v32 }
  0xd9   : > { %v4443_v45 = vpop.permute.xlu1 %4442  ;;  %v5425_v46 = vpop.permute.xlu2 %4469  ;;  %v514_v2 = vsel %vm512_vm10, %v4425_v17, %v4429_v34  ;;  %v472_v57 = vsel %vm470_vm13, %v4395_v15, %v4399_v29 }
  0xda   : > { %v5429_v54 = vpop.permute.xlu0 %4437  ;;  %v4445_v27 = vunpack.i.h.bf16 %v4443_v45  ;;  %v4444_v20 = vunpack.i.l.bf16 %v4443_v45 }
  0xdb   : > { %v4439_v7 = vunpack.i.l.bf16 %v5429_v54  ;;  %v4440_v29 = vunpack.i.h.bf16 %v5429_v54 }
  0xdc   : > { %v541_v39 = vsel %vm540_vm11, %v4444_v20, %v4445_v27  ;;  %v542_v42 = vsel %vm540_vm11, %v4445_v27, %v4449_v33  ;;  %v572_v33 = vsel %vm570_vm2, %v5134_v1, %v472_v57  ;;  %v5518_v1 = vld [vmem:[#allocation4 + $0x8] sm:$0xff] }
  0xdd   : > { %v528_v40 = vsel %vm526_vm9, %v4435_v62, %v4439_v7  ;;  %v586_v58 = vsel %vm585_vm5, %v527_v28, %v541_v39  ;;  %v578_v62 = vsel %vm576_vm0, %v486_v43, %v500_v36  ;;  %v575_v27 = vsel %vm573_vm4, %v572_v33, %v486_v43 }
  0xde   : > { %v587_v59 = vsel %vm585_vm5, %v528_v40, %v542_v42  ;;  %v4472_v43 = vunpack.i.h.bf16 %v5425_v46 }
  0xdf   : > { %1002 = vrot.lane.b32.xlu1 %v5436_v55, %s4927_s18  ;;  %4599 = vrot.lane.b32.xlu2 %v4598_v4, %s4924_s11 }
  0xe0   : > { %4604 = vrot.lane.b32.xlu0 %v4603_v56, %s4922_s30 }
  0xe1   : > { %v5447_v13 = vpop.permute.xlu1 %4457  ;;  %v5449_v61 = vpop.permute.xlu2 %4479 }
  0xe2   : > { %v4453_v5 = vpop.permute.xlu0 %4452  ;;  %v4459_v25 = vunpack.i.l.bf16 %v5447_v13  ;;  %v4482_v34 = vunpack.i.h.bf16 %v5449_v61  ;;  %v4481_v36 = vunpack.i.l.bf16 %v5449_v61  ;;  %v4460_v54 = vunpack.i.h.bf16 %v5447_v13 }
  0xe3   : > { %v4455_v26 = vunpack.i.h.bf16 %v4453_v5  ;;  %v4454_v3 = vunpack.i.l.bf16 %v4453_v5  ;;  %v581_v5 = vsel %vm579_vm1, %v578_v62, %v514_v2  ;;  %v4400_v62 = vunpack.i.h.bf16 %v5386_v52 }
  0xe4   : > { %v584_v15 = vsel %vm582_vm3, %v581_v5, %v528_v40  ;;  %v4430_v5 = vunpack.i.h.bf16 %v5408_v22 }
  0xe5   : > { %v556_v47 = vsel %vm554_vm12, %v4455_v26, %v4459_v25 }
  0xe7   : > { %4609 = vrot.lane.b32.xlu1 %v4608_v10, %s4921_s21  ;;  %941 = vrot.lane.b32.xlu2 %v932_v12, %s4924_s11  ;;  %v513_v12 = vsel %vm512_vm10, %v4424_v18, %v4425_v17  ;;  %v574_v18 = vsel %vm573_vm4, %v571_v8, %v485_v11 }
  0xe8   : > { %874 = vrot.lane.b32.xlu0 %v5314_v63, %s4921_s21  ;;  %v555_v63 = vsel %vm554_vm12, %v4454_v3, %v4455_v26  ;;  %v580_v32 = vsel %vm579_vm1, %v577_v35, %v513_v12 }
  0xe9   : > { %v564_v37 = vpop.permute.xlu1 %563  ;;  %v5476_v38 = vpop.permute.xlu2 %4484  ;;  %v589_v41 = vsel %vm588_vm6, %v586_v58, %v555_v63  ;;  %v583_v10 = vsel %vm582_vm3, %v580_v32, %v527_v28  ;;  %v4420_v32 = vunpack.i.h.bf16 %v5297_v49 }
  0xea   : > { %v562_v45 = vpop.permute.xlu0 %561  ;;  %v4487_v61 = vunpack.i.h.bf16 %v5476_v38 }
  0xeb   : > { %v566_v4 = vsel %vm565_vm14, %v5382_v50, %v562_v45  ;;  %v567_v56 = vsel %vm565_vm14, %v562_v45, %v564_v37  ;;  %v590_v50 = vsel %vm588_vm6, %v587_v59, %v556_v47  ;;  %v4450_v37 = vunpack.i.h.bf16 %v5359_v30 }
  0xec   : > { %3329 = vmatpush.msk.msra.mxu0 %vm570_vm2, %v566_v4  ;;  %3332 = vmatpush.msk.msra.mxu1 %vm570_vm2, %v567_v56  ;;  %v4486_v47 = vunpack.i.l.bf16 %v5476_v38 }
  0xed   : > { %v741_v30 = vsel %vm540_vm11, %v4482_v34, %v4450_v37  ;;  %v742_v48 = vsel %vm540_vm11, %v4450_v37, %v4481_v36 }
  0xee   : > { %623 = vmatpush.msra.mxu0 %v589_v41  ;;  %646 = vmatpush.msra.mxu1 %v590_v50  ;;  %v4471_v41 = vunpack.i.l.bf16 %v5425_v46  ;;  %v4410_v50 = vunpack.i.h.bf16 %v5384_v51  ;;  %v702_v33 = vsel %vm498_vm7, %v4420_v32, %v4486_v47 }
  0xf0   : > { %624 = vmatpush.msra.mxu0 %v583_v10  ;;  %647 = vmatpush.msra.mxu1 %v584_v15  ;;  %v690_v8 = vsel %vm484_vm8, %v4471_v41, %v4472_v43  ;;  %v703_v10 = vsel %vm498_vm7, %v4486_v47, %v4487_v61  ;;  %v689_v52 = vsel %vm484_vm8, %v4410_v50, %v4471_v41 }
  0xf1   : > { %v5508_v17 = vpop.permute.xlu1 %4464  ;;  %v760_v20 = vpop.permute.xlu2 %759 }
  0xf2   : > { %625 = vmatpush.msra.mxu0 %v574_v18  ;;  %648 = vmatpush.msra.mxu1 %v575_v27  ;;  %v5512_v0 = vpop.permute.xlu0 %600  ;;  %v4467_v57 = vunpack.i.h.bf16 %v5508_v17  ;;  %v4466_v58 = vunpack.i.l.bf16 %v5508_v17 }
  0xf3   : > { %3330 = vmatmul.msk.f32.vlgmr.msra.gmra.mxu0 %vm603_vm15, %v5506_v16  ;;  %3333 = vmatmul.msk.f32.vlgmr.msra.gmra.mxu1 %vm603_vm15, %v5506_v16 }
  0xf4   : > { %v676_v27 = vsel %vm470_vm13, %v4400_v62, %v4466_v58  ;;  %v677_v51 = vsel %vm470_vm13, %v4466_v58, %v4467_v57 }
  0xf9   : > { %v4475_v7 = vpop.permute.xlu1 %4474  ;;  %v5520_v24 = vpop.permute.xlu2 %1179 }
  0xfa   : > { %v762_v25 = vpop.permute.xlu0 %761  ;;  %v4477_v26 = vunpack.i.h.bf16 %v4475_v7  ;;  %v4476_v3 = vunpack.i.l.bf16 %v4475_v7 }
  0xfb   : > { %3331 = vmatmul.msk.f32.gmra.mxu0 %vm603_vm15, %v5518_v1  ;;  %3334 = vmatmul.msk.f32.gmra.mxu1 %vm603_vm15, %v5518_v1  ;;  %v765_v11 = vsel %vm565_vm14, %v760_v20, %v762_v25  ;;  %v773_v20 = vsel %vm576_vm0, %v689_v52, %v702_v33 }
  0xfc   : > { %3335 = vmatpush.msk.msra.mxu2 %vm570_vm2, %v765_v11  ;;  %v728_v42 = vsel %vm526_vm9, %v4477_v26, %v4440_v29  ;;  %v729_v12 = vsel %vm526_vm9, %v4440_v29, %v4476_v3  ;;  %v769_v3 = vsel %vm570_vm2, %v665_v14, %v676_v27  ;;  %v770_v29 = vsel %vm570_vm2, %v666_v60, %v677_v51 }
  0xfd   : > { %v779_v56 = vsel %vm585_vm5, %v728_v42, %v741_v30  ;;  %v780_v13 = vsel %vm585_vm5, %v729_v12, %v742_v48  ;;  %v772_v37 = vsel %vm573_vm4, %v770_v29, %v690_v8 }
 0x101   : > { %v764_v28 = vpop.permute.xlu1 %763  ;;  %v5531_v35 = vpop.permute.xlu2 %4514 }
 0x102   : > { %v4490_v39 = vpop.permute.xlu0 %4489  ;;  %v766_v40 = vsel %vm565_vm14, %v762_v25, %v764_v28  ;;  %v774_v25 = vsel %vm576_vm0, %v690_v8, %v703_v10  ;;  %v771_v28 = vsel %vm573_vm4, %v769_v3, %v689_v52  ;;  %v4517_v30 = vunpack.i.h.bf16 %v5531_v35 }
 0x103   : > { %v4492_v45 = vunpack.i.h.bf16 %v4490_v39  ;;  %v4491_v63 = vunpack.i.l.bf16 %v4490_v39  ;;  %3338 = vmatpush.msk.msra.mxu3 %vm570_vm2, %v766_v40  ;;  %v4516_v48 = vunpack.i.l.bf16 %v5531_v35 }
 0x105   : > { %v754_v4 = vsel %vm554_vm12, %v4492_v45, %v4460_v54  ;;  %v755_v2 = vsel %vm554_vm12, %v4460_v54, %v4491_v63  ;;  %v1121_v32 = vsel %vm498_vm7, %v4516_v48, %v4517_v30 }
 0x106   : > { %v781_v59 = vsel %vm588_vm6, %v779_v56, %v754_v4  ;;  %v782_v38 = vsel %vm588_vm6, %v780_v13, %v755_v2 }
 0x107   : > { %798 = vmatpush.msra.mxu2 %v781_v59  ;;  %821 = vmatpush.msra.mxu3 %v782_v38 }
 0x109   : > { %v4495_v15 = vpop.permute.xlu1 %4494  ;;  %v5560_v17 = vpop.permute.xlu2 %4529 }
 0x10a   : > { %v4497_v49 = vunpack.i.h.bf16 %v4495_v15  ;;  %v4496_v18 = vunpack.i.l.bf16 %v4495_v15  ;;  %v5562_v46 = vpop.permute.xlu0 %4499 }
 0x10c   : > { %v715_v22 = vsel %vm512_vm10, %v4497_v49, %v4430_v5  ;;  %v716_v7 = vsel %vm512_vm10, %v4430_v5, %v4496_v18 }
 0x10d   : > { %v775_v11 = vsel %vm579_vm1, %v773_v20, %v715_v22  ;;  %v776_v26 = vsel %vm579_vm1, %v774_v25, %v716_v7  ;;  %v4531_v7 = vunpack.i.l.bf16 %v5560_v17 }
 0x10e   : > { %v777_v34 = vsel %vm582_vm3, %v775_v11, %v728_v42  ;;  %v778_v36 = vsel %vm582_vm3, %v776_v26, %v729_v12  ;;  %v4502_v42 = vunpack.i.h.bf16 %v5562_v46  ;;  %v4501_v12 = vunpack.i.l.bf16 %v5562_v46 }
 0x10f   : > { %799 = vmatpush.msra.mxu2 %v777_v34  ;;  %822 = vmatpush.msra.mxu3 %v778_v36 }
 0x110   : > { %v1147_v4 = vsel %vm526_vm9, %v4501_v12, %v4502_v42 }
 0x111   : > { %v4505_v39 = vpop.permute.xlu1 %4504  ;;  %v5583_v40 = vpop.permute.xlu2 %4539  ;;  %800 = vmatpush.msra.mxu2 %v771_v28  ;;  %823 = vmatpush.msra.mxu3 %v772_v37  ;;  %v1146_v37 = vsel %vm526_vm9, %v4531_v7, %v4501_v12 }
 0x112   : > { %v1182_v9 = vpop.permute.xlu0 %1181  ;;  %3336 = vmatmul.msk.f32.vlgmr.msra.gmra.mxu2 %vm603_vm15, %v5506_v16  ;;  %3339 = vmatmul.msk.f32.vlgmr.msra.gmra.mxu3 %vm603_vm15, %v5506_v16  ;;  %v4507_v60 = vunpack.i.h.bf16 %v4505_v39  ;;  %v4506_v14 = vunpack.i.l.bf16 %v4505_v39  ;;  %v4541_v25 = vunpack.i.l.bf16 %v5583_v40 }
 0x113   : > { %v1184_v21 = vsel %vm565_vm14, %v5520_v24, %v1182_v9 }
 0x114   : > { %3350 = vmatpush.msk.msrb.mxu3 %vm570_vm2, %v1184_v21  ;;  %v1160_v63 = vsel %vm540_vm11, %v4506_v14, %v4507_v60 }
 0x115   : > { %v1198_v57 = vsel %vm585_vm5, %v1147_v4, %v1160_v63 }
 0x119   : > { %v4510_v43 = vpop.permute.xlu1 %4509  ;;  %v4555_v54 = vpop.permute.xlu2 %4554 }
 0x11a   : > { %v4520_v45 = vpop.permute.xlu0 %4519  ;;  %3337 = vmatmul.msk.f32.gmra.mxu2 %vm603_vm15, %v5518_v1  ;;  %3340 = vmatmul.msk.f32.gmra.mxu3 %vm603_vm15, %v5518_v1  ;;  %v4512_v56 = vunpack.i.h.bf16 %v4510_v43  ;;  %v4511_v2 = vunpack.i.l.bf16 %v4510_v43  ;;  %v4557_v58 = vunpack.i.h.bf16 %v4555_v54  ;;  %v4556_v59 = vunpack.i.l.bf16 %v4555_v54 }
 0x11b   : > { %v4522_v61 = vunpack.i.h.bf16 %v4520_v45  ;;  %v4521_v47 = vunpack.i.l.bf16 %v4520_v45 }
 0x11c   : > { %v1111_v41 = vsel %vm484_vm8, %v4511_v2, %v4512_v56  ;;  %v1098_v33 = vsel %vm470_vm13, %v4556_v59, %v4557_v58  ;;  %v1110_v39 = vsel %vm484_vm8, %v4541_v25, %v4511_v2  ;;  %v4542_v2 = vunpack.i.h.bf16 %v5583_v40 }
 0x11d   : > { %v1173_v13 = vsel %vm554_vm12, %v4521_v47, %v4522_v61  ;;  %v1192_v15 = vsel %vm576_vm0, %v1111_v41, %v1121_v32  ;;  %v1188_v18 = vsel %vm570_vm2, %v1084_v19, %v1098_v33 }
 0x11e   : > { %v1200_v38 = vsel %vm588_vm6, %v1198_v57, %v1173_v13  ;;  %v1190_v27 = vsel %vm573_vm4, %v1188_v18, %v1111_v41 }
 0x11f   : > { %1239 = vmatpush.msrb.mxu3 %v1200_v38 }
 0x121   : > { %v4525_v50 = vpop.permute.xlu1 %4524  ;;  %v5607_v62 = vpop.permute.xlu2 %4569 }
 0x122   : > { %v4527_v35 = vunpack.i.h.bf16 %v4525_v50  ;;  %v4526_v5 = vunpack.i.l.bf16 %v4525_v50  ;;  %v5609_v8 = vpop.permute.xlu0 %4534 }
 0x123   : > { %v4536_v6 = vunpack.i.l.bf16 %v5609_v8  ;;  %v4537_v31 = vunpack.i.h.bf16 %v5609_v8 }
 0x124   : > { %v1134_v10 = vsel %vm512_vm10, %v4526_v5, %v4527_v35 }
 0x125   : > { %v1194_v49 = vsel %vm579_vm1, %v1192_v15, %v1134_v10  ;;  %v1159_v3 = vsel %vm540_vm11, %v4536_v6, %v4506_v14 }
 0x126   : > { %v1196_v46 = vsel %vm582_vm3, %v1194_v49, %v1147_v4  ;;  %v1197_v21 = vsel %vm585_vm5, %v1146_v37, %v1159_v3 }
 0x127   : > { %1240 = vmatpush.msrb.mxu3 %v1196_v46 }
 0x129   : > { %v1178_v51 = vpop.permute.xlu1 %1177  ;;  %v5620_v52 = vpop.permute.xlu2 %4574  ;;  %1241 = vmatpush.msrb.mxu3 %v1190_v27 }
 0x12a   : > { %v5622_v22 = vpop.permute.xlu0 %4544  ;;  %3351 = vmatmul.msk.f32.vlgmr.msrb.gmra.mxu3 %vm603_vm15, %v5506_v16  ;;  %v1183_v20 = vsel %vm565_vm14, %v1178_v51, %v5520_v24  ;;  %v4576_v13 = vunpack.i.l.bf16 %v5620_v52  ;;  %v4577_v50 = vunpack.i.h.bf16 %v5620_v52 }
 0x12b   : > { %3347 = vmatpush.msk.msrb.mxu2 %vm570_vm2, %v1183_v20  ;;  %v4546_v19 = vunpack.i.l.bf16 %v5622_v22  ;;  %v4547_v38 = vunpack.i.h.bf16 %v5622_v22 }
 0x12c   : > { %v889_v33 = vsel %vm484_vm8, %v4542_v2, %v4576_v13 }
 0x12d   : > { %v1120_v29 = vsel %vm498_vm7, %v4546_v19, %v4516_v48 }
 0x12e   : > { %v1191_v43 = vsel %vm576_vm0, %v1110_v39, %v1120_v29 }
 0x131   : > { %v5633_v11 = vpop.permute.xlu1 %4549  ;;  %v5635_v26 = vpop.permute.xlu2 %4589 }
 0x132   : > { %v4551_v24 = vunpack.i.l.bf16 %v5633_v11  ;;  %v5640_v34 = vpop.permute.xlu0 %4559  ;;  %v4591_v36 = vunpack.i.l.bf16 %v5635_v26  ;;  %3352 = vmatmul.msk.f32.gmra.mxu3 %vm603_vm15, %v5518_v1  ;;  %v4552_v40 = vunpack.i.h.bf16 %v5633_v11  ;;  %v4572_v11 = vunpack.i.h.bf16 %v5607_v62 }
 0x133   : > { %v4561_v28 = vunpack.i.l.bf16 %v5640_v34 }
 0x134   : > { %v1172_v9 = vsel %vm554_vm12, %v4551_v24, %v4521_v47  ;;  %v1097_v60 = vsel %vm470_vm13, %v4591_v36, %v4556_v59  ;;  %v4532_v59 = vunpack.i.h.bf16 %v5560_v17  ;;  %v4562_v17 = vunpack.i.h.bf16 %v5640_v34 }
 0x135   : > { %v1199_v14 = vsel %vm588_vm6, %v1197_v21, %v1172_v9  ;;  %v1133_v42 = vsel %vm512_vm10, %v4561_v28, %v4526_v5  ;;  %v1187_v12 = vsel %vm570_vm2, %v1083_v53, %v1097_v60  ;;  %v4571_v53 = vunpack.i.l.bf16 %v5607_v62 }
 0x136   : > { %1216 = vmatpush.msrb.mxu2 %v1199_v14  ;;  %v1193_v54 = vsel %vm579_vm1, %v1191_v43, %v1133_v42  ;;  %v1189_v61 = vsel %vm573_vm4, %v1187_v12, %v1110_v39  ;;  %v976_v60 = vsel %vm540_vm11, %v4572_v11, %v4537_v31 }
 0x137   : > { %v1195_v45 = vsel %vm582_vm3, %v1193_v54, %v1146_v37  ;;  %v977_v8 = vsel %vm540_vm11, %v4537_v31, %v4571_v53  ;;  %v888_v37 = vsel %vm484_vm8, %v4577_v50, %v4542_v2 }
 0x138   : > { %1217 = vmatpush.msrb.mxu2 %v1195_v45 }
 0x139   : > { %v4565_v63 = vpop.permute.xlu1 %4564  ;;  %v4600_v58 = vpop.permute.xlu2 %4599 }
 0x13a   : > { %v1005_v47 = vpop.permute.xlu0 %1004  ;;  %1218 = vmatpush.msrb.mxu2 %v1189_v61  ;;  %v4566_v56 = vunpack.i.l.bf16 %v4565_v63  ;;  %v4602_v32 = vunpack.i.h.bf16 %v4600_v58  ;;  %v4601_v41 = vunpack.i.l.bf16 %v4600_v58  ;;  %v4567_v18 = vunpack.i.h.bf16 %v4565_v63 }
 0x13b   : > { %3348 = vmatmul.msk.f32.vlgmr.msrb.gmra.mxu2 %vm603_vm15, %v5506_v16 }
 0x13c   : > { %v956_v5 = vsel %vm526_vm9, %v4532_v59, %v4566_v56  ;;  %v954_v20 = vsel %vm526_vm9, %v4601_v41, %v4602_v32  ;;  %v955_v36 = vsel %vm526_vm9, %v4567_v18, %v4532_v59 }
 0x13d   : > { %v1023_v22 = vsel %vm585_vm5, %v956_v5, %v977_v8  ;;  %v1022_v43 = vsel %vm585_vm5, %v955_v36, %v976_v60 }
 0x141   : > { %v1007_v30 = vpop.permute.xlu1 %1006  ;;  %v942_v34 = vpop.permute.xlu2 %941 }
 0x142   : > { %v4580_v48 = vpop.permute.xlu0 %4579  ;;  %v1009_v4 = vsel %vm565_vm14, %v1005_v47, %v1007_v30  ;;  %v953_v42 = vsel %vm526_vm9, %v942_v34, %v4601_v41 }
 0x143   : > { %3344 = vmatpush.msk.msrb.mxu1 %vm570_vm2, %v1009_v4  ;;  %3349 = vmatmul.msk.f32.gmra.mxu2 %vm603_vm15, %v5518_v1  ;;  %v4581_v57 = vunpack.i.l.bf16 %v4580_v48  ;;  %v4582_v46 = vunpack.i.h.bf16 %v4580_v48 }
 0x145   : > { %v910_v10 = vsel %vm498_vm7, %v4547_v38, %v4581_v57  ;;  %v909_v29 = vsel %vm498_vm7, %v4582_v46, %v4547_v38 }
 0x146   : > { %v1017_v25 = vsel %vm576_vm0, %v889_v33, %v910_v10  ;;  %v1016_v14 = vsel %vm576_vm0, %v888_v37, %v909_v29 }
 0x149   : > { %v4585_v35 = vpop.permute.xlu1 %4584 }
 0x14a   : > { %v4586_v15 = vunpack.i.l.bf16 %v4585_v35  ;;  %v4595_v49 = vpop.permute.xlu0 %4594  ;;  %v4587_v6 = vunpack.i.h.bf16 %v4585_v35 }
 0x14b   : > { %v4596_v27 = vunpack.i.l.bf16 %v4595_v49  ;;  %v4597_v51 = vunpack.i.h.bf16 %v4595_v49 }
 0x14c   : > { %v996_v52 = vsel %vm554_vm12, %v4552_v40, %v4586_v15  ;;  %v995_v9 = vsel %vm554_vm12, %v4587_v6, %v4552_v40 }
 0x14d   : > { %v1025_v19 = vsel %vm588_vm6, %v1023_v22, %v996_v52  ;;  %v929_v7 = vsel %vm512_vm10, %v4562_v17, %v4596_v27  ;;  %v928_v28 = vsel %vm512_vm10, %v4597_v51, %v4562_v17  ;;  %v1024_v12 = vsel %vm588_vm6, %v1022_v43, %v995_v9 }
 0x14e   : > { %1064 = vmatpush.msrb.mxu1 %v1025_v19  ;;  %v1019_v3 = vsel %vm579_vm1, %v1017_v25, %v929_v7  ;;  %v1018_v54 = vsel %vm579_vm1, %v1016_v14, %v928_v28 }
 0x14f   : > { %v1021_v24 = vsel %vm582_vm3, %v1019_v3, %v954_v20  ;;  %v1020_v61 = vsel %vm582_vm3, %v1018_v54, %v953_v42 }
 0x150   : > { %1065 = vmatpush.msrb.mxu1 %v1021_v24 }
 0x151   : > { %v1003_v39 = vpop.permute.xlu1 %1002 }
 0x152   : > { %v4605_v21 = vpop.permute.xlu0 %4604  ;;  %v1008_v62 = vsel %vm565_vm14, %v1003_v39, %v1005_v47  ;;  %v4592_v47 = vunpack.i.h.bf16 %v5635_v26 }
 0x153   : > { %3341 = vmatpush.msk.msrb.mxu0 %vm570_vm2, %v1008_v62  ;;  %v4607_v45 = vunpack.i.h.bf16 %v4605_v21  ;;  %v4606_v63 = vunpack.i.l.bf16 %v4605_v21 }
 0x155   : > { %1041 = vmatpush.msrb.mxu0 %v1024_v12  ;;  %v870_v48 = vsel %vm470_vm13, %v4607_v45, %v4592_v47  ;;  %v871_v4 = vsel %vm470_vm13, %v4592_v47, %v4606_v63 }
 0x156   : > { %v1012_v13 = vsel %vm570_vm2, %v5436_v55, %v870_v48  ;;  %v1013_v58 = vsel %vm570_vm2, %v5372_v44, %v871_v4 }
 0x157   : > { %1042 = vmatpush.msrb.mxu0 %v1020_v61 }
 0x159   : > { %v4610_v30 = vpop.permute.xlu1 %4609 }
 0x15a   : > { %v4612_v31 = vunpack.i.h.bf16 %v4610_v30  ;;  %v4611_v53 = vunpack.i.l.bf16 %v4610_v30  ;;  %v875_v56 = vpop.permute.xlu0 %874 }
 0x15c   : > { %v886_v2 = vsel %vm484_vm8, %v875_v56, %v4611_v53  ;;  %v887_v57 = vsel %vm484_vm8, %v4611_v53, %v4612_v31 }
 0x15d   : > { %v1014_v26 = vsel %vm573_vm4, %v1012_v13, %v886_v2  ;;  %v1015_v59 = vsel %vm573_vm4, %v1013_v58, %v887_v57 }
 0x15e   : > { %1043 = vmatpush.msrb.mxu0 %v1014_v26  ;;  %1066 = vmatpush.msrb.mxu1 %v1015_v59 }
 0x15f   : > { %3342 = vmatmul.msk.f32.vlgmr.msrb.gmra.mxu0 %vm603_vm15, %v5506_v16  ;;  %3345 = vmatmul.msk.f32.vlgmr.msrb.gmra.mxu1 %vm603_vm15, %v5506_v16 }
 0x167   : > { %3343 = vmatmul.msk.f32.gmra.mxu0 %vm603_vm15, %v5518_v1  ;;  %3346 = vmatmul.msk.f32.gmra.mxu1 %vm603_vm15, %v5518_v1 }
 0x170   : > { %v627_v55 = vpop.f32.mrf.mxu0  ;;  %v650_v44 = vpop.f32.mrf.mxu1 }
 0x171   : > { %v628_v32 = vadd.f32 %v627_v55, %v5410_v23  ;;  %v651_v50 = vadd.f32 %v650_v44, %v5410_v23 }
 0x173   : > { %v5723_v8 = vmax.f32 %v628_v32, 0.0  ;;  %v5726_v33 = vmax.f32 %v651_v50, 0.0 }
 0x175   : > { %v1285_v15 = vrot.slane %v5723_v8, 1  ;;  %v1310_v49 = vrot.slane %v5723_v8, 2  ;;  %v1335_v18 = vrot.slane %v5723_v8, 3  ;;  %v1360_v46 = vrot.slane %v5723_v8, 4 }
 0x176   : > { %v1389_v27 = vrot.slane %v5723_v8, 5  ;;  %v1418_v51 = vrot.slane %v5723_v8, 6  ;;  %v1447_v52 = vrot.slane %v5723_v8, 7  ;;  %v1286_v22 = vrot.slane %v5726_v33, 1 }
 0x177   : > { %v1311_v19 = vrot.slane %v5726_v33, 2  ;;  %v1336_v7 = vrot.slane %v5726_v33, 3  ;;  %v1361_v25 = vrot.slane %v5726_v33, 4  ;;  %v1390_v3 = vrot.slane %v5726_v33, 5 }
 0x178   : > { %v630_v41 = vpop.f32.mrf.mxu0  ;;  %v653_v5 = vpop.f32.mrf.mxu1  ;;  %v1419_v29 = vrot.slane %v5726_v33, 6  ;;  %v1448_v24 = vrot.slane %v5726_v33, 7 }
 0x179   : > { %v631_v16 = vadd.f32 %v630_v41, %v5512_v0  ;;  %v654_v40 = vadd.f32 %v653_v5, %v5512_v0 }
 0x17b   : > { %v5732_v17 = vmax.f32 %v631_v16, 0.0  ;;  %v5740_v20 = vmax.f32 %v654_v40, 0.0 }
 0x17d   : > { %v1509_v34 = vrot.slane %v5732_v17, 1  ;;  %v1534_v28 = vrot.slane %v5732_v17, 2  ;;  %v1559_v37 = vrot.slane %v5732_v17, 3  ;;  %v1584_v39 = vrot.slane %v5732_v17, 4 }
 0x17e   : > { %v1613_v9 = vrot.slane %v5732_v17, 5  ;;  %v1642_v21 = vrot.slane %v5732_v17, 6  ;;  %v1671_v62 = vrot.slane %v5732_v17, 7  ;;  %v1510_v60 = vrot.slane %v5740_v20, 1 }
 0x17f   : > { %v1535_v42 = vrot.slane %v5740_v20, 2  ;;  %v1560_v43 = vrot.slane %v5740_v20, 3  ;;  %v1585_v63 = vrot.slane %v5740_v20, 4  ;;  %v1614_v61 = vrot.slane %v5740_v20, 5 }
 0x180   : > { %v1643_v47 = vrot.slane %v5740_v20, 6  ;;  %v1672_v48 = vrot.slane %v5740_v20, 7 }
 0x195   : > { %v825_v38 = vpop.f32.mrf.mxu3  ;;  %v802_v35 = vpop.f32.mrf.mxu2 }
 0x196   : > { %v803_v1 = vadd.f32 %v802_v35, %v5410_v23  ;;  %v826_v6 = vadd.f32 %v825_v38, %v5410_v23 }
 0x198   : > { %v831_v11 = vmax.f32 %v803_v1, 0.0  ;;  %v832_v14 = vmax.f32 %v826_v6, 0.0 }
 0x19a   : > { %v1255_v54 = vrot.slane %v831_v11, 7  ;;  %v1339_v30 = vrot.slane %v831_v11, 2  ;;  %v5765_v4 = vsel %vm576_vm0, %v1285_v15, %v831_v11  ;;  %v1314_v31 = vrot.slane %v831_v11, 1 }
 0x19b   : > { %v1364_v53 = vrot.slane %v831_v11, 3  ;;  %v1393_v56 = vrot.slane %v831_v11, 4  ;;  %v1422_v2 = vrot.slane %v831_v11, 5  ;;  %v1451_v13 = vrot.slane %v831_v11, 6 }
 0x19c   : > { %v1256_v57 = vrot.slane %v832_v14, 7  ;;  %v5769_v58 = vsel %vm576_vm0, %v5723_v8, %v1255_v54  ;;  %v1340_v26 = vrot.slane %v832_v14, 2  ;;  %v5773_v44 = vsel %vm576_vm0, %v1335_v18, %v1339_v30 }
 0x19d   : > { %v828_v10 = vpop.f32.mrf.mxu3  ;;  %v805_v36 = vpop.f32.mrf.mxu2  ;;  %v1365_v38 = vrot.slane %v832_v14, 3  ;;  %v1394_v32 = vrot.slane %v832_v14, 4  ;;  %v1423_v41 = vrot.slane %v832_v14, 5  ;;  %v5776_v50 = vsel %vm576_vm0, %v1360_v46, %v1364_v53 }
 0x19e   : > { %v806_v12 = vadd.f32 %v805_v36, %v5512_v0  ;;  %v829_v55 = vadd.f32 %v828_v10, %v5512_v0  ;;  %v5779_v35 = vsel %vm576_vm0, %v1286_v22, %v832_v14  ;;  %v1315_v5 = vrot.slane %v832_v14, 1 }
 0x19f   : > { %v1452_v16 = vrot.slane %v832_v14, 6  ;;  %v5782_v40 = vsel %vm576_vm0, %v1389_v27, %v1393_v56  ;;  %v5785_v1 = vsel %vm576_vm0, %v1418_v51, %v1422_v2  ;;  %v5788_v10 = vsel %vm576_vm0, %v1447_v52, %v1451_v13 }
 0x1a0   : > { %v833_v59 = vmax.f32 %v806_v12, 0.0  ;;  %v5792_v15 = vsel %vm576_vm0, %v5726_v33, %v1256_v57  ;;  %v5795_v18 = vsel %vm576_vm0, %v1336_v7, %v1340_v26  ;;  %v834_v6 = vmax.f32 %v829_v55, 0.0 }
 0x1a1   : > { %v5798_v11 = vsel %vm576_vm0, %v1361_v25, %v1365_v38  ;;  %v5801_v27 = vsel %vm576_vm0, %v1390_v3, %v1394_v32  ;;  %v5804_v51 = vsel %vm576_vm0, %v1419_v29, %v1423_v41  ;;  %v5809_v52 = vsel %vm576_vm0, %v1310_v49, %v1314_v31 }
 0x1a2   : > { %v1478_v46 = vrot.slane %v833_v59, 7  ;;  %v1563_v22 = vrot.slane %v833_v59, 2  ;;  %v5812_v7 = vsel %vm576_vm0, %v1448_v24, %v1452_v16  ;;  %v5815_v36 = vsel %vm576_vm0, %v1509_v34, %v833_v59 }
 0x1a3   : > { %v1538_v14 = vrot.slane %v833_v59, 1  ;;  %v5820_v3 = vsel %vm576_vm0, %v1311_v19, %v1315_v5  ;;  %v1588_v29 = vrot.slane %v833_v59, 3  ;;  %v1617_v12 = vrot.slane %v833_v59, 4 }
 0x1a4   : > { %v1646_v8 = vrot.slane %v833_v59, 5  ;;  %v5825_v24 = vsel %vm576_vm0, %v5732_v17, %v1478_v46  ;;  %v5828_v34 = vsel %vm576_vm0, %v1559_v37, %v1563_v22  ;;  %v1675_v30 = vrot.slane %v833_v59, 6 }
 0x1a5   : > { %v1479_v31 = vrot.slane %v834_v6, 7  ;;  %v1539_v53 = vrot.slane %v834_v6, 1  ;;  %v1564_v56 = vrot.slane %v834_v6, 2  ;;  %v1589_v33 = vrot.slane %v834_v6, 3 }
 0x1a6   : > { %v1618_v2 = vrot.slane %v834_v6, 4  ;;  %v1647_v13 = vrot.slane %v834_v6, 5  ;;  %v1676_v57 = vrot.slane %v834_v6, 6  ;;  %v5840_v37 = vsel %vm576_vm0, %v1613_v9, %v1617_v12 }
 0x1a7   : > { %v5845_v59 = vsel %vm576_vm0, %v1510_v60, %v834_v6  ;;  %v5852_v38 = vsel %vm576_vm0, %v1642_v21, %v1646_v8  ;;  %v5861_v9 = vsel %vm576_vm0, %v5740_v20, %v1479_v31  ;;  %v5866_v60 = vsel %vm576_vm0, %v1534_v28, %v1538_v14 }
 0x1a8   : > { %v5871_v32 = vsel %vm576_vm0, %v1560_v43, %v1564_v56  ;;  %v5876_v21 = vsel %vm576_vm0, %v1585_v63, %v1589_v33  ;;  %v5883_v41 = vsel %vm576_vm0, %v1535_v42, %v1539_v53  ;;  %v5888_v17 = vsel %vm576_vm0, %v1614_v61, %v1618_v2 }
 0x1a9   : > { %v5893_v28 = vsel %vm576_vm0, %v1643_v47, %v1647_v13  ;;  %v5898_v43 = vsel %vm576_vm0, %v1672_v48, %v1676_v57 }
 0x1ad   : > { %v1243_v45 = vpop.f32.mrf.mxu3 }
 0x1ae   : > { %v1244_v49 = vadd.f32 %v1243_v45, %v5410_v23  ;;  %v5835_v45 = vsel %vm576_vm0, %v1584_v39, %v1588_v29  ;;  %v5857_v39 = vsel %vm576_vm0, %v1671_v62, %v1675_v30 }
 0x1b0   : > { %v5847_v55 = vmax.f32 %v1244_v49, 0.0 }
 0x1b2   : > { %v1268_v42 = vrot.slane %v5847_v55, 5  ;;  %v1294_v5 = vrot.slane %v5847_v55, 6  ;;  %v1319_v16 = vrot.slane %v5847_v55, 7  ;;  %v1373_v61 = vrot.slane %v5847_v55, 1 }
 0x1b3   : > { %v1402_v47 = vrot.slane %v5847_v55, 2 }
 0x1b5   : > { %v1246_v25 = vpop.f32.mrf.mxu3 }
 0x1b6   : > { %v1247_v19 = vadd.f32 %v1246_v25, %v5512_v0 }
 0x1b8   : > { %v5878_v62 = vmax.f32 %v1247_v19, 0.0 }
 0x1be   : > { %v1220_v54 = vpop.f32.mrf.mxu2 }
 0x1bf   : > { %v1221_v26 = vadd.f32 %v1220_v54, %v5410_v23 }
 0x1c1   : > { %v5900_v63 = vmax.f32 %v1221_v26, 0.0 }
 0x1c3   : > { %v1267_v30 = vrot.slane %v5900_v63, 5  ;;  %v1293_v53 = vrot.slane %v5900_v63, 6  ;;  %v1318_v56 = vrot.slane %v5900_v63, 7  ;;  %v1372_v33 = vrot.slane %v5900_v63, 1 }
 0x1c4   : > { %v1430_v54 = vrot.slane %v5900_v63, 3 }
 0x1c6   : > { %v1223_v48 = vpop.f32.mrf.mxu2 }
 0x1c7   : > { %v1224_v19 = vadd.f32 %v1223_v48, %v5512_v0  ;;  %v1401_v48 = vrot.slane %v5900_v63, 2 }
 0x1c9   : > { %v5942_v25 = vmax.f32 %v1224_v19, 0.0 }
 0x1dc   : > { %v1045_v46 = vpop.f32.mrf.mxu0  ;;  %v1068_v22 = vpop.f32.mrf.mxu1 }
 0x1dd   : > { %v1046_v14 = vadd.f32 %v1045_v46, %v5410_v23  ;;  %v1069_v12 = vadd.f32 %v1068_v22, %v5410_v23 }
 0x1df   : > { %v5917_v31 = vmax.f32 %v1046_v14, 0.0  ;;  %v5932_v14 = vmax.f32 %v1069_v12, 0.0 }
 0x1e1   : > { %v1261_v2 = vrot.slane %v5917_v31, 6  ;;  %v1289_v23 = vrot.slane %v5917_v31, 7  ;;  %v1324_v13 = vsel %vm585_vm5, %v5809_v52, %v5917_v31  ;;  %v1343_v57 = vrot.slane %v5917_v31, 1 }
 0x1e2   : > { %v1368_v26 = vrot.slane %v5917_v31, 2  ;;  %v1397_v46 = vrot.slane %v5917_v31, 3  ;;  %v1426_v22 = vrot.slane %v5917_v31, 4  ;;  %v1326_v29 = vsel %vm570_vm2, %v1324_v13, %v1318_v56 }
 0x1e3   : > { %v1273_v49 = vsel %vm585_vm5, %v5769_v58, %v1261_v2  ;;  %v1299_v8 = vsel %vm585_vm5, %v5765_v4, %v1289_v23  ;;  %v1349_v52 = vsel %vm585_vm5, %v5773_v44, %v1343_v57  ;;  %v1455_v4 = vrot.slane %v5917_v31, 5 }
 0x1e4   : > { %v1378_v12 = vsel %vm585_vm5, %v5776_v50, %v1368_v26  ;;  %v1275_v20 = vsel %vm570_vm2, %v1273_v49, %v1267_v30  ;;  %v1301_v6 = vsel %vm570_vm2, %v1299_v8, %v1293_v53  ;;  %v1351_v58 = vsel %vm570_vm2, %v1349_v52, %v5900_v63 }
 0x1e5   : > { %v1380_v44 = vsel %vm570_vm2, %v1378_v12, %v1372_v33  ;;  %v1407_v19 = vsel %vm585_vm5, %v5782_v40, %v1397_v46  ;;  %v1436_v56 = vsel %vm585_vm5, %v5785_v1, %v1426_v22  ;;  %v1262_v2 = vrot.slane %v5932_v14, 6 }
 0x1e6   : > { %v1290_v50 = vrot.slane %v5932_v14, 7  ;;  %v1325_v8 = vsel %vm585_vm5, %v5820_v3, %v5932_v14  ;;  %v1344_v49 = vrot.slane %v5932_v14, 1  ;;  %v1369_v30 = vrot.slane %v5932_v14, 2 }
 0x1e7   : > { %v1274_v31 = vsel %vm585_vm5, %v5792_v15, %v1262_v2  ;;  %v1327_v40 = vsel %vm570_vm2, %v1325_v8, %v1319_v16  ;;  %v1398_v53 = vrot.slane %v5932_v14, 3  ;;  %v1427_v1 = vrot.slane %v5932_v14, 4  ;;  %v1048_v2 = vpop.f32.mrf.mxu0  ;;  %v1071_v8 = vpop.f32.mrf.mxu1 }
 0x1e8   : > { %v1276_v33 = vsel %vm570_vm2, %v1274_v31, %v1268_v42  ;;  %v1300_v23 = vsel %vm585_vm5, %v5779_v35, %v1290_v50  ;;  %v1330_v13 = vrot.slane %v1327_v40, 4  ;;  %v1350_v3 = vsel %vm585_vm5, %v5795_v18, %v1344_v49 }
 0x1e9   : > { %v1279_v57 = vrot.slane %v1276_v33, 4  ;;  %v1302_v26 = vsel %vm570_vm2, %v1300_v23, %v1294_v5  ;;  %v1352_v15 = vsel %vm570_vm2, %v1350_v3, %v5847_v55  ;;  %v1379_v16 = vsel %vm585_vm5, %v5798_v11, %v1369_v30 }
 0x1ea   : > { %v1305_v46 = vrot.slane %v1302_v26, 4  ;;  %v1331_v22 = vsel %vm579_vm1, %v1326_v29, %v1330_v13  ;;  %v1355_v42 = vrot.slane %v1352_v15, 4  ;;  %v1381_v35 = vsel %vm570_vm2, %v1379_v16, %v1373_v61 }
 0x1eb   : > { %v1280_v52 = vsel %vm579_vm1, %v1275_v20, %v1279_v57  ;;  %1334 = vst [vmem:[#allocation2 + $0x10] sm:$0xff] %v1331_v22  ;;  %v1384_v18 = vrot.slane %v1381_v35, 4  ;;  %v1408_v5 = vsel %vm585_vm5, %v5801_v27, %v1398_v53  ;;  %v1437_v12 = vsel %vm585_vm5, %v5804_v51, %v1427_v1 }
 0x1ec   : > { %1282 = vst [vmem:[#allocation2] sm:$0xff] %v1280_v52  ;;  %v1306_v11 = vsel %vm579_vm1, %v1301_v6, %v1305_v46  ;;  %v1356_v29 = vsel %vm579_vm1, %v1351_v58, %v1355_v42  ;;  %v1410_v61 = vsel %vm570_vm2, %v1408_v5, %v1402_v47  ;;  %v6538_v20 = vrot.slane %v5847_v55, 3 }
 0x1ed   : > { %1309 = vst [vmem:[#allocation2 + $0x8] sm:$0xff] %v1306_v11  ;;  %v1385_v27 = vsel %vm579_vm1, %v1380_v44, %v1384_v18  ;;  %v1413_v49 = vrot.slane %v1410_v61, 4  ;;  %v1456_v30 = vrot.slane %v5932_v14, 5  ;;  %v1409_v6 = vsel %vm570_vm2, %v1407_v19, %v1401_v48 }
 0x1ee   : > { %v1439_v50 = vsel %vm570_vm2, %v1437_v12, %v6538_v20  ;;  %v1438_v58 = vsel %vm570_vm2, %v1436_v56, %v1430_v54  ;;  %v1465_v31 = vsel %vm585_vm5, %v5788_v10, %v1455_v4  ;;  %1359 = vst [vmem:[#allocation2 + $0x18] sm:$0xff] %v1356_v29  ;;  %v1049_v47 = vadd.f32 %v1048_v2, %v5512_v0 }
 0x1ef   : > { %v1442_v51 = vrot.slane %v1439_v50, 4  ;;  %1388 = vst [vmem:[#allocation2 + $0x20] sm:$0xff] %v1385_v27  ;;  %v1414_v40 = vsel %vm579_vm1, %v1409_v6, %v1413_v49  ;;  %v1466_v44 = vsel %vm585_vm5, %v5812_v7, %v1456_v30  ;;  %v1072_v14 = vadd.f32 %v1071_v8, %v5512_v0 }
 0x1f0   : > { %v1655_v48 = vrot.slane %v5878_v62, 3  ;;  %v1459_v54 = vrot.slane %v5900_v63, 4  ;;  %1417 = vst [vmem:[#allocation2 + $0x28] sm:$0xff] %v1414_v40  ;;  %v6539_v10 = vrot.slane %v5847_v55, 4  ;;  %v6013_v19 = vmax.f32 %v1049_v47, 0.0 }
 0x1f1   : > { %v1443_v53 = vsel %vm579_vm1, %v1438_v58, %v1442_v51  ;;  %v1684_v56 = vrot.slane %v5878_v62, 4  ;;  %v1490_v1 = vrot.slane %v5942_v25, 5  ;;  %v1517_v33 = vrot.slane %v5942_v25, 6 }
 0x1f2   : > { %v1468_v4 = vsel %vm570_vm2, %v1466_v44, %v6539_v10  ;;  %1446 = vst [vmem:[#allocation2 + $0x30] sm:$0xff] %v1443_v53  ;;  %v1467_v0 = vsel %vm570_vm2, %v1465_v31, %v1459_v54  ;;  %v1484_v23 = vrot.slane %v6013_v19, 6  ;;  %v1513_v63 = vrot.slane %v6013_v19, 7 }
 0x1f3   : > { %v1471_v7 = vrot.slane %v1468_v4, 4  ;;  %v1567_v55 = vrot.slane %v6013_v19, 1  ;;  %v1548_v3 = vsel %vm585_vm5, %v5866_v60, %v6013_v19  ;;  %v1592_v57 = vrot.slane %v6013_v19, 2 }
 0x1f4   : > { %v1077_v26 = vmax.f32 %v1072_v14, 0.0  ;;  %v1542_v15 = vrot.slane %v5942_v25, 7  ;;  %v1496_v16 = vsel %vm585_vm5, %v5825_v24, %v1484_v23  ;;  %v1523_v46 = vsel %vm585_vm5, %v5815_v36, %v1513_v63 }
 0x1f5   : > { %v1472_v13 = vsel %vm579_vm1, %v1467_v0, %v1471_v7  ;;  %v1573_v22 = vsel %vm585_vm5, %v5828_v34, %v1567_v55  ;;  %v1596_v42 = vrot.slane %v5942_v25, 1  ;;  %v1625_v35 = vrot.slane %v5942_v25, 2 }
 0x1f6   : > { %1475 = vst [vmem:[#allocation2 + $0x38] sm:$0xff] %v1472_v13  ;;  %v1654_v60 = vrot.slane %v5942_v25, 3  ;;  %v1602_v52 = vsel %vm585_vm5, %v5835_v45, %v1592_v57  ;;  %v1498_v18 = vsel %vm570_vm2, %v1496_v16, %v1490_v1  ;;  %v1550_v5 = vsel %vm570_vm2, %v1548_v3, %v1542_v15 }
 0x1f7   : > { %v1621_v24 = vrot.slane %v6013_v19, 3  ;;  %v1650_v36 = vrot.slane %v6013_v19, 4  ;;  %v1525_v12 = vsel %vm570_vm2, %v1523_v46, %v1517_v33  ;;  %v1575_v34 = vsel %vm570_vm2, %v1573_v22, %v5942_v25 }
 0x1f8   : > { %v1485_v2 = vrot.slane %v1077_v26, 6  ;;  %v1514_v11 = vrot.slane %v1077_v26, 7  ;;  %v1604_v29 = vsel %vm570_vm2, %v1602_v52, %v1596_v42  ;;  %v1549_v45 = vsel %vm585_vm5, %v5883_v41, %v1077_v26 }
 0x1f9   : > { %v1568_v61 = vrot.slane %v1077_v26, 1  ;;  %v1593_v20 = vrot.slane %v1077_v26, 2  ;;  %v1679_v50 = vrot.slane %v6013_v19, 5  ;;  %v6540_v49 = vrot.slane %v5878_v62, 7 }
 0x1fa   : > { %v1497_v8 = vsel %vm585_vm5, %v5861_v9, %v1485_v2  ;;  %v1524_v27 = vsel %vm585_vm5, %v5845_v59, %v1514_v11  ;;  %v6541_v30 = vrot.slane %v5878_v62, 5  ;;  %v6542_v41 = vrot.slane %v5878_v62, 6 }
 0x1fb   : > { %v1551_v51 = vsel %vm570_vm2, %v1549_v45, %v6540_v49  ;;  %v1574_v47 = vsel %vm585_vm5, %v5871_v32, %v1568_v61  ;;  %v1603_v53 = vsel %vm585_vm5, %v5876_v21, %v1593_v20  ;;  %v6543_v54 = vrot.slane %v5878_v62, 1 }
 0x1fc   : > { %v1499_v6 = vsel %vm570_vm2, %v1497_v8, %v6541_v30  ;;  %v1526_v58 = vsel %vm570_vm2, %v1524_v27, %v6542_v41  ;;  %v1554_v31 = vrot.slane %v1551_v51, 4  ;;  %v1576_v59 = vsel %vm570_vm2, %v1574_v47, %v5878_v62 }
 0x1fd   : > { %v1502_v9 = vrot.slane %v1499_v6, 4  ;;  %v1529_v40 = vrot.slane %v1526_v58, 4  ;;  %v1579_v14 = vrot.slane %v1576_v59, 4  ;;  %v1605_v10 = vsel %vm570_vm2, %v1603_v53, %v6543_v54 }
 0x1fe   : > { %v1555_v44 = vsel %vm579_vm1, %v1550_v5, %v1554_v31  ;;  %v1622_v4 = vrot.slane %v1077_v26, 3  ;;  %v1608_v1 = vrot.slane %v1605_v10, 4  ;;  %v1651_v33 = vrot.slane %v1077_v26, 4 }
 0x1ff   : > { %v1503_v19 = vsel %vm579_vm1, %v1498_v18, %v1502_v9  ;;  %v1530_v32 = vsel %vm579_vm1, %v1525_v12, %v1529_v40  ;;  %1558 = vst [vmem:[#allocation2 + $0x50] sm:$0xff] %v1555_v44  ;;  %v1631_v7 = vsel %vm585_vm5, %v5840_v37, %v1621_v24  ;;  %v1580_v21 = vsel %vm579_vm1, %v1575_v34, %v1579_v14 }
 0x200   : > { %1506 = vst [vmem:[#allocation2 + $0x40] sm:$0xff] %v1503_v19  ;;  %v1632_v0 = vsel %vm585_vm5, %v5888_v17, %v1622_v4  ;;  %v1680_v23 = vrot.slane %v1077_v26, 5  ;;  %v1660_v63 = vsel %vm585_vm5, %v5852_v38, %v1650_v36  ;;  %v1609_v55 = vsel %vm579_vm1, %v1604_v29, %v1608_v1 }
 0x201   : > { %1533 = vst [vmem:[#allocation2 + $0x48] sm:$0xff] %v1530_v32  ;;  %v6544_v13 = vrot.slane %v5878_v62, 2  ;;  %v1661_v37 = vsel %vm585_vm5, %v5893_v28, %v1651_v33  ;;  %v1689_v57 = vsel %vm585_vm5, %v5857_v39, %v1679_v50  ;;  %v1683_v26 = vrot.slane %v5942_v25, 4 }
 0x202   : > { %1583 = vst [vmem:[#allocation2 + $0x58] sm:$0xff] %v1580_v21  ;;  %v1663_v17 = vsel %vm570_vm2, %v1661_v37, %v1655_v48  ;;  %v1690_v38 = vsel %vm585_vm5, %v5898_v43, %v1680_v23  ;;  %v1633_v16 = vsel %vm570_vm2, %v1631_v7, %v1625_v35  ;;  %v1662_v39 = vsel %vm570_vm2, %v1660_v63, %v1654_v60 }
 0x203   : > { %v1634_v3 = vsel %vm570_vm2, %v1632_v0, %v6544_v13  ;;  %1612 = vst [vmem:[#allocation2 + $0x60] sm:$0xff] %v1609_v55  ;;  %v1666_v46 = vrot.slane %v1663_v17, 4  ;;  %v1692_v28 = vsel %vm570_vm2, %v1690_v38, %v1684_v56  ;;  %v1691_v48 = vsel %vm570_vm2, %v1689_v57, %v1683_v26 }
 0x204   : > { %v1637_v15 = vrot.slane %v1634_v3, 4  ;;  %v1695_v42 = vrot.slane %v1692_v28, 4 }
 0x205   : > { %v1667_v43 = vsel %vm579_vm1, %v1662_v39, %v1666_v46 }
 0x206   : > { %v1638_v22 = vsel %vm579_vm1, %v1633_v16, %v1637_v15  ;;  %1670 = vst [vmem:[#allocation2 + $0x70] sm:$0xff] %v1667_v43  ;;  %v1696_v25 = vsel %vm579_vm1, %v1691_v48, %v1695_v42 }
 0x207   : > { %1641 = vst [vmem:[#allocation2 + $0x68] sm:$0xff] %v1638_v22 }
 0x208   : > { %1699 = vst [vmem:[#allocation2 + $0x78] sm:$0xff] %v1696_v25 }
 0x209 PF: > { %v3414_v62 = vld [vmem:[%s5106_s27 + $0x70] sm:$0xf]  ;;  %v4127_v56 = vld [vmem:[%s5106_s27 + $0x74] sm:$0xf0]  ;;  %v4126_v18 = vld [vmem:[%s5106_s27 + $0x74] sm:$0xf] }
 0x20a   : > { %v3478_v35 = vld [vmem:[%s5106_s27 + $0xf0] sm:$0xf]  ;;  %v3415_v60 = vor.u32 %v4127_v56, %v3414_v62  ;;  %v4143_v52 = vld [vmem:[%s5106_s27 + $0xf4] sm:$0xf0]  ;;  %v3416_v5 = vld [vmem:[%s5106_s27 + $0x78] sm:$0xf0] }
 0x20b   : > { %v3479_v24 = vor.u32 %v4143_v52, %v3478_v35  ;;  %v3419_v36 = vor.u32 %v4126_v18, %v3416_v5  ;;  %v4142_v12 = vld [vmem:[%s5106_s27 + $0xf4] sm:$0xf]  ;;  %v3480_v34 = vld [vmem:[%s5106_s27 + $0xf8] sm:$0xf0]  ;;  %v3406_v2 = vld [vmem:[%s5106_s27 + $0x60] sm:$0xf] }
 0x20c   : > { %1906 = vmatpush.bf16.msra.mxu0 %v3415_v60  ;;  %v3483_v11 = vor.u32 %v4142_v12, %v3480_v34  ;;  %v4125_v29 = vld [vmem:[%s5106_s27 + $0x64] sm:$0xf0]  ;;  %v3470_v45 = vld [vmem:[%s5106_s27 + $0xe0] sm:$0xf]  ;;  %v4124_v8 = vld [vmem:[%s5106_s27 + $0x64] sm:$0xf] }
 0x20d   : > { %v4141_v61 = vld [vmem:[%s5106_s27 + $0xe4] sm:$0xf0]  ;;  %1919 = vmatpush.bf16.msra.mxu1 %v3479_v24  ;;  %1932 = vmatpush.bf16.msra.mxu2 %v3419_v36  ;;  %v3407_v20 = vor.u32 %v4125_v29, %v3406_v2  ;;  %v3408_v27 = vld [vmem:[%s5106_s27 + $0x68] sm:$0xf0]  ;;  %v4140_v49 = vld [vmem:[%s5106_s27 + $0xe4] sm:$0xf] }
 0x20e   : > { %v3471_v50 = vor.u32 %v4141_v61, %v3470_v45  ;;  %1945 = vmatpush.bf16.msra.mxu3 %v3483_v11  ;;  %v3411_v51 = vor.u32 %v4124_v8, %v3408_v27  ;;  %v3472_v30 = vld [vmem:[%s5106_s27 + $0xe8] sm:$0xf0]  ;;  %v3398_v6 = vld [vmem:[%s5106_s27 + $0x50] sm:$0xf]  ;;  %v4123_v41 = vld [vmem:[%s5106_s27 + $0x54] sm:$0xf0] }
 0x20f   : > { %v3475_v58 = vor.u32 %v4140_v49, %v3472_v30  ;;  %v3462_v31 = vld [vmem:[%s5106_s27 + $0xd0] sm:$0xf]  ;;  %v4139_v47 = vld [vmem:[%s5106_s27 + $0xd4] sm:$0xf0]  ;;  %v4122_v9 = vld [vmem:[%s5106_s27 + $0x54] sm:$0xf]  ;;  %v3399_v40 = vor.u32 %v4123_v41, %v3398_v6 }
 0x210   : > { %1907 = vmatpush.bf16.msra.mxu0 %v3407_v20  ;;  %v3400_v59 = vld [vmem:[%s5106_s27 + $0x58] sm:$0xf0]  ;;  %v4138_v53 = vld [vmem:[%s5106_s27 + $0xd4] sm:$0xf]  ;;  %v3463_v14 = vor.u32 %v4139_v47, %v3462_v31  ;;  %v3390_v10 = vld [vmem:[%s5106_s27 + $0x40] sm:$0xf] }
 0x211   : > { %v3464_v44 = vld [vmem:[%s5106_s27 + $0xd8] sm:$0xf0]  ;;  %1920 = vmatpush.bf16.msra.mxu1 %v3471_v50  ;;  %1933 = vmatpush.bf16.msra.mxu2 %v3411_v51  ;;  %v3403_v54 = vor.u32 %v4122_v9, %v3400_v59  ;;  %v4121_v4 = vld [vmem:[%s5106_s27 + $0x44] sm:$0xf0]  ;;  %v3454_v19 = vld [vmem:[%s5106_s27 + $0xc0] sm:$0xf] }
 0x212   : > { %1946 = vmatpush.bf16.msra.mxu3 %v3475_v58  ;;  %v3467_v32 = vor.u32 %v4138_v53, %v3464_v44  ;;  %v4137_v1 = vld [vmem:[%s5106_s27 + $0xc4] sm:$0xf0]  ;;  %v4120_v33 = vld [vmem:[%s5106_s27 + $0x44] sm:$0xf]  ;;  %v3392_v7 = vld [vmem:[%s5106_s27 + $0x48] sm:$0xf0]  ;;  %v3391_v23 = vor.u32 %v4121_v4, %v3390_v10 }
 0x213   : > { %v4136_v21 = vld [vmem:[%s5106_s27 + $0xc4] sm:$0xf]  ;;  %v3456_v0 = vld [vmem:[%s5106_s27 + $0xc8] sm:$0xf0]  ;;  %v3455_v63 = vor.u32 %v4137_v1, %v3454_v19  ;;  %v3395_v55 = vor.u32 %v4120_v33, %v3392_v7  ;;  %v3382_v13 = vld [vmem:[%s5106_s27 + $0x30] sm:$0xf] }
 0x214   : > { %1908 = vmatpush.bf16.msra.mxu0 %v3399_v40  ;;  %v4119_v3 = vld [vmem:[%s5106_s27 + $0x34] sm:$0xf0]  ;;  %v3446_v37 = vld [vmem:[%s5106_s27 + $0xb0] sm:$0xf]  ;;  %v3459_v57 = vor.u32 %v4136_v21, %v3456_v0  ;;  %v4118_v17 = vld [vmem:[%s5106_s27 + $0x34] sm:$0xf] }
 0x215   : > { %1921 = vmatpush.bf16.msra.mxu1 %v3463_v14  ;;  %1934 = vmatpush.bf16.msra.mxu2 %v3403_v54  ;;  %v4135_v15 = vld [vmem:[%s5106_s27 + $0xb4] sm:$0xf0]  ;;  %v3384_v38 = vld [vmem:[%s5106_s27 + $0x38] sm:$0xf0]  ;;  %v4134_v26 = vld [vmem:[%s5106_s27 + $0xb4] sm:$0xf]  ;;  %v3383_v46 = vor.u32 %v4119_v3, %v3382_v13 }
 0x216   : > { %1947 = vmatpush.bf16.msra.mxu3 %v3467_v32  ;;  %v3448_v16 = vld [vmem:[%s5106_s27 + $0xb8] sm:$0xf0]  ;;  %v3447_v28 = vor.u32 %v4135_v15, %v3446_v37  ;;  %v3387_v39 = vor.u32 %v4118_v17, %v3384_v38  ;;  %v3374_v22 = vld [vmem:[%s5106_s27 + $0x20] sm:$0xf]  ;;  %v4117_v42 = vld [vmem:[%s5106_s27 + $0x24] sm:$0xf0] }
 0x217   : > { %v3438_v48 = vld [vmem:[%s5106_s27 + $0xa0] sm:$0xf]  ;;  %v3451_v43 = vor.u32 %v4134_v26, %v3448_v16  ;;  %v4133_v25 = vld [vmem:[%s5106_s27 + $0xa4] sm:$0xf0]  ;;  %v4116_v62 = vld [vmem:[%s5106_s27 + $0x24] sm:$0xf]  ;;  %v3375_v52 = vor.u32 %v4117_v42, %v3374_v22 }
 0x218   : > { %1909 = vmatpush.bf16.msra.mxu0 %v3391_v23  ;;  %v3376_v56 = vld [vmem:[%s5106_s27 + $0x28] sm:$0xf0]  ;;  %v4132_v35 = vld [vmem:[%s5106_s27 + $0xa4] sm:$0xf]  ;;  %v3439_v18 = vor.u32 %v4133_v25, %v3438_v48  ;;  %v3366_v24 = vld [vmem:[%s5106_s27 + $0x10] sm:$0xf] }
 0x219   : > { %1922 = vmatpush.bf16.msra.mxu1 %v3455_v63  ;;  %1935 = vmatpush.bf16.msra.mxu2 %v3395_v55  ;;  %v3440_v60 = vld [vmem:[%s5106_s27 + $0xa8] sm:$0xf0]  ;;  %v3379_v5 = vor.u32 %v4116_v62, %v3376_v56  ;;  %v4115_v36 = vld [vmem:[%s5106_s27 + $0x14] sm:$0xf0]  ;;  %v3430_v12 = vld [vmem:[%s5106_s27 + $0x90] sm:$0xf] }
 0x21a   : > { %1948 = vmatpush.bf16.msra.mxu3 %v3459_v57  ;;  %v3443_v34 = vor.u32 %v4132_v35, %v3440_v60  ;;  %v4131_v2 = vld [vmem:[%s5106_s27 + $0x94] sm:$0xf0]  ;;  %v4114_v11 = vld [vmem:[%s5106_s27 + $0x14] sm:$0xf]  ;;  %v3368_v29 = vld [vmem:[%s5106_s27 + $0x18] sm:$0xf0]  ;;  %v3367_v20 = vor.u32 %v4115_v36, %v3366_v24 }
 0x21b   : > { %v4130_v45 = vld [vmem:[%s5106_s27 + $0x94] sm:$0xf]  ;;  %v3432_v61 = vld [vmem:[%s5106_s27 + $0x98] sm:$0xf0]  ;;  %v3358_v50 = vld [vmem:[%s5106_s27] sm:$0xf]  ;;  %v3431_v27 = vor.u32 %v4131_v2, %v3430_v12  ;;  %v3371_v49 = vor.u32 %v4114_v11, %v3368_v29 }
 0x21c   : > { %1910 = vmatpush.bf16.msra.mxu0 %v3383_v46  ;;  %v4113_v8 = vld [vmem:[%s5106_s27 + $0x4] sm:$0xf0]  ;;  %v3422_v51 = vld [vmem:[%s5106_s27 + $0x80] sm:$0xf]  ;;  %v4112_v6 = vld [vmem:[%s5106_s27 + $0x4] sm:$0xf]  ;;  %v3435_v41 = vor.u32 %v4130_v45, %v3432_v61 }
 0x21d   : > { %1923 = vmatpush.bf16.msra.mxu1 %v3447_v28  ;;  %1936 = vmatpush.bf16.msra.mxu2 %v3387_v39  ;;  %v4129_v30 = vld [vmem:[%s5106_s27 + $0x84] sm:$0xf0]  ;;  %v3360_v58 = vld [vmem:[%s5106_s27 + $0x8] sm:$0xf0]  ;;  %v4128_v31 = vld [vmem:[%s5106_s27 + $0x84] sm:$0xf]  ;;  %v3359_v53 = vor.u32 %v4113_v8, %v3358_v50 }
 0x21e   : > { %1949 = vmatpush.bf16.msra.mxu3 %v3451_v43  ;;  %v3424_v47 = vld [vmem:[%s5106_s27 + $0x88] sm:$0xf0]  ;;  %v3577_v9 = vld [vmem:[%s5106_s27 + $0x170] sm:$0xf]  ;;  %v4160_v40 = vld [vmem:[%s5106_s27 + $0x174] sm:$0xf0]  ;;  %v3423_v10 = vor.u32 %v4129_v30, %v3422_v51  ;;  %v3363_v4 = vor.u32 %v4112_v6, %v3360_v58 }
 0x21f   : > { %v3641_v59 = vld [vmem:[%s5106_s27 + $0x1f0] sm:$0xf]  ;;  %v4176_v44 = vld [vmem:[%s5106_s27 + $0x1f4] sm:$0xf0]  ;;  %v4159_v14 = vld [vmem:[%s5106_s27 + $0x174] sm:$0xf]  ;;  %v3427_v1 = vor.u32 %v4128_v31, %v3424_v47  ;;  %v3578_v33 = vor.u32 %v4160_v40, %v3577_v9 }
 0x220   : > { %1911 = vmatpush.bf16.msra.mxu0 %v3375_v52  ;;  %v3579_v54 = vld [vmem:[%s5106_s27 + $0x178] sm:$0xf0]  ;;  %v4175_v19 = vld [vmem:[%s5106_s27 + $0x1f4] sm:$0xf]  ;;  %v3642_v7 = vor.u32 %v4176_v44, %v3641_v59  ;;  %v3569_v0 = vld [vmem:[%s5106_s27 + $0x160] sm:$0xf] }
 0x221   : > { %1924 = vmatpush.bf16.msra.mxu1 %v3439_v18  ;;  %1937 = vmatpush.bf16.msra.mxu2 %v3379_v5  ;;  %v3643_v32 = vld [vmem:[%s5106_s27 + $0x1f8] sm:$0xf0]  ;;  %v3582_v21 = vor.u32 %v4159_v14, %v3579_v54  ;;  %v4158_v23 = vld [vmem:[%s5106_s27 + $0x164] sm:$0xf0]  ;;  %v3633_v63 = vld [vmem:[%s5106_s27 + $0x1e0] sm:$0xf] }
 0x222   : > { %1950 = vmatpush.bf16.msra.mxu3 %v3443_v34  ;;  %v3646_v55 = vor.u32 %v4175_v19, %v3643_v32  ;;  %v4174_v13 = vld [vmem:[%s5106_s27 + $0x1e4] sm:$0xf0]  ;;  %v4157_v3 = vld [vmem:[%s5106_s27 + $0x164] sm:$0xf]  ;;  %v3571_v37 = vld [vmem:[%s5106_s27 + $0x168] sm:$0xf0]  ;;  %v3570_v17 = vor.u32 %v4158_v23, %v3569_v0 }
 0x223   : > { %v4173_v57 = vld [vmem:[%s5106_s27 + $0x1e4] sm:$0xf]  ;;  %v3635_v15 = vld [vmem:[%s5106_s27 + $0x1e8] sm:$0xf0]  ;;  %v3634_v38 = vor.u32 %v4174_v13, %v3633_v63  ;;  %v3574_v26 = vor.u32 %v4157_v3, %v3571_v37  ;;  %v3561_v16 = vld [vmem:[%s5106_s27 + $0x150] sm:$0xf] }
 0x224   : > { %1912 = vmatpush.bf16.msra.mxu0 %v3367_v20  ;;  %v4156_v46 = vld [vmem:[%s5106_s27 + $0x154] sm:$0xf0]  ;;  %v3625_v28 = vld [vmem:[%s5106_s27 + $0x1d0] sm:$0xf]  ;;  %v3638_v39 = vor.u32 %v4173_v57, %v3635_v15  ;;  %v4155_v42 = vld [vmem:[%s5106_s27 + $0x154] sm:$0xf] }
 0x225   : > { %1925 = vmatpush.bf16.msra.mxu1 %v3431_v27  ;;  %1938 = vmatpush.bf16.msra.mxu2 %v3371_v49  ;;  %v4172_v22 = vld [vmem:[%s5106_s27 + $0x1d4] sm:$0xf0]  ;;  %v3563_v48 = vld [vmem:[%s5106_s27 + $0x158] sm:$0xf0]  ;;  %v4171_v43 = vld [vmem:[%s5106_s27 + $0x1d4] sm:$0xf]  ;;  %v3562_v62 = vor.u32 %v4156_v46, %v3561_v16 }
 0x226   : > { %1951 = vmatpush.bf16.msra.mxu3 %v3435_v41  ;;  %v3627_v25 = vld [vmem:[%s5106_s27 + $0x1d8] sm:$0xf0]  ;;  %v3553_v56 = vld [vmem:[%s5106_s27 + $0x140] sm:$0xf]  ;;  %v4154_v35 = vld [vmem:[%s5106_s27 + $0x144] sm:$0xf0]  ;;  %v3626_v60 = vor.u32 %v4172_v22, %v3625_v28  ;;  %v3566_v52 = vor.u32 %v4155_v42, %v3563_v48 }
 0x227   : > { %s4111_s20 = sshll.u32 %s5006_s17, 5  ;;  %v3617_v18 = vld [vmem:[%s5106_s27 + $0x1c0] sm:$0xf]  ;;  %v4170_v5 = vld [vmem:[%s5106_s27 + $0x1c4] sm:$0xf0]  ;;  %v3630_v24 = vor.u32 %v4171_v43, %v3627_v25  ;;  %v3554_v29 = vor.u32 %v4154_v35, %v3553_v56  ;;  %vm1961_vm0 = vcmask 1043456  }
 0x228   : > { %1913 = vmatpush.bf16.msra.mxu0 %v3359_v53  ;;  %v4153_v36 = vld [vmem:[%s5106_s27 + $0x144] sm:$0xf]  ;;  %v3555_v12 = vld [vmem:[%s5106_s27 + $0x148] sm:$0xf0]  ;;  %s6200_s21 = scalar_lea.vmem [#allocation2], %s4111_s20  ;;  %v3618_v45 = vor.u32 %v4170_v5, %v3617_v18  ;;  %p3973_p1 = scmp.ne.s32.totalorder %s5006_s17, 3 }
 0x229   : > { %1926 = vmatpush.bf16.msra.mxu1 %v3423_v10  ;;  %1939 = vmatpush.bf16.msra.mxu2 %v3363_v4  ;;  %v1704_v34 = vld [vmem:[%s6200_s21] sm:$0xff]  ;;  %v3619_v11 = vld [vmem:[%s5106_s27 + $0x1c8] sm:$0xf0]  ;;  %v3558_v61 = vor.u32 %v4153_v36, %v3555_v12  ;;  %v3545_v20 = vld [vmem:[%s5106_s27 + $0x130] sm:$0xf] }
 0x22a   : > { %1952 = vmatpush.bf16.msra.mxu3 %v3427_v1  ;;  %v4169_v2 = vld [vmem:[%s5106_s27 + $0x1c4] sm:$0xf]  ;;  %1707 = vst [vmem:[#allocation1] ss:$2 sm:$0xff] %v1704_v34  ;;  %v4152_v50 = vld [vmem:[%s5106_s27 + $0x134] sm:$0xf0] }
 0x22b   : > { %v3609_v8 = vld [vmem:[%s5106_s27 + $0x1b0] sm:$0xf]  ;;  %v3622_v27 = vor.u32 %v4169_v2, %v3619_v11  ;;  %v4168_v49 = vld [vmem:[%s5106_s27 + $0x1b4] sm:$0xf0]  ;;  %v4151_v51 = vld [vmem:[%s5106_s27 + $0x134] sm:$0xf]  ;;  %v3546_v31 = vor.u32 %v4152_v50, %v3545_v20 }
 0x22c   : > { %2173 = vmatpush.bf16.msrb.mxu0 %v3578_v33  ;;  %v3547_v30 = vld [vmem:[%s5106_s27 + $0x138] sm:$0xf0]  ;;  %v4167_v6 = vld [vmem:[%s5106_s27 + $0x1b4] sm:$0xf]  ;;  %v3537_v58 = vld [vmem:[%s5106_s27 + $0x120] sm:$0xf]  ;;  %v3610_v59 = vor.u32 %v4168_v49, %v3609_v8 }
 0x22d   : > { %2186 = vmatpush.bf16.msrb.mxu1 %v3642_v7  ;;  %2199 = vmatpush.bf16.msrb.mxu2 %v3582_v21  ;;  %v3611_v41 = vld [vmem:[%s5106_s27 + $0x1b8] sm:$0xf0]  ;;  %v4150_v47 = vld [vmem:[%s5106_s27 + $0x124] sm:$0xf0]  ;;  %v3601_v9 = vld [vmem:[%s5106_s27 + $0x1a0] sm:$0xf]  ;;  %v3550_v53 = vor.u32 %v4151_v51, %v3547_v30 }
 0x22e   : > { %2212 = vmatpush.bf16.msrb.mxu3 %v3646_v55  ;;  %v3486_v40 = vld [vmem:[%s6200_s21 + $0x8] sm:$0xff]  ;;  %v4149_v14 = vld [vmem:[%s5106_s27 + $0x124] sm:$0xf]  ;;  %v3614_v10 = vor.u32 %v4167_v6, %v3611_v41  ;;  %v3538_v21 = vor.u32 %v4150_v47, %v3537_v58  ;;  %v3529_v0 = vld [vmem:[%s5106_s27 + $0x110] sm:$0xf] }
 0x22f   : > { %v4166_v44 = vld [vmem:[%s5106_s27 + $0x1a4] sm:$0xf0]  ;;  %v3539_v54 = vld [vmem:[%s5106_s27 + $0x128] sm:$0xf0]  ;;  %v4165_v32 = vld [vmem:[%s5106_s27 + $0x1a4] sm:$0xf] }
 0x230   : > { %2174 = vmatpush.bf16.msrb.mxu0 %v3570_v17  ;;  %v3603_v1 = vld [vmem:[%s5106_s27 + $0x1a8] sm:$0xf0]  ;;  %v3602_v23 = vor.u32 %v4166_v44, %v3601_v9  ;;  %v3542_v63 = vor.u32 %v4149_v14, %v3539_v54  ;;  %v4148_v55 = vld [vmem:[%s5106_s27 + $0x114] sm:$0xf0]  ;;  %v3593_v13 = vld [vmem:[%s5106_s27 + $0x190] sm:$0xf] }
 0x231   : > { %2187 = vmatpush.bf16.msrb.mxu1 %v3634_v38  ;;  %2200 = vmatpush.bf16.msrb.mxu2 %v3574_v26  ;;  %v1708_v4 = vld.sshfl [vmem:[#allocation1] sm:$0xff pattern:$0x75316420]  ;;  %v1709_v19 = vld.sshfl [vmem:[#allocation1 + $0x8] sm:$0xff pattern:$0x75316420]  ;;  %v3606_v37 = vor.u32 %v4165_v32, %v3603_v1  ;;  %v3530_v46 = vor.u32 %v4148_v55, %v3529_v0 }
 0x232   : > { %2213 = vmatpush.bf16.msrb.mxu3 %v3638_v39  ;;  %v1712_v33 = vpack.c.bf16 %v1708_v4, %v1708_v4  ;;  %v1713_v7 = vpack.c.bf16 %v1709_v19, %v1709_v19  ;;  %1973 = vst [vmem:[#allocation1] ss:$2 sm:$0xff] %v3486_v40  ;;  %v4164_v3 = vld [vmem:[%s5106_s27 + $0x194] sm:$0xf0]  ;;  %v4147_v57 = vld [vmem:[%s5106_s27 + $0x114] sm:$0xf] }
 0x233   : > { %v3531_v15 = vld [vmem:[%s5106_s27 + $0x118] sm:$0xf0]  ;;  %v4163_v17 = vld [vmem:[%s5106_s27 + $0x194] sm:$0xf]  ;;  %v3521_v26 = vld [vmem:[%s5106_s27 + $0x100] sm:$0xf]  ;;  %v3594_v43 = vor.u32 %v4164_v3, %v3593_v13 }
 0x234   : > { %2175 = vmatpush.bf16.msrb.mxu0 %v3562_v62  ;;  %1940 = vmatmul.bf16.vlgmr.msra.gmra.mxu2 %v1712_v33  ;;  %v3595_v38 = vld [vmem:[%s5106_s27 + $0x198] sm:$0xf0]  ;;  %v4146_v16 = vld [vmem:[%s5106_s27 + $0x104] sm:$0xf0]  ;;  %v3585_v28 = vld [vmem:[%s5106_s27 + $0x180] sm:$0xf]  ;;  %v3534_v25 = vor.u32 %v4147_v57, %v3531_v15 }
 0x235   : > { %2188 = vmatpush.bf16.msrb.mxu1 %v3626_v60  ;;  %2201 = vmatpush.bf16.msrb.mxu2 %v3566_v52  ;;  %v4162_v39 = vld [vmem:[%s5106_s27 + $0x184] sm:$0xf0]  ;;  %v4145_v22 = vld [vmem:[%s5106_s27 + $0x104] sm:$0xf]  ;;  %v3523_v42 = vld [vmem:[%s5106_s27 + $0x108] sm:$0xf0]  ;;  %v3598_v60 = vor.u32 %v4163_v17, %v3595_v38  ;;  %v3522_v36 = vor.u32 %v4146_v16, %v3521_v26 }
 0x236   : > { %2214 = vmatpush.bf16.msrb.mxu3 %v3630_v24  ;;  %1914 = vmatmul.bf16.vlgmr.msra.gmra.mxu0 %v1712_v33  ;;  %v3649_v48 = vld [vmem:[%s6200_s21 + $0x10] sm:$0xff]  ;;  %v4161_v62 = vld [vmem:[%s5106_s27 + $0x184] sm:$0xf]  ;;  %v3587_v56 = vld [vmem:[%s5106_s27 + $0x188] sm:$0xf0]  ;;  %v3586_v11 = vor.u32 %v4162_v39, %v3585_v28 }
 0x237   : > { %1953 = vmatmul.bf16.vlgmr.msra.gmra.mxu3 %v1713_v7  ;;  %1927 = vmatmul.bf16.vlgmr.msra.gmra.mxu1 %v1713_v7  ;;  %v3740_v35 = vld [vmem:[%s5106_s27 + $0x270] sm:$0xf]  ;;  %v4193_v5 = vld [vmem:[%s5106_s27 + $0x274] sm:$0xf0]  ;;  %v4192_v34 = vld [vmem:[%s5106_s27 + $0x274] sm:$0xf]  ;;  %v3590_v20 = vor.u32 %v4161_v62, %v3587_v56 }
 0x238   : > { %2176 = vmatpush.bf16.msrb.mxu0 %v3554_v29  ;;  %v3804_v24 = vld [vmem:[%s5106_s27 + $0x2f0] sm:$0xf]  ;;  %v4209_v12 = vld [vmem:[%s5106_s27 + $0x2f4] sm:$0xf0]  ;;  %v3742_v2 = vld [vmem:[%s5106_s27 + $0x278] sm:$0xf0]  ;;  %v3526_v29 = vor.u32 %v4145_v22, %v3523_v42  ;;  %v3741_v50 = vor.u32 %v4193_v5, %v3740_v35 }
 0x239   : > { %2189 = vmatpush.bf16.msrb.mxu1 %v3618_v45  ;;  %2202 = vmatpush.bf16.msrb.mxu2 %v3558_v61  ;;  %v1974_v52 = vld.sshfl [vmem:[#allocation1] sm:$0xff pattern:$0x75316420]  ;;  %v1975_v18 = vld.sshfl [vmem:[#allocation1 + $0x8] sm:$0xff pattern:$0x75316420]  ;;  %v3805_v8 = vor.u32 %v4209_v12, %v3804_v24 }
 0x23a   : > { %2215 = vmatpush.bf16.msrb.mxu3 %v3622_v27  ;;  %2239 = vst [vmem:[#allocation1] ss:$2 sm:$0xff] %v3649_v48  ;;  %v4208_v45 = vld [vmem:[%s5106_s27 + $0x2f4] sm:$0xf]  ;;  %v3806_v61 = vld [vmem:[%s5106_s27 + $0x2f8] sm:$0xf0]  ;;  %v3745_v27 = vor.u32 %v4192_v34, %v3742_v2  ;;  %v1979_v33 = vpack.c.bf16 %v1975_v18, %v1975_v18 }
 0x23b   : > { %v3732_v49 = vld [vmem:[%s5106_s27 + $0x260] sm:$0xf]  ;;  %v4191_v51 = vld [vmem:[%s5106_s27 + $0x264] sm:$0xf0]  ;;  %v3809_v6 = vor.u32 %v4208_v45, %v3806_v61  ;;  %v4190_v58 = vld [vmem:[%s5106_s27 + $0x264] sm:$0xf] }
 0x23c   : > { %2177 = vmatpush.bf16.msrb.mxu0 %v3546_v31  ;;  %v3796_v30 = vld [vmem:[%s5106_s27 + $0x2e0] sm:$0xf]  ;;  %v4207_v41 = vld [vmem:[%s5106_s27 + $0x2e4] sm:$0xf0]  ;;  %v3734_v31 = vld [vmem:[%s5106_s27 + $0x268] sm:$0xf0]  ;;  %v3733_v40 = vor.u32 %v4191_v51, %v3732_v49 }
 0x23d   : > { %2190 = vmatpush.bf16.msrb.mxu1 %v3610_v59  ;;  %2203 = vmatpush.bf16.msrb.mxu2 %v3550_v53  ;;  %v4206_v47 = vld [vmem:[%s5106_s27 + $0x2e4] sm:$0xf]  ;;  %v3798_v9 = vld [vmem:[%s5106_s27 + $0x2e8] sm:$0xf0]  ;;  %v1978_v59 = vpack.c.bf16 %v1974_v52, %v1974_v52  ;;  %v3797_v53 = vor.u32 %v4207_v41, %v3796_v30  ;;  %v3737_v44 = vor.u32 %v4190_v58, %v3734_v31  ;;  %v3724_v14 = vld [vmem:[%s5106_s27 + $0x250] sm:$0xf] }
 0x23e   : > { %2216 = vmatpush.bf16.msrb.mxu3 %v3614_v10  ;;  %v4189_v54 = vld [vmem:[%s5106_s27 + $0x254] sm:$0xf0]  ;;  %v3788_v10 = vld [vmem:[%s5106_s27 + $0x2d0] sm:$0xf]  ;;  %v3801_v4 = vor.u32 %v4206_v47, %v3798_v9  ;;  %v4188_v32 = vld [vmem:[%s5106_s27 + $0x254] sm:$0xf] }
 0x23f   : > { %v4205_v19 = vld [vmem:[%s5106_s27 + $0x2d4] sm:$0xf0]  ;;  %v3726_v1 = vld [vmem:[%s5106_s27 + $0x258] sm:$0xf0]  ;;  %v4204_v7 = vld [vmem:[%s5106_s27 + $0x2d4] sm:$0xf]  ;;  %v3725_v0 = vor.u32 %v4189_v54, %v3724_v14 }
 0x240   : > { %2178 = vmatpush.bf16.msrb.mxu0 %v3538_v21  ;;  %v3790_v21 = vld [vmem:[%s5106_s27 + $0x2d8] sm:$0xf0]  ;;  %v3729_v55 = vor.u32 %v4188_v32, %v3726_v1  ;;  %v4187_v13 = vld [vmem:[%s5106_s27 + $0x244] sm:$0xf0]  ;;  %v3780_v3 = vld [vmem:[%s5106_s27 + $0x2c0] sm:$0xf] }
 0x241   : > { %2191 = vmatpush.bf16.msrb.mxu1 %v3602_v23  ;;  %2204 = vmatpush.bf16.msrb.mxu2 %v3542_v63  ;;  %v3716_v23 = vld [vmem:[%s5106_s27 + $0x240] sm:$0xf]  ;;  %v3789_v63 = vor.u32 %v4205_v19, %v3788_v10  ;;  %v3793_v57 = vor.u32 %v4204_v7, %v3790_v21  ;;  %v4186_v15 = vld [vmem:[%s5106_s27 + $0x244] sm:$0xf]  ;;  %v3718_v17 = vld [vmem:[%s5106_s27 + $0x248] sm:$0xf0] }
 0x242   : > { %2217 = vmatpush.bf16.msrb.mxu3 %v3606_v37  ;;  %v4203_v37 = vld [vmem:[%s5106_s27 + $0x2c4] sm:$0xf0]  ;;  %v4202_v38 = vld [vmem:[%s5106_s27 + $0x2c4] sm:$0xf]  ;;  %v3782_v26 = vld [vmem:[%s5106_s27 + $0x2c8] sm:$0xf0]  ;;  %v3717_v28 = vor.u32 %v4187_v13, %v3716_v23 }
 0x243   : > { %v3708_v16 = vld [vmem:[%s5106_s27 + $0x230] sm:$0xf]  ;;  %v4201_v22 = vld [vmem:[%s5106_s27 + $0x2b4] sm:$0xf0]  ;;  %v3781_v48 = vor.u32 %v4203_v37, %v3780_v3  ;;  %v3785_v56 = vor.u32 %v4202_v38, %v3782_v26  ;;  %v4184_v35 = vld [vmem:[%s5106_s27 + $0x234] sm:$0xf] }
 0x244   : > { %2179 = vmatpush.bf16.msrb.mxu0 %v3530_v46  ;;  %v4185_v46 = vld [vmem:[%s5106_s27 + $0x234] sm:$0xf0]  ;;  %v3772_v39 = vld [vmem:[%s5106_s27 + $0x2b0] sm:$0xf]  ;;  %v4200_v52 = vld [vmem:[%s5106_s27 + $0x2b4] sm:$0xf] }
 0x245   : > { %2192 = vmatpush.bf16.msrb.mxu1 %v3594_v43  ;;  %2205 = vmatpush.bf16.msrb.mxu2 %v3534_v25  ;;  %v3812_v42 = vld [vmem:[%s6200_s21 + $0x18] sm:$0xff]  ;;  %v3721_v43 = vor.u32 %v4186_v15, %v3718_v17  ;;  %v6276_v25 = vld.sshfl [vmem:[#allocation1] sm:$0xff pattern:$0x75316420]  ;;  %v3709_v5 = vor.u32 %v4185_v46, %v3708_v16  ;;  %v3773_v24 = vor.u32 %v4201_v22, %v3772_v39  ;;  %v4183_v34 = vld [vmem:[%s5106_s27 + $0x224] sm:$0xf0] }
 0x246   : > { %2218 = vmatpush.bf16.msrb.mxu3 %v3598_v60  ;;  %v6278_v62 = vld.sshfl [vmem:[#allocation1 + $0x8] sm:$0xff pattern:$0x75316420]  ;;  %v3710_v60 = vld [vmem:[%s5106_s27 + $0x238] sm:$0xf0] }
 0x247   : > { %2505 = vst [vmem:[#allocation1] ss:$2 sm:$0xff] %v3812_v42  ;;  %v3774_v18 = vld [vmem:[%s5106_s27 + $0x2b8] sm:$0xf0]  ;;  %v3700_v12 = vld [vmem:[%s5106_s27 + $0x220] sm:$0xf] }
 0x248   : > { %2180 = vmatpush.bf16.msrb.mxu0 %v3522_v36  ;;  %v3713_v36 = vor.u32 %v4184_v35, %v3710_v60  ;;  %v3764_v2 = vld [vmem:[%s5106_s27 + $0x2a0] sm:$0xf]  ;;  %v4182_v45 = vld [vmem:[%s5106_s27 + $0x224] sm:$0xf]  ;;  %v3702_v61 = vld [vmem:[%s5106_s27 + $0x228] sm:$0xf0]  ;;  %v2245_v60 = vpack.c.bf16 %v6278_v62, %v6278_v62 }
 0x249   : > { %2193 = vmatpush.bf16.msrb.mxu1 %v3586_v11  ;;  %2206 = vmatpush.bf16.msrb.mxu2 %v3526_v29  ;;  %v3777_v11 = vor.u32 %v4200_v52, %v3774_v18  ;;  %v4199_v29 = vld [vmem:[%s5106_s27 + $0x2a4] sm:$0xf0]  ;;  %v3705_v49 = vor.u32 %v4182_v45, %v3702_v61  ;;  %v3692_v51 = vld [vmem:[%s5106_s27 + $0x210] sm:$0xf]  ;;  %v4181_v30 = vld [vmem:[%s5106_s27 + $0x214] sm:$0xf0] }
 0x24a   : > { %2219 = vmatpush.bf16.msrb.mxu3 %v3590_v20  ;;  %v4198_v20 = vld [vmem:[%s5106_s27 + $0x2a4] sm:$0xf]  ;;  %v4197_v58 = vld [vmem:[%s5106_s27 + $0x294] sm:$0xf0]  ;;  %v4180_v31 = vld [vmem:[%s5106_s27 + $0x214] sm:$0xf] }
 0x24b   : > { %2181 = vmatmul.bf16.vlgmr.msrb.gmra.mxu0 %v1978_v59  ;;  %v3694_v47 = vld [vmem:[%s5106_s27 + $0x218] sm:$0xf0]  ;;  %v4196_v9 = vld [vmem:[%s5106_s27 + $0x294] sm:$0xf]  ;;  %v3748_v10 = vld [vmem:[%s5106_s27 + $0x280] sm:$0xf] }
 0x24c   : > { %2439 = vmatpush.bf16.msra.mxu0 %v3741_v50  ;;  %2207 = vmatmul.bf16.vlgmr.msrb.gmra.mxu2 %v1978_v59  ;;  %v3766_v50 = vld [vmem:[%s5106_s27 + $0x2a8] sm:$0xf0]  ;;  %v3693_v59 = vor.u32 %v4181_v30, %v3692_v51  ;;  %v3697_v54 = vor.u32 %v4180_v31, %v3694_v47  ;;  %v4178_v19 = vld [vmem:[%s5106_s27 + $0x204] sm:$0xf]  ;;  %v3903_v21 = vld [vmem:[%s5106_s27 + $0x370] sm:$0xf] }
 0x24d   : > { %2452 = vmatpush.bf16.msra.mxu1 %v3805_v8  ;;  %2465 = vmatpush.bf16.msra.mxu2 %v3745_v27  ;;  %v3701_v8 = vor.u32 %v4183_v34, %v3700_v12  ;;  %v3765_v27 = vor.u32 %v4199_v29, %v3764_v2  ;;  %v3769_v41 = vor.u32 %v4198_v20, %v3766_v50  ;;  %v3686_v1 = vld [vmem:[%s5106_s27 + $0x208] sm:$0xf0]  ;;  %v3967_v23 = vld [vmem:[%s5106_s27 + $0x3f0] sm:$0xf]  ;;  %v4225_v13 = vld [vmem:[%s5106_s27 + $0x374] sm:$0xf] }
 0x24e   : > { %2478 = vmatpush.bf16.msra.mxu3 %v3809_v6  ;;  %2194 = vmatmul.bf16.vlgmr.msrb.gmra.mxu1 %v1979_v33  ;;  %v3756_v6 = vld [vmem:[%s5106_s27 + $0x290] sm:$0xf]  ;;  %v3750_v7 = vld [vmem:[%s5106_s27 + $0x288] sm:$0xf0]  ;;  %v3905_v3 = vld [vmem:[%s5106_s27 + $0x378] sm:$0xf0] }
 0x24f   : > { %2220 = vmatmul.bf16.vlgmr.msrb.gmra.mxu3 %v1979_v33  ;;  %v3757_v14 = vor.u32 %v4197_v58, %v3756_v6  ;;  %v4194_v33 = vld [vmem:[%s5106_s27 + $0x284] sm:$0xf]  ;;  %v4241_v15 = vld [vmem:[%s5106_s27 + $0x3f4] sm:$0xf]  ;;  %v3969_v17 = vld [vmem:[%s5106_s27 + $0x3f8] sm:$0xf0]  ;;  %v3908_v46 = vor.u32 %v4225_v13, %v3905_v3 }
 0x250   : > { %2440 = vmatpush.bf16.msra.mxu0 %v3733_v40  ;;  %v3758_v40 = vld [vmem:[%s5106_s27 + $0x298] sm:$0xf0]  ;;  %v3753_v38 = vor.u32 %v4194_v33, %v3750_v7  ;;  %v4224_v39 = vld [vmem:[%s5106_s27 + $0x364] sm:$0xf0]  ;;  %v3959_v22 = vld [vmem:[%s5106_s27 + $0x3e0] sm:$0xf]  ;;  %v3972_v42 = vor.u32 %v4241_v15, %v3969_v17 }
 0x251   : > { %2453 = vmatpush.bf16.msra.mxu1 %v3797_v53  ;;  %2466 = vmatpush.bf16.msra.mxu2 %v3737_v44  ;;  %v3684_v53 = vld [vmem:[%s5106_s27 + $0x200] sm:$0xf]  ;;  %v4179_v44 = vld [vmem:[%s5106_s27 + $0x204] sm:$0xf0]  ;;  %v3761_v32 = vor.u32 %v4196_v9, %v3758_v40  ;;  %v3897_v35 = vld [vmem:[%s5106_s27 + $0x368] sm:$0xf0] }
 0x252   : > { %2479 = vmatpush.bf16.msra.mxu3 %v3801_v4  ;;  %v4195_v4 = vld [vmem:[%s5106_s27 + $0x284] sm:$0xf0]  ;;  %v4239_v52 = vld [vmem:[%s5106_s27 + $0x3e4] sm:$0xf]  ;;  %v3961_v18 = vld [vmem:[%s5106_s27 + $0x3e8] sm:$0xf0] }
 0x253   : > { %v3749_v37 = vor.u32 %v4195_v4, %v3748_v10  ;;  %v4222_v12 = vld [vmem:[%s5106_s27 + $0x354] sm:$0xf0]  ;;  %v3951_v34 = vld [vmem:[%s5106_s27 + $0x3d0] sm:$0xf]  ;;  %v3964_v62 = vor.u32 %v4239_v52, %v3961_v18  ;;  %v3889_v29 = vld [vmem:[%s5106_s27 + $0x358] sm:$0xf0] }
 0x254   : > { %2441 = vmatpush.bf16.msra.mxu0 %v3725_v0  ;;  %v4226_v0 = vld [vmem:[%s5106_s27 + $0x374] sm:$0xf0]  ;;  %v4237_v45 = vld [vmem:[%s5106_s27 + $0x3d4] sm:$0xf]  ;;  %v3953_v61 = vld [vmem:[%s5106_s27 + $0x3d8] sm:$0xf0] }
 0x255   : > { %2454 = vmatpush.bf16.msra.mxu1 %v3789_v63  ;;  %2467 = vmatpush.bf16.msra.mxu2 %v3729_v55  ;;  %v3685_v63 = vor.u32 %v4179_v44, %v3684_v53  ;;  %v4242_v55 = vld [vmem:[%s5106_s27 + $0x3f4] sm:$0xf0]  ;;  %v3904_v26 = vor.u32 %v4226_v0, %v3903_v21  ;;  %v3943_v51 = vld [vmem:[%s5106_s27 + $0x3c0] sm:$0xf]  ;;  %v3956_v30 = vor.u32 %v4237_v45, %v3953_v61  ;;  %v4236_v6 = vld [vmem:[%s5106_s27 + $0x3c4] sm:$0xf0] }
 0x256   : > { %2480 = vmatpush.bf16.msra.mxu3 %v3793_v57  ;;  %v3689_v57 = vor.u32 %v4178_v19, %v3686_v1  ;;  %v3968_v16 = vor.u32 %v4242_v55, %v3967_v23  ;;  %v4238_v2 = vld [vmem:[%s5106_s27 + $0x3d4] sm:$0xf0]  ;;  %v3881_v58 = vld [vmem:[%s5106_s27 + $0x348] sm:$0xf0]  ;;  %v4235_v31 = vld [vmem:[%s5106_s27 + $0x3c4] sm:$0xf]  ;;  %v3944_v40 = vor.u32 %v4236_v6, %v3943_v51 }
 0x257   : > { %v3952_v50 = vor.u32 %v4238_v2, %v3951_v34  ;;  %v3945_v47 = vld [vmem:[%s5106_s27 + $0x3c8] sm:$0xf0]  ;;  %v3871_v53 = vld [vmem:[%s5106_s27 + $0x330] sm:$0xf]  ;;  %v4218_v44 = vld [vmem:[%s5106_s27 + $0x334] sm:$0xf0] }
 0x258   : > { %2442 = vmatpush.bf16.msra.mxu0 %v3717_v28  ;;  %v3895_v28 = vld [vmem:[%s5106_s27 + $0x360] sm:$0xf]  ;;  %v4234_v10 = vld [vmem:[%s5106_s27 + $0x3b4] sm:$0xf0]  ;;  %v4217_v4 = vld [vmem:[%s5106_s27 + $0x334] sm:$0xf]  ;;  %v3872_v33 = vor.u32 %v4218_v44, %v3871_v53 }
 0x259   : > { %2455 = vmatpush.bf16.msra.mxu1 %v3781_v48  ;;  %2468 = vmatpush.bf16.msra.mxu2 %v3721_v43  ;;  %v2244_v48 = vpack.c.bf16 %v6276_v25, %v6276_v25  ;;  %v4240_v43 = vld [vmem:[%s5106_s27 + $0x3e4] sm:$0xf0]  ;;  %v3896_v25 = vor.u32 %v4224_v39, %v3895_v28  ;;  %v3873_v19 = vld [vmem:[%s5106_s27 + $0x338] sm:$0xf0]  ;;  %v3863_v0 = vld [vmem:[%s5106_s27 + $0x320] sm:$0xf] }
 0x25a   : > { %2481 = vmatpush.bf16.msra.mxu3 %v3785_v56  ;;  %v4223_v56 = vld [vmem:[%s5106_s27 + $0x364] sm:$0xf]  ;;  %v3937_v1 = vld [vmem:[%s5106_s27 + $0x3b8] sm:$0xf0]  ;;  %v3876_v21 = vor.u32 %v4217_v4, %v3873_v19  ;;  %v4216_v23 = vld [vmem:[%s5106_s27 + $0x324] sm:$0xf0] }
 0x25b   : > { %v4232_v13 = vld [vmem:[%s5106_s27 + $0x3a4] sm:$0xf0]  ;;  %v4215_v3 = vld [vmem:[%s5106_s27 + $0x324] sm:$0xf]  ;;  %v3929_v15 = vld [vmem:[%s5106_s27 + $0x3a8] sm:$0xf0]  ;;  %v3864_v17 = vor.u32 %v4216_v23, %v3863_v0 }
 0x25c   : > { %2443 = vmatpush.bf16.msra.mxu0 %v3709_v5  ;;  %v3960_v5 = vor.u32 %v4240_v43, %v3959_v22  ;;  %v3919_v28 = vld [vmem:[%s5106_s27 + $0x390] sm:$0xf]  ;;  %v4230_v22 = vld [vmem:[%s5106_s27 + $0x394] sm:$0xf0]  ;;  %v4229_v43 = vld [vmem:[%s5106_s27 + $0x394] sm:$0xf] }
 0x25d   : > { %2456 = vmatpush.bf16.msra.mxu1 %v3773_v24  ;;  %2469 = vmatpush.bf16.msra.mxu2 %v3713_v36  ;;  %v3900_v24 = vor.u32 %v4223_v56, %v3897_v35  ;;  %v3887_v36 = vld [vmem:[%s5106_s27 + $0x350] sm:$0xf]  ;;  %v3921_v56 = vld [vmem:[%s5106_s27 + $0x398] sm:$0xf0]  ;;  %v3847_v18 = vld [vmem:[%s5106_s27 + $0x300] sm:$0xf] }
 0x25e   : > { %2482 = vmatpush.bf16.msra.mxu3 %v3777_v11  ;;  %v4221_v11 = vld [vmem:[%s5106_s27 + $0x354] sm:$0xf]  ;;  %v3888_v20 = vor.u32 %v4222_v12, %v3887_v36  ;;  %v4228_v36 = vld [vmem:[%s5106_s27 + $0x384] sm:$0xf0]  ;;  %v4211_v12 = vld [vmem:[%s5106_s27 + $0x304] sm:$0xf] }
 0x25f   : > { %v3849_v34 = vld [vmem:[%s5106_s27 + $0x308] sm:$0xf0] }
 0x260   : > { %2444 = vmatpush.bf16.msra.mxu0 %v3701_v8  ;;  %v3892_v8 = vor.u32 %v4221_v11, %v3889_v29  ;;  %v3913_v2 = vld [vmem:[%s5106_s27 + $0x388] sm:$0xf0]  ;;  %v2506_v29 = vld.sshfl [vmem:[#allocation1] sm:$0xff pattern:$0x75316420]  ;;  %v3852_v61 = vor.u32 %v4211_v12, %v3849_v34 }
 0x261   : > { %2457 = vmatpush.bf16.msra.mxu1 %v3765_v27  ;;  %2470 = vmatpush.bf16.msra.mxu2 %v3705_v49  ;;  %v3879_v27 = vld [vmem:[%s5106_s27 + $0x340] sm:$0xf]  ;;  %v4220_v49 = vld [vmem:[%s5106_s27 + $0x344] sm:$0xf0] }
 0x262   : > { %2483 = vmatpush.bf16.msra.mxu3 %v3769_v41  ;;  %v4219_v41 = vld [vmem:[%s5106_s27 + $0x344] sm:$0xf]  ;;  %v3880_v9 = vor.u32 %v4220_v49, %v3879_v27 }
 0x264   : > { %2445 = vmatpush.bf16.msra.mxu0 %v3693_v59  ;;  %v3884_v59 = vor.u32 %v4219_v41, %v3881_v58 }
 0x265   : > { %2458 = vmatpush.bf16.msra.mxu1 %v3757_v14  ;;  %2471 = vmatpush.bf16.msra.mxu2 %v3697_v54  ;;  %v3935_v14 = vld [vmem:[%s5106_s27 + $0x3b0] sm:$0xf]  ;;  %v3948_v54 = vor.u32 %v4235_v31, %v3945_v47 }
 0x266   : > { %2484 = vmatpush.bf16.msra.mxu3 %v3761_v32  ;;  %v4233_v32 = vld [vmem:[%s5106_s27 + $0x3b4] sm:$0xf]  ;;  %v3936_v7 = vor.u32 %v4234_v10, %v3935_v14 }
 0x267   : > { %v3940_v55 = vor.u32 %v4233_v32, %v3937_v1 }
 0x268   : > { %2446 = vmatpush.bf16.msra.mxu0 %v3685_v63  ;;  %v3927_v63 = vld [vmem:[%s5106_s27 + $0x3a0] sm:$0xf] }
 0x269   : > { %2459 = vmatpush.bf16.msra.mxu1 %v3749_v37  ;;  %2472 = vmatpush.bf16.msra.mxu2 %v3689_v57  ;;  %v3865_v37 = vld [vmem:[%s5106_s27 + $0x328] sm:$0xf0]  ;;  %v4231_v57 = vld [vmem:[%s5106_s27 + $0x3a4] sm:$0xf] }
 0x26a   : > { %2485 = vmatpush.bf16.msra.mxu3 %v3753_v38  ;;  %v3928_v38 = vor.u32 %v4232_v13, %v3927_v63  ;;  %v3932_v39 = vor.u32 %v4231_v57, %v3929_v15 }
 0x26b   : > { %2447 = vmatmul.bf16.vlgmr.msra.gmra.mxu0 %v2244_v48 }
 0x26c   : > { %2705 = vmatpush.bf16.msrb.mxu0 %v3904_v26  ;;  %2473 = vmatmul.bf16.vlgmr.msra.gmra.mxu2 %v2244_v48  ;;  %v3868_v26 = vor.u32 %v4215_v3, %v3865_v37  ;;  %v3857_v48 = vld [vmem:[%s5106_s27 + $0x318] sm:$0xf0] }
 0x26d   : > { %2718 = vmatpush.bf16.msrb.mxu1 %v3968_v16  ;;  %2731 = vmatpush.bf16.msrb.mxu2 %v3908_v46  ;;  %v3855_v16 = vld [vmem:[%s5106_s27 + $0x310] sm:$0xf]  ;;  %v4214_v46 = vld [vmem:[%s5106_s27 + $0x314] sm:$0xf0] }
 0x26e   : > { %2744 = vmatpush.bf16.msrb.mxu3 %v3972_v42  ;;  %2460 = vmatmul.bf16.vlgmr.msra.gmra.mxu1 %v2245_v60  ;;  %v4213_v42 = vld [vmem:[%s5106_s27 + $0x314] sm:$0xf]  ;;  %v3856_v35 = vor.u32 %v4214_v46, %v3855_v16 }
 0x26f   : > { %2486 = vmatmul.bf16.vlgmr.msra.gmra.mxu3 %v2245_v60  ;;  %v3920_v60 = vor.u32 %v4230_v22, %v3919_v28  ;;  %v3860_v52 = vor.u32 %v4213_v42, %v3857_v48 }
 0x270   : > { %2706 = vmatpush.bf16.msrb.mxu0 %v3896_v25  ;;  %v4212_v25 = vld [vmem:[%s5106_s27 + $0x304] sm:$0xf0] }
 0x271   : > { %2719 = vmatpush.bf16.msrb.mxu1 %v3960_v5  ;;  %2732 = vmatpush.bf16.msrb.mxu2 %v3900_v24  ;;  %v3911_v5 = vld [vmem:[%s5106_s27 + $0x380] sm:$0xf]  ;;  %v3924_v24 = vor.u32 %v4229_v43, %v3921_v56  ;;  %v3848_v11 = vor.u32 %v4212_v25, %v3847_v18 }
 0x272   : > { %2745 = vmatpush.bf16.msrb.mxu3 %v3964_v62  ;;  %v4227_v62 = vld [vmem:[%s5106_s27 + $0x384] sm:$0xf]  ;;  %v3912_v45 = vor.u32 %v4228_v36, %v3911_v5 }
 0x274   : > { %2707 = vmatpush.bf16.msrb.mxu0 %v3888_v20  ;;  %v2507_v20 = vld.sshfl [vmem:[#allocation1 + $0x8] sm:$0xff pattern:$0x75316420] }
 0x275   : > { %2720 = vmatpush.bf16.msrb.mxu1 %v3952_v50  ;;  %2733 = vmatpush.bf16.msrb.mxu2 %v3892_v8  ;;  %v3916_v50 = vor.u32 %v4227_v62, %v3913_v2  ;;  %v2510_v8 = vpack.c.bf16 %v2506_v29, %v2506_v29  ;;  %v2511_v27 = vpack.c.bf16 %v2507_v20, %v2507_v20 }
 0x276   : > { %2746 = vmatpush.bf16.msrb.mxu3 %v3956_v30 }
 0x278   : > { %2708 = vmatpush.bf16.msrb.mxu0 %v3880_v9 }
 0x279   : > { %2721 = vmatpush.bf16.msrb.mxu1 %v3944_v40  ;;  %2734 = vmatpush.bf16.msrb.mxu2 %v3884_v59 }
 0x27a   : > { %2747 = vmatpush.bf16.msrb.mxu3 %v3948_v54 }
 0x27c   : > { %2709 = vmatpush.bf16.msrb.mxu0 %v3872_v33 }
 0x27d   : > { %2722 = vmatpush.bf16.msrb.mxu1 %v3936_v7  ;;  %2735 = vmatpush.bf16.msrb.mxu2 %v3876_v21 }
 0x27e   : > { %2748 = vmatpush.bf16.msrb.mxu3 %v3940_v55 }
 0x280   : > { %2710 = vmatpush.bf16.msrb.mxu0 %v3864_v17 }
 0x281   : > { %2723 = vmatpush.bf16.msrb.mxu1 %v3928_v38  ;;  %2736 = vmatpush.bf16.msrb.mxu2 %v3868_v26  ;;  %v1705_v26 = vld [vmem:[#allocation3] sm:$0xff] }
 0x282   : > { %2749 = vmatpush.bf16.msrb.mxu3 %v3932_v39 }
 0x284   : > { %2711 = vmatpush.bf16.msrb.mxu0 %v3856_v35 }
 0x285   : > { %2724 = vmatpush.bf16.msrb.mxu1 %v3920_v60  ;;  %2737 = vmatpush.bf16.msrb.mxu2 %v3860_v52 }
 0x286   : > { %2750 = vmatpush.bf16.msrb.mxu3 %v3924_v24 }
 0x288   : > { %2712 = vmatpush.bf16.msrb.mxu0 %v3848_v11 }
 0x289   : > { %2725 = vmatpush.bf16.msrb.mxu1 %v3912_v45  ;;  %2738 = vmatpush.bf16.msrb.mxu2 %v3852_v61 }
 0x28a   : > { %2751 = vmatpush.bf16.msrb.mxu3 %v3916_v50 }
 0x28b   : > { %2713 = vmatmul.bf16.vlgmr.msrb.gmra.mxu0 %v2510_v8 }
 0x28c   : > { %2726 = vmatmul.bf16.vlgmr.msrb.gmra.mxu1 %v2511_v27  ;;  %2739 = vmatmul.bf16.vlgmr.msrb.gmra.mxu2 %v2510_v8 }
 0x28d   : > { %2752 = vmatmul.bf16.vlgmr.msrb.gmra.mxu3 %v2511_v27 }
 0x2b3   : > { %v1915_v49 = vpop.f32.mrf.mxu0 }
 0x2b4   : > { %v1928_v51 = vpop.f32.mrf.mxu1 }
 0x2b5   : > { %v1929_v30 = vadd.f32 %v1928_v51, %v1915_v49 }
 0x2b7   : > { %v1941_v6 = vpop.f32.mrf.mxu2 }
 0x2ba   : > { %v1954_v41 = vpop.f32.mrf.mxu3 }
 0x2bb   : > { %v1955_v58 = vadd.f32 %v1954_v41, %v1941_v6  ;;  %v1917_v31 = vpop.f32.mrf.mxu0 }
 0x2bc   : > { %v1930_v9 = vpop.f32.mrf.mxu1 }
 0x2bd   : > { %v1960_v47 = vrot.slane %v1955_v58, 4 }
 0x2bf   : > { %v1962_v40 = vsel %vm1961_vm0, %v1929_v30, %v1960_v47  ;;  %v1943_v59 = vpop.f32.mrf.mxu2 }
 0x2c0   : > { %v1964_v22 = vadd.f32 %v1962_v40, %v1705_v26 }
 0x2c2   : > { %v1956_v53 = vpop.f32.mrf.mxu3 }
 0x2c8   : > { %v2182_v44 = vpop.f32.mrf.mxu0 }
 0x2cb   : > { %v2195_v14 = vpop.f32.mrf.mxu1 }
 0x2cc   : > { %v2196_v38 = vadd.f32 %v2195_v14, %v2182_v44 }
 0x2cf   : > { %v2208_v54 = vpop.f32.mrf.mxu2 }
 0x2d0   : > { %v2184_v4 = vpop.f32.mrf.mxu0 }
 0x2d2   : > { %v2221_v10 = vpop.f32.mrf.mxu3 }
 0x2d3   : > { %v2197_v19 = vpop.f32.mrf.mxu1  ;;  %v2222_v3 = vadd.f32 %v2221_v10, %v2208_v54 }
 0x2d5   : > { %v2227_v17 = vrot.slane %v2222_v3, 4 }
 0x2d7   : > { %v2210_v32 = vpop.f32.mrf.mxu2  ;;  %v2228_v28 = vsel %vm1961_vm0, %v2196_v38, %v2227_v17 }
 0x2d8   : > { %v2230_v60 = vadd.f32 %v2228_v28, %v1964_v22 }
 0x2da   : > { %v2223_v1 = vpop.f32.mrf.mxu3 }
 0x2e8   : > { %v2448_v33 = vpop.f32.mrf.mxu0 }
 0x2eb   : > { %v2461_v7 = vpop.f32.mrf.mxu1 }
 0x2ec   : > { %v2462_v46 = vadd.f32 %v2461_v7, %v2448_v33 }
 0x2ef   : > { %v2474_v21 = vpop.f32.mrf.mxu2 }
 0x2f0   : > { %v2450_v23 = vpop.f32.mrf.mxu0 }
 0x2f2   : > { %v2487_v0 = vpop.f32.mrf.mxu3 }
 0x2f3   : > { %v2463_v63 = vpop.f32.mrf.mxu1  ;;  %v2488_v57 = vadd.f32 %v2487_v0, %v2474_v21 }
 0x2f5   : > { %v2493_v16 = vrot.slane %v2488_v57, 4 }
 0x2f7   : > { %v2476_v55 = vpop.f32.mrf.mxu2  ;;  %v2494_v43 = vsel %vm1961_vm0, %v2462_v46, %v2493_v16 }
 0x2f8   : > { %v2496_v25 = vadd.f32 %v2494_v43, %v2230_v60 }
 0x2fa   : > { %v2489_v13 = vpop.f32.mrf.mxu3 }
 0x308   : > { %v2714_v37 = vpop.f32.mrf.mxu0 }
 0x309   : > { %v2727_v15 = vpop.f32.mrf.mxu1 }
 0x30a   : > { %v2728_v52 = vadd.f32 %v2727_v15, %v2714_v37 }
 0x30f   : > { %v2740_v39 = vpop.f32.mrf.mxu2 }
 0x310   : > { %v2753_v42 = vpop.f32.mrf.mxu3  ;;  %v2716_v48 = vpop.f32.mrf.mxu0 }
 0x311   : > { %v2754_v56 = vadd.f32 %v2753_v42, %v2740_v39  ;;  %v2729_v35 = vpop.f32.mrf.mxu1 }
 0x313   : > { %v2759_v18 = vrot.slane %v2754_v56, 4 }
 0x314   : > { %2767 = sbr.rel (%p3973_p1) target bundleno = 1377 (0x561), region = 88 }
 0x315   : > { %v2760_v5 = vsel %vm1961_vm0, %v2728_v52, %v2759_v18 }
 0x316   : > { %v2762_v24 = vadd.f32 %v2760_v5, %v2496_v25 }
 0x317   : > { %v2742_v36 = vpop.f32.mrf.mxu2 }
 0x318   : > { %2763 = vst [vmem:[#allocation3] sm:$0xff] %v2762_v24  ;;  %v2755_v12 = vpop.f32.mrf.mxu3 }
 0x319   : > { %v4032_v34 = vld [vmem:[#allocation10 + $0x70] sm:$0xf]  ;;  %v4258_v62 = vld [vmem:[#allocation10 + $0x74] sm:$0xf0]  ;;  %v4257_v45 = vld [vmem:[#allocation10 + $0x74] sm:$0xf] }
 0x31a   : > { %v4096_v2 = vld [vmem:[#allocation10 + $0xf0] sm:$0xf]  ;;  %v4033_v11 = vor.u32 %v4258_v62, %v4032_v34  ;;  %v4274_v29 = vld [vmem:[#allocation10 + $0xf4] sm:$0xf0]  ;;  %v4034_v61 = vld [vmem:[#allocation10 + $0x78] sm:$0xf0] }
 0x31b   : > { %v4097_v20 = vor.u32 %v4274_v29, %v4096_v2  ;;  %v4037_v50 = vor.u32 %v4257_v45, %v4034_v61  ;;  %v4273_v8 = vld [vmem:[#allocation10 + $0xf4] sm:$0xf]  ;;  %v4098_v27 = vld [vmem:[#allocation10 + $0xf8] sm:$0xf0]  ;;  %v4024_v49 = vld [vmem:[#allocation10 + $0x60] sm:$0xf] }
 0x31c   : > { %2998 = vmatpush.bf16.msra.mxu0 %v4033_v11  ;;  %v4101_v51 = vor.u32 %v4273_v8, %v4098_v27  ;;  %v4256_v30 = vld [vmem:[#allocation10 + $0x64] sm:$0xf0]  ;;  %v4088_v6 = vld [vmem:[#allocation10 + $0xe0] sm:$0xf]  ;;  %v4255_v47 = vld [vmem:[#allocation10 + $0x64] sm:$0xf] }
 0x31d   : > { %v4272_v41 = vld [vmem:[#allocation10 + $0xe4] sm:$0xf0]  ;;  %3011 = vmatpush.bf16.msra.mxu1 %v4097_v20  ;;  %3024 = vmatpush.bf16.msra.mxu2 %v4037_v50  ;;  %v4025_v58 = vor.u32 %v4256_v30, %v4024_v49  ;;  %v4026_v9 = vld [vmem:[#allocation10 + $0x68] sm:$0xf0]  ;;  %v4271_v40 = vld [vmem:[#allocation10 + $0xe4] sm:$0xf] }
 0x31e   : > { %v4089_v31 = vor.u32 %v4272_v41, %v4088_v6  ;;  %3037 = vmatpush.bf16.msra.mxu3 %v4101_v51  ;;  %v4029_v59 = vor.u32 %v4255_v47, %v4026_v9  ;;  %v4090_v53 = vld [vmem:[#allocation10 + $0xe8] sm:$0xf0]  ;;  %v4016_v44 = vld [vmem:[#allocation10 + $0x50] sm:$0xf]  ;;  %v4254_v14 = vld [vmem:[#allocation10 + $0x54] sm:$0xf0] }
 0x31f   : > { %v4093_v54 = vor.u32 %v4271_v40, %v4090_v53  ;;  %v4080_v10 = vld [vmem:[#allocation10 + $0xd0] sm:$0xf]  ;;  %v4270_v4 = vld [vmem:[#allocation10 + $0xd4] sm:$0xf0]  ;;  %v4253_v19 = vld [vmem:[#allocation10 + $0x54] sm:$0xf]  ;;  %v4017_v32 = vor.u32 %v4254_v14, %v4016_v44 }
 0x320   : > { %2999 = vmatpush.bf16.msra.mxu0 %v4025_v58  ;;  %v4018_v1 = vld [vmem:[#allocation10 + $0x58] sm:$0xf0]  ;;  %v4269_v33 = vld [vmem:[#allocation10 + $0xd4] sm:$0xf]  ;;  %v4081_v21 = vor.u32 %v4270_v4, %v4080_v10  ;;  %v4008_v23 = vld [vmem:[#allocation10 + $0x40] sm:$0xf] }
 0x321   : > { %v4082_v7 = vld [vmem:[#allocation10 + $0xd8] sm:$0xf0]  ;;  %3012 = vmatpush.bf16.msra.mxu1 %v4089_v31  ;;  %3025 = vmatpush.bf16.msra.mxu2 %v4029_v59  ;;  %v4021_v0 = vor.u32 %v4253_v19, %v4018_v1  ;;  %v4252_v63 = vld [vmem:[#allocation10 + $0x44] sm:$0xf0]  ;;  %v4072_v55 = vld [vmem:[#allocation10 + $0xc0] sm:$0xf] }
 0x322   : > { %3038 = vmatpush.bf16.msra.mxu3 %v4093_v54  ;;  %v4085_v13 = vor.u32 %v4269_v33, %v4082_v7  ;;  %v4268_v3 = vld [vmem:[#allocation10 + $0xc4] sm:$0xf0]  ;;  %v4251_v37 = vld [vmem:[#allocation10 + $0x44] sm:$0xf]  ;;  %v4010_v57 = vld [vmem:[#allocation10 + $0x48] sm:$0xf0]  ;;  %v4009_v38 = vor.u32 %v4252_v63, %v4008_v23 }
 0x323   : > { %v4267_v15 = vld [vmem:[#allocation10 + $0xc4] sm:$0xf]  ;;  %v4074_v17 = vld [vmem:[#allocation10 + $0xc8] sm:$0xf0]  ;;  %v4073_v26 = vor.u32 %v4268_v3, %v4072_v55  ;;  %v4013_v16 = vor.u32 %v4251_v37, %v4010_v57  ;;  %v4000_v46 = vld [vmem:[#allocation10 + $0x30] sm:$0xf] }
 0x324   : > { %3000 = vmatpush.bf16.msra.mxu0 %v4017_v32  ;;  %v4250_v28 = vld [vmem:[#allocation10 + $0x34] sm:$0xf0]  ;;  %v4064_v39 = vld [vmem:[#allocation10 + $0xb0] sm:$0xf]  ;;  %v4077_v22 = vor.u32 %v4267_v15, %v4074_v17  ;;  %v4249_v48 = vld [vmem:[#allocation10 + $0x34] sm:$0xf] }
 0x325   : > { %3013 = vmatpush.bf16.msra.mxu1 %v4081_v21  ;;  %3026 = vmatpush.bf16.msra.mxu2 %v4021_v0  ;;  %v4266_v42 = vld [vmem:[#allocation10 + $0xb4] sm:$0xf0]  ;;  %v4002_v43 = vld [vmem:[#allocation10 + $0x38] sm:$0xf0]  ;;  %v4265_v56 = vld [vmem:[#allocation10 + $0xb4] sm:$0xf]  ;;  %v4001_v60 = vor.u32 %v4250_v28, %v4000_v46 }
 0x326   : > { %3039 = vmatpush.bf16.msra.mxu3 %v4085_v13  ;;  %v4066_v35 = vld [vmem:[#allocation10 + $0xb8] sm:$0xf0]  ;;  %v4065_v52 = vor.u32 %v4266_v42, %v4064_v39  ;;  %v4005_v18 = vor.u32 %v4249_v48, %v4002_v43  ;;  %v3992_v25 = vld [vmem:[#allocation10 + $0x20] sm:$0xf]  ;;  %v4248_v5 = vld [vmem:[#allocation10 + $0x24] sm:$0xf0] }
 0x327   : > { %v4056_v24 = vld [vmem:[#allocation10 + $0xa0] sm:$0xf]  ;;  %v4069_v36 = vor.u32 %v4265_v56, %v4066_v35  ;;  %v4264_v12 = vld [vmem:[#allocation10 + $0xa4] sm:$0xf0]  ;;  %v4247_v34 = vld [vmem:[#allocation10 + $0x24] sm:$0xf]  ;;  %v3993_v29 = vor.u32 %v4248_v5, %v3992_v25 }
 0x328   : > { %3001 = vmatpush.bf16.msra.mxu0 %v4009_v38  ;;  %v3994_v62 = vld [vmem:[#allocation10 + $0x28] sm:$0xf0]  ;;  %v4263_v2 = vld [vmem:[#allocation10 + $0xa4] sm:$0xf]  ;;  %v3984_v45 = vld [vmem:[#allocation10 + $0x10] sm:$0xf]  ;;  %v4057_v61 = vor.u32 %v4264_v12, %v4056_v24 }
 0x329   : > { %3014 = vmatpush.bf16.msra.mxu1 %v4073_v26  ;;  %3027 = vmatpush.bf16.msra.mxu2 %v4013_v16  ;;  %v4058_v11 = vld [vmem:[#allocation10 + $0xa8] sm:$0xf0]  ;;  %v3997_v20 = vor.u32 %v4247_v34, %v3994_v62  ;;  %v4246_v50 = vld [vmem:[#allocation10 + $0x14] sm:$0xf0]  ;;  %v4048_v8 = vld [vmem:[#allocation10 + $0x90] sm:$0xf] }
 0x32a   : > { %3040 = vmatpush.bf16.msra.mxu3 %v4077_v22  ;;  %v4262_v27 = vld [vmem:[#allocation10 + $0x94] sm:$0xf0]  ;;  %v4061_v49 = vor.u32 %v4263_v2, %v4058_v11  ;;  %v4245_v51 = vld [vmem:[#allocation10 + $0x14] sm:$0xf]  ;;  %v3986_v30 = vld [vmem:[#allocation10 + $0x18] sm:$0xf0]  ;;  %v3985_v9 = vor.u32 %v4246_v50, %v3984_v45 }
 0x32b   : > { %v2769_v6 = vld [vmem:[#allocation9] sm:$0x3]  ;;  %v4261_v41 = vld [vmem:[#allocation10 + $0x94] sm:$0xf]  ;;  %v3976_v40 = vld [vmem:[#allocation10] sm:$0xf]  ;;  %v4049_v59 = vor.u32 %v4262_v27, %v4048_v8  ;;  %v3989_v53 = vor.u32 %v4245_v51, %v3986_v30 }
 0x32c   : > { %3002 = vmatpush.bf16.msra.mxu0 %v4001_v60  ;;  %v4050_v58 = vld [vmem:[#allocation10 + $0x98] sm:$0xf0]  ;;  %v2771_v31 = vperm.slane %v2769_v6, 0  ;;  %v2772_v47 = vperm.slane %v2769_v6, 1  ;;  %v4244_v44 = vld [vmem:[#allocation10 + $0x4] sm:$0xf0] }
 0x32d   : > { %3015 = vmatpush.bf16.msra.mxu1 %v4065_v52  ;;  %3028 = vmatpush.bf16.msra.mxu2 %v4005_v18  ;;  %v4040_v14 = vld [vmem:[#allocation10 + $0x80] sm:$0xf]  ;;  %v2768_v54 = vld [vmem:[#allocation3] sm:$0xff]  ;;  %v4053_v4 = vor.u32 %v4261_v41, %v4050_v58  ;;  %v3977_v0 = vor.u32 %v4244_v44, %v3976_v40  ;;  %v3078_v37 = vld [vmem:[%s6522_s7 + $0x78] sm:$0xff]  ;;  %vm3055_vm1 = vcmask 1040384   ;;  %vm3136_vm3 = vcmask 24576  }
 0x32e   : > { %3041 = vmatpush.bf16.msra.mxu3 %v4069_v36  ;;  %v2773_v10 = vrot.slane %v2772_v47, 4  ;;  %v4260_v19 = vld [vmem:[#allocation10 + $0x84] sm:$0xf0]  ;;  %v4243_v32 = vld [vmem:[#allocation10 + $0x4] sm:$0xf]  ;;  %v3094_v57 = vld [vmem:[%s6522_s7 + $0xf8] sm:$0xff] }
 0x32f   : > { %v3978_v1 = vld [vmem:[#allocation10 + $0x8] sm:$0xf0]  ;;  %v4259_v33 = vld [vmem:[#allocation10 + $0x84] sm:$0xf]  ;;  %v4041_v63 = vor.u32 %v4260_v19, %v4040_v14  ;;  %v3074_v46 = vld [vmem:[%s6522_s7 + $0x58] sm:$0xff] }
 0x330   : > { %3003 = vmatpush.bf16.msra.mxu0 %v3993_v29  ;;  %v4042_v7 = vld [vmem:[#allocation10 + $0x88] sm:$0xf0]  ;;  %v2774_v21 = vsel %vm1961_vm0, %v2771_v31, %v2773_v10  ;;  %v3981_v55 = vor.u32 %v4243_v32, %v3978_v1  ;;  %v3075_v16 = vld [vmem:[%s6522_s7 + $0x60] sm:$0xff]  ;;  %v3090_v43 = vld [vmem:[%s6522_s7 + $0xd8] sm:$0xff] }
 0x331   : > { %3016 = vmatpush.bf16.msra.mxu1 %v4057_v61  ;;  %3029 = vmatpush.bf16.msra.mxu2 %v3997_v20  ;;  %v2776_v23 = vadd.f32 %v2774_v21, %v2768_v54  ;;  %v4045_v13 = vor.u32 %v4259_v33, %v4042_v7  ;;  %v3077_v15 = vld [vmem:[%s6522_s7 + $0x70] sm:$0xff]  ;;  %v3076_v38 = vld [vmem:[%s6522_s7 + $0x68] sm:$0xff]  ;;  %v3091_v28 = vld [vmem:[%s6522_s7 + $0xe0] sm:$0xff] }
 0x332   : > { %3042 = vmatpush.bf16.msra.mxu3 %v4061_v49  ;;  %v3093_v17 = vld [vmem:[%s6522_s7 + $0xf0] sm:$0xff]  ;;  %v3092_v26 = vld [vmem:[%s6522_s7 + $0xe8] sm:$0xff]  ;;  %v3071_v34 = vld [vmem:[%s6522_s7 + $0x40] sm:$0xff] }
 0x333   : > { %v2777_v3 = vmax.f32 %v2776_v23, 0.0  ;;  %v3073_v60 = vld [vmem:[%s6522_s7 + $0x50] sm:$0xff]  ;;  %v3072_v5 = vld [vmem:[%s6522_s7 + $0x48] sm:$0xff]  ;;  %v3087_v62 = vld [vmem:[%s6522_s7 + $0xc0] sm:$0xff] }
 0x334   : > { %3004 = vmatpush.bf16.msra.mxu0 %v3985_v9  ;;  %v3089_v52 = vld [vmem:[%s6522_s7 + $0xd0] sm:$0xff]  ;;  %v3088_v24 = vld [vmem:[%s6522_s7 + $0xc8] sm:$0xff]  ;;  %v3070_v29 = vld [vmem:[%s6522_s7 + $0x38] sm:$0xff] }
 0x335   : > { %3017 = vmatpush.bf16.msra.mxu1 %v4049_v59  ;;  %3030 = vmatpush.bf16.msra.mxu2 %v3989_v53  ;;  %2779 = vst [vmem:[#allocation1] ss:$2 sm:$0xff] %v2777_v3  ;;  %v3086_v45 = vld [vmem:[%s6522_s7 + $0xb8] sm:$0xff]  ;;  %v3069_v50 = vld [vmem:[%s6522_s7 + $0x30] sm:$0xff]  ;;  %v3068_v30 = vld [vmem:[%s6522_s7 + $0x28] sm:$0xff] }
 0x336   : > { %3043 = vmatpush.bf16.msra.mxu3 %v4053_v4  ;;  %v3085_v6 = vld [vmem:[%s6522_s7 + $0xb0] sm:$0xff]  ;;  %v3067_v41 = vld [vmem:[%s6522_s7 + $0x20] sm:$0xff]  ;;  %v3084_v58 = vld [vmem:[%s6522_s7 + $0xa8] sm:$0xff] }
 0x337   : > { %v3066_v31 = vld [vmem:[%s6522_s7 + $0x18] sm:$0xff]  ;;  %v3083_v47 = vld [vmem:[%s6522_s7 + $0xa0] sm:$0xff]  ;;  %v3065_v9 = vld [vmem:[%s6522_s7 + $0x10] sm:$0xff] }
 0x338   : > { %3005 = vmatpush.bf16.msra.mxu0 %v3977_v0  ;;  %v3082_v40 = vld [vmem:[%s6522_s7 + $0x98] sm:$0xff]  ;;  %v3064_v59 = vld [vmem:[%s6522_s7 + $0x8] sm:$0xff]  ;;  %v3081_v53 = vld [vmem:[%s6522_s7 + $0x90] sm:$0xff] }
 0x339   : > { %3018 = vmatpush.bf16.msra.mxu1 %v4041_v63  ;;  %3031 = vmatpush.bf16.msra.mxu2 %v3981_v55  ;;  %v3063_v44 = vld [vmem:[%s6522_s7] sm:$0xff]  ;;  %v3080_v14 = vld [vmem:[%s6522_s7 + $0x88] sm:$0xff] }
 0x33a   : > { %3044 = vmatpush.bf16.msra.mxu3 %v4045_v13  ;;  %v3079_v54 = vld [vmem:[%s6522_s7 + $0x80] sm:$0xff] }
 0x33b   : > { %v2832_v10 = vld [vmem:[#allocation12] sm:$0x3] }
 0x33c   : > { %3096 = vmatpush.msrb.mxu0 %v3078_v37  ;;  %v2780_v39 = vld.sshfl [vmem:[#allocation1] sm:$0xff pattern:$0x75316420]  ;;  %v2781_v22 = vld.sshfl [vmem:[#allocation1 + $0x8] sm:$0xff pattern:$0x75316420]  ;;  %v3058_v37 = vlaneseq }
 0x33d   : > { %3116 = vmatpush.msrb.mxu1 %v3094_v57  ;;  %v2784_v42 = vsel %vm1961_vm0, %v2780_v39, -inf  ;;  %v2791_v48 = vsel %vm1961_vm0, %v2781_v22, -inf  ;;  %v2994_v4 = vperm.slane %v2832_v10, 0  ;;  %v2995_v7 = vperm.slane %v2832_v10, 1 }
 0x33e   : > { %3097 = vmatpush.msrb.mxu0 %v3077_v15  ;;  %v2785_v56 = vrot.slane %v2784_v42, 4  ;;  %v2792_v35 = vrot.slane %v2791_v48, 4  ;;  %vm3060_vm2 = vcmp.lt.s32.totalorder %v3058_v37, 256 }
 0x33f   : > { %3117 = vmatpush.msrb.mxu1 %v3093_v17 }
 0x340   : > { %3098 = vmatpush.msrb.mxu0 %v3076_v38  ;;  %v2786_v18 = vmax.f32 %v2784_v42, %v2785_v56  ;;  %v2793_v25 = vmax.f32 %v2791_v48, %v2792_v35 }
 0x341   : > { %3118 = vmatpush.msrb.mxu1 %v3092_v26 }
 0x342   : > { %3099 = vmatpush.msrb.mxu0 %v3075_v16  ;;  %v2787_v36 = vrot.slane %v2786_v18, 2  ;;  %v2794_v12 = vrot.slane %v2793_v25, 2  ;;  %v3095_v16 = vld [vmem:[#allocation13] sm:$0x1] }
 0x343   : > { %3119 = vmatpush.msrb.mxu1 %v3091_v28 }
 0x344   : > { %3100 = vmatpush.msrb.mxu0 %v3074_v46  ;;  %v2788_v2 = vmax.f32 %v2786_v18, %v2787_v36  ;;  %v2795_v11 = vmax.f32 %v2793_v25, %v2794_v12 }
 0x345   : > { %3120 = vmatpush.msrb.mxu1 %v3090_v43 }
 0x346   : > { %3101 = vmatpush.msrb.mxu0 %v3073_v60  ;;  %v2789_v61 = vrot.slane %v2788_v2, 1  ;;  %v2796_v20 = vrot.slane %v2795_v11, 1 }
 0x347   : > { %3121 = vmatpush.msrb.mxu1 %v3089_v52 }
 0x348   : > { %3102 = vmatpush.msrb.mxu0 %v3072_v5  ;;  %v2790_v8 = vmax.f32 %v2788_v2, %v2789_v61  ;;  %v2797_v27 = vmax.f32 %v2795_v11, %v2796_v20 }
 0x349   : > { %3122 = vmatpush.msrb.mxu1 %v3088_v24 }
 0x34a   : > { %3103 = vmatpush.msrb.mxu0 %v3071_v34  ;;  %v2798_v49 = vpack.c.bf16 %v2790_v8, %v2790_v8  ;;  %v2799_v51 = vpack.c.bf16 %v2797_v27, %v2797_v27 }
 0x34b   : > { %3123 = vmatpush.msrb.mxu1 %v3087_v62 }
 0x34c   : > { %3104 = vmatpush.msrb.mxu0 %v3070_v29  ;;  %3019 = vmatmul.bf16.vlgmr.msra.gmra.mxu1 %v2799_v51 }
 0x34d   : > { %3124 = vmatpush.msrb.mxu1 %v3086_v45  ;;  %3006 = vmatmul.bf16.vlgmr.msra.gmra.mxu0 %v2798_v49 }
 0x34e   : > { %3105 = vmatpush.msrb.mxu0 %v3069_v50  ;;  %3032 = vmatmul.bf16.vlgmr.msra.gmra.mxu2 %v2798_v49 }
 0x34f   : > { %3045 = vmatmul.bf16.vlgmr.msra.gmra.mxu3 %v2799_v51  ;;  %3125 = vmatpush.msrb.mxu1 %v3085_v6 }
 0x350   : > { %3106 = vmatpush.msrb.mxu0 %v3068_v30 }
 0x351   : > { %3126 = vmatpush.msrb.mxu1 %v3084_v58 }
 0x352   : > { %3107 = vmatpush.msrb.mxu0 %v3067_v41 }
 0x353   : > { %3127 = vmatpush.msrb.mxu1 %v3083_v47 }
 0x354   : > { %3108 = vmatpush.msrb.mxu0 %v3066_v31 }
 0x355   : > { %3128 = vmatpush.msrb.mxu1 %v3082_v40 }
 0x356   : > { %3109 = vmatpush.msrb.mxu0 %v3065_v9 }
 0x357   : > { %3129 = vmatpush.msrb.mxu1 %v3081_v53 }
 0x358   : > { %3110 = vmatpush.msrb.mxu0 %v3064_v59 }
 0x359   : > { %3130 = vmatpush.msrb.mxu1 %v3080_v14 }
 0x35a   : > { %3111 = vmatpush.msrb.mxu0 %v3063_v44 }
 0x35b   : > { %3131 = vmatpush.msrb.mxu1 %v3079_v54 }
 0x3c9   : > { %v3020_v32 = vpop.f32.mrf.mxu1 }
 0x3ca   : > { %v3007_v19 = vpop.f32.mrf.mxu0 }
 0x3cb   : > { %v3008_v1 = vadd.f32 %v3007_v19, %v2994_v4 }
 0x3cd   : > { %v3021_v33 = vadd.f32 %v3020_v32, %v3008_v1 }
 0x3cf   : > { %v3050_v21 = vmax.f32 %v3021_v33, 0.0 }
 0x3d1   : > { %v3033_v0 = vpop.f32.mrf.mxu2  ;;  %3112 = vmatmul.f32.vlgmr.msrb.gmra.mxu0 %v3050_v21  ;;  %v3022_v13 = vpop.f32.mrf.mxu1 }
 0x3d2   : > { %v3046_v23 = vpop.f32.mrf.mxu3  ;;  %v3034_v63 = vadd.f32 %v3033_v0, %v2995_v7  ;;  %v3009_v55 = vpop.f32.mrf.mxu0 }
 0x3d4   : > { %v3047_v3 = vadd.f32 %v3046_v23, %v3034_v63 }
 0x3d6   : > { %v3051_v57 = vmax.f32 %v3047_v3, 0.0 }
 0x3d8   : > { %v3054_v15 = vrot.slane %v3051_v57, 7  ;;  %3132 = vmatmul.f32.vlgmr.msrb.gmra.mxu1 %v3051_v57 }
 0x3d9   : > { %v3035_v17 = vpop.f32.mrf.mxu2 }
 0x3da   : > { %v3048_v38 = vpop.f32.mrf.mxu3  ;;  %v3056_v26 = vsel %vm3055_vm1, %v3050_v21, %v3054_v15 }
 0x3db   : > { %3062 = vst.msk [vmem:[#allocation15] sm:$0x3] %vm3060_vm2, %v3056_v26 }
 0x44e   : > { %v3113_v46 = vpop.f32.mrf.mxu0 }
 0x44f   : > { %v3114_v28 = vadd.f32 %v3113_v46, %v3095_v16 }
 0x455   : > { %v3133_v39 = vpop.f32.mrf.mxu1 }
 0x456   : > { %v3134_v22 = vadd.f32 %v3133_v39, %v3114_v28 }
 0x458   : > { %v3137_v42 = vsel %vm3136_vm3, %v3134_v22, -inf }
 0x459   : > { %3138 = vmax.xlane.f32.xlu0 %v3137_v42 }
 0x4cc   : > { %v3139_v48 = vpop.xlane.xlu0 %3138 }
 0x4cd   : > { %v3140_v43 = vsub.f32 %v3134_v22, %v3139_v48 }
 0x4cf   : > { %v3141_v56 = vmul.f32 1.442695, %v3140_v43 }
 0x4d1   : > { %4613 = vpow2.f32 %v3141_v56 }
 0x4d7   : > { %v4614_v35 = vpop.eup %4613 }
 0x4d8   : > { %v3143_v60 = vsel %vm3136_vm3, %v4614_v35, 0.0 }
 0x4d9   : > { %3144 = vadd.xlane.f32.xlu0 %v3143_v60 }
 0x54c   : > { %v3145_v52 = vpop.xlane.xlu0 %3144 }
 0x54d   : > { %4615 = vrcp.f32 %v3145_v52  ;;  %v3157_v24 = vand.u32 2147483648, %v3145_v52  ;;  %v3155_v12 = vand.u32 2147483647, %v3145_v52  ;;  %vm3151_vm5 = vweird.f32 %v3145_v52 }
 0x54f   : > { %v3158_v62 = vor.u32 1.1754944e-38, %v3157_v24  ;;  %vm3156_vm7 = vcmp.eq.f32.partialorder %v3155_v12, 8.507059e+37 }
 0x553   : > { %v4616_v18 = vpop.eup %4615 }
 0x554   : > { %v3147_v25 = vmul.f32 %v4616_v18, %v3145_v52  ;;  %vm3152_vm4 = vweird.f32 %v4616_v18 }
 0x555   : > { %vm3153_vm6 = vmor %vm3151_vm5, %vm3152_vm4 }
 0x556   : > { %v3148_v5 = vsub.f32 1.0, %v3147_v25 }
 0x558   : > { %v3149_v36 = vmul.f32 %v4616_v18, %v3148_v5 }
 0x55a   : > { %v3150_v34 = vadd.f32 %v4616_v18, %v3149_v36 }
 0x55c   : > { %v3154_v2 = vsel %vm3153_vm6, %v4616_v18, %v3150_v34 }
 0x55d   : > { %v3159_v11 = vsel %vm3156_vm7, %v3158_v62, %v3154_v2 }
 0x55e   : > { %v3160_v29 = vmul.f32 %v4614_v35, %v3159_v11 }
 0x560   : > { %3161 = vst.msk [vmem:[#allocation16] sm:$0x1] %vm3136_vm3, %v3160_v29 }
 0x561 PF: > { %p4336_p4 = scmp.eq.s32.totalorder %s5006_s17, 3  ;;  %s4930_s29 = smov [#allocation15]  }
 0x562   : > { %s3168_s4 = sshll.u32 %s4930_s29, 4  ;;  %s3170_s27 = sshll.u32 %s6524_s9, 4  ;;  %s3169_s4 = int_to_ptr.vmem [resolvable:$true] %s3168_s4  ;;  %s3171_s27 = int_to_ptr.hbm [resolvable:$true] %s3170_s27 }
 0x563   : > { %4298 = dma.vmem_to_hbm [thread:$0]  (%p4336_p4), %s3169_s4, 32, %s3171_s27, [#allocation6]  }
 0x564   : > { %s3182_s23 = sshll.u32 %s6525_s10, 4  ;;  %s4931_s26 = smov [#allocation16]   ;;  %s3183_s23 = int_to_ptr.hbm [resolvable:$true] %s3182_s23 }
 0x565   : > { %s3180_s18 = sshll.u32 %s4931_s26, 4  ;;  %s3181_s18 = int_to_ptr.vmem [resolvable:$true] %s3180_s18 }
 0x566   : > { %4300 = dma.vmem_to_hbm [thread:$0]  (%p4336_p4), %s3181_s18, 16, %s3183_s23, [#allocation17]  }
 0x567   : > { %4890 = dma.done.wait (%p4336_p4), [#allocation6], 32  }
 0x568   : > { %4892 = vsyncadd (%p4336_p4), [#allocation6], 4294967264 }
 0x569   : > { %4894 = dma.done.wait (%p4336_p4), [#allocation17], 16  }
 0x56a   : > { %4896 = vsyncadd (%p4336_p4), [#allocation17], 4294967280 }
 0x56b PF: > { %s6545_s22 = smov %s5061_s13  ;;  %p26_p5 = scmp.ge.s32.totalorder %s5061_s13, 6  }
 0x56c   : > { %s6546_s13 = smov %s4903_s14  ;;  %s6547_s14 = smov %s4907_s15 }
 0x56d   : > { %s6548_s15 = smov %s5072_s28  ;;  %s6549_s16 = smov %s6545_s22 }
 0x56e   :  { %28 = sbr.rel (!%p26_p5) target bundleno = 11 (0xb), region = 152 }
 0x573   :  { %3201 = vsyncpa [#allocation5], 1 }
 0x574   :  { %3203 = vsyncpa [#allocation5 + $0x1], 1 }
 0x575   :  { %3204 = vsyncpa [#allocation8], 1 }
 0x576   :  { %3206 = vsyncpa [#allocation8 + $0x1], 1 }
 0x577   :  { %3207 = vsyncpa [#allocation11], 1 }
 0x578   :  { %3208 = vsyncpa [#allocation14], 1 }
 0x579   :  { %3209 = vsyncpa [#allocation6], 1 }
 0x57a   :  { %3211 = vsyncpa [#allocation6 + $0x1], 1 }
 0x57b   :  { %3212 = vsyncpa [#allocation17], 1 }

</bundles_post_ra>
